<compile_context>
chip_gen: v7x
topology: tpu7x:2x2x1
jax: 0.10.0
libtpu: 0.0.40
codegen_flags: <defaults>
</compile_context>

<pallas_src>
import jax
import jax.numpy as jnp
from jax.experimental import pallas as pl
from jax.experimental.pallas import tpu as pltpu

SEQ = 5      # sequence_length
HID = 64     # hidden_size
LAT = 4      # latent_length
GATES = 3 * HID
# hidden_layer_depth = 2 is hard-coded as two explicit GRU layers in the kernel.

_HIGHEST = jax.lax.Precision.HIGHEST


def decoder_kernel(z_ref, wg_ref, misc_ref, out_ref):
    H = HID
    G = GATES
    B = z_ref.shape[0]

    def mm(a, w):
        return jnp.dot(a, w, preferred_element_type=jnp.float32, precision=_HIGHEST)

    # ---- unpack the misc operand (see pack_params for the row layout) ----
    wlh = misc_ref[0:LAT, 0:H]                                        # (LAT, H)
    blh = jnp.broadcast_to(misc_ref[4:5, 0:H], (B, H))
    b0_row = jnp.broadcast_to(misc_ref[5:6, :], (B, G))               # [r|z|n(hidden)] layer0
    b0_in = jnp.broadcast_to(misc_ref[6:7, 0:H], (B, H))              # layer0 n-gate input bias
    b1i_row = jnp.broadcast_to(misc_ref[7:8, :], (B, G))              # [r|z|n(input)] layer1
    b1_hn = jnp.broadcast_to(misc_ref[8:9, 0:H], (B, H))              # layer1 n-gate hidden bias
    who_b = jnp.broadcast_to(misc_ref[9:10, 0:H], (SEQ * B, H))       # output weight row
    bho = misc_ref[10:11, 0:1]                                        # (1, 1) output bias

    # Fused per-layer gate weights, each (H, 3H), column order [r|z|n].
    w0_h = wg_ref[0]      # layer 0 hidden weights
    w1_i = wg_ref[1]      # layer 1 input  weights
    w1_h = wg_ref[2]      # layer 1 hidden weights

    # latent_to_hidden
    z = z_ref[...]                                                    # (B, LAT)
    h_state = mm(z, wlh) + blh                                        # (B, H)

    # h_0 = stack([h_state] * depth): both GRU layers start from h_state; c_0 unused.
    h0 = h_state
    h1 = h_state

    h1_rows = []
    # SEQ is tiny and static -> unroll in Python (LLO-visible straight-line code).
    # TODO(synk): gridless kernel uses a single TensorCore; for large batches add a
    # parallel grid over B (dimension_semantics=("parallel",)) to use both v7x TCs.
    for _ in range(SEQ):
        # ---- GRU layer 0; decoder_inputs are all zeros so W_ih0 @ x == 0 ----
        g0 = mm(h0, w0_h) + b0_row                                    # (B, 3H)
        r0 = jax.nn.sigmoid(g0[:, 0:H])
        u0 = jax.nn.sigmoid(g0[:, H:2 * H])
        n0 = jnp.tanh(b0_in + r0 * g0[:, 2 * H:3 * H])
        h0 = (1.0 - u0) * n0 + u0 * h0

        # ---- GRU layer 1; input is layer-0 output ----
        gi1 = mm(h0, w1_i) + b1i_row                                  # (B, 3H)
        gh1 = mm(h1, w1_h)                                            # (B, 3H)
        r1 = jax.nn.sigmoid(gi1[:, 0:H] + gh1[:, 0:H])
        u1 = jax.nn.sigmoid(gi1[:, H:2 * H] + gh1[:, H:2 * H])
        n1 = jnp.tanh(gi1[:, 2 * H:3 * H] + r1 * (gh1[:, 2 * H:3 * H] + b1_hn))
        h1 = (1.0 - u1) * n1 + u1 * h1

        h1_rows.append(h1)

    # ---- hidden_to_output + Sigmoid: VPU multiply + XLU lane-reduce, one store ----
    h_all = jnp.concatenate(h1_rows, axis=0)                          # (SEQ*B, H)
    logits = jnp.sum(h_all * who_b, axis=-1, keepdims=True) + bho     # (SEQ*B, 1)
    out_ref[...] = jax.nn.sigmoid(logits)


def decoder_forward(z, packed):
    B = z.shape[0]
    vmem = pl.BlockSpec(memory_space=pltpu.MemorySpace.VMEM)
    out2d = pl.pallas_call(
        decoder_kernel,
        out_shape=jax.ShapeDtypeStruct((SEQ * B, 1), jnp.float32),
        in_specs=[vmem, vmem, vmem],
        out_specs=vmem,
    )(z, packed["w_gates"], packed["misc"])
    # Rows are already in (t, b) order -> free reshape to PyTorch
    # (sequence_length, batch, output_size).
    return out2d.reshape(SEQ, B, 1)


def init_params(key):
    """Raw (PyTorch-layout, pre-transposed) parameters."""
    H, L = HID, LAT
    ks = jax.random.split(key, 16)
    kgru = 1.0 / jnp.sqrt(jnp.float32(H))      # torch GRU default: U(-1/sqrt(H), 1/sqrt(H))

    def u(k, shape, lim):
        return jax.random.uniform(k, shape, jnp.float32, -lim, lim)

    params = {
        # latent_to_hidden: xavier_uniform weight, default-uniform bias. Stored (L, H).
        "wlh": u(ks[0], (L, H), jnp.sqrt(6.0 / (L + H))),
        "blh": u(ks[1], (1, H), 1.0 / jnp.sqrt(jnp.float32(L))),
        # GRU layer 0. W_ih0 (3H, 1) is never needed: decoder input is identically zero.
        # TODO(synk): W_ih_l0 omitted because it only multiplies an all-zeros input.
        "bih0": u(ks[2], (1, 3 * H), kgru),
        "whh0": u(ks[3], (H, 3 * H), kgru),
        "bhh0": u(ks[4], (1, 3 * H), kgru),
        # GRU layer 1 (input dim = H). Stored transposed as (H, 3H), gate order [r|z|n].
        "wih1": u(ks[5], (H, 3 * H), kgru),
        "bih1": u(ks[6], (1, 3 * H), kgru),
        "whh1": u(ks[7], (H, 3 * H), kgru),
        "bhh1": u(ks[8], (1, 3 * H), kgru),
        # hidden_to_output: xavier_uniform weight, default-uniform bias. Stored (H, 1).
        "who": u(ks[9], (H, 1), jnp.sqrt(6.0 / (H + 1))),
        "bho": u(ks[10], (1, 1), 1.0 / jnp.sqrt(jnp.float32(H))),
    }
    return params


def pack_params(p):
    """Pack raw params into the fused / lane-aligned operands the kernel expects."""
    H, G = HID, GATES

    def g(x, k):  # gate slice k (PyTorch order [r|z|n]) of a (in, 3H) / (1, 3H) array
        return x[..., k * H:(k + 1) * H]

    def pad_lanes(x):  # (rows, n) -> (rows, G), zero-padded on the lane axis
        return jnp.pad(x, ((0, 0), (0, G - x.shape[1])))

    # Fused per-layer gate weights: (3, H, 3H) = [W_hh_l0, W_ih_l1, W_hh_l1].
    w_gates = jnp.stack([p["whh0"], p["wih1"], p["whh1"]], axis=0)

    # Layer-0 fused bias row: r/z input+hidden biases folded, n-gate HIDDEN bias only
    # (its input bias must stay outside the r-gate multiply).
    b0_row = jnp.concatenate([
        g(p["bih0"], 0) + g(p["bhh0"], 0),
        g(p["bih0"], 1) + g(p["bhh0"], 1),
        g(p["bhh0"], 2),
    ], axis=1)                                                     # (1, 3H)

    # Layer-1 fused input-side bias row: r/z input+hidden biases folded, n-gate INPUT bias.
    b1i_row = jnp.concatenate([
        g(p["bih1"], 0) + g(p["bhh1"], 0),
        g(p["bih1"], 1) + g(p["bhh1"], 1),
        g(p["bih1"], 2),
    ], axis=1)                                                     # (1, 3H)

    misc = jnp.concatenate([
        pad_lanes(p["wlh"]),                    # rows 0-3 : latent_to_hidden weight
        pad_lanes(p["blh"]),                    # row  4   : latent_to_hidden bias
        b0_row,                                 # row  5   : layer0 fused bias [r|z|n_h]
        pad_lanes(g(p["bih0"], 2)),             # row  6   : layer0 n-gate input bias
        b1i_row,                                # row  7   : layer1 fused bias [r|z|n_i]
        pad_lanes(g(p["bhh1"], 2)),             # row  8   : layer1 n-gate hidden bias
        pad_lanes(p["who"].T),                  # row  9   : hidden_to_output weight row
        pad_lanes(p["bho"]),                    # row 10   : hidden_to_output bias (lane 0)
    ], axis=0)                                                     # (11, 3H)

    return {"w_gates": w_gates, "misc": misc}


def decoder_reference(z, p):
    """Pure-JAX reference of the same forward pass (raw params, for correctness)."""
    H = HID

    def dot(a, b):
        return jnp.dot(a, b, precision=_HIGHEST)

    h_state = dot(z, p["wlh"]) + p["blh"]
    h0, h1 = h_state, h_state
    outs = []
    for _ in range(SEQ):
        gi = p["bih0"]
        gh = dot(h0, p["whh0"]) + p["bhh0"]
        r = jax.nn.sigmoid(gi[:, :H] + gh[:, :H])
        u_ = jax.nn.sigmoid(gi[:, H:2 * H] + gh[:, H:2 * H])
        n = jnp.tanh(gi[:, 2 * H:] + r * gh[:, 2 * H:])
        h0 = (1 - u_) * n + u_ * h0
        gi1 = dot(h0, p["wih1"]) + p["bih1"]
        gh1 = dot(h1, p["whh1"]) + p["bhh1"]
        r1 = jax.nn.sigmoid(gi1[:, :H] + gh1[:, :H])
        u1 = jax.nn.sigmoid(gi1[:, H:2 * H] + gh1[:, H:2 * H])
        n1 = jnp.tanh(gi1[:, 2 * H:] + r1 * gh1[:, 2 * H:])
        h1 = (1 - u1) * n1 + u1 * h1
        outs.append(jax.nn.sigmoid(dot(h1, p["who"]) + p["bho"]))
    return jnp.stack(outs, axis=0)  # (SEQ, B, 1)


if __name__ == "__main__":
    key = jax.random.PRNGKey(0)
    kz, kp = jax.random.split(key)
    B = 2
    z = jax.random.normal(kz, (B, LAT), dtype=jnp.float32)   # latent vectors
    raw_params = init_params(kp)
    packed = pack_params(raw_params)

    out = decoder_forward(z, packed)
    out = jax.block_until_ready(out)
    assert out.shape == (SEQ, B, 1)

    ref = decoder_reference(z, raw_params)
    assert jnp.allclose(out, ref, atol=1e-5, rtol=1e-5)

    print("KERNEL_OK")
</pallas_src>

<mosaic_0001>
module attributes {stable_mosaic.version = 11 : i64} {
  func.func @decoder_kernel(%arg0: memref<2x4xf32, #tpu.memory_space<vmem>>, %arg1: memref<3x64x192xf32, #tpu.memory_space<vmem>>, %arg2: memref<11x192xf32, #tpu.memory_space<vmem>>, %arg3: memref<10x1xf32, #tpu.memory_space<vmem>>) attributes {dimension_semantics = [], scalar_prefetch = 0 : i64, scratch_operands = 0 : i64, tpu.core_type = #tpu.core_type<tc>} {
    %c0 = arith.constant 0 : index
    %c0_0 = arith.constant 0 : index
    %0 = vector.load %arg2[%c0, %c0_0] : memref<11x192xf32, #tpu.memory_space<vmem>>, vector<4x64xf32>
    %c4 = arith.constant 4 : index
    %c0_1 = arith.constant 0 : index
    %1 = vector.load %arg2[%c4, %c0_1] : memref<11x192xf32, #tpu.memory_space<vmem>>, vector<1x64xf32>
    %2 = vector.shape_cast %1 : vector<1x64xf32> to vector<1x64xf32>
    %3 = vector.broadcast %2 : vector<1x64xf32> to vector<2x64xf32>
    %c5 = arith.constant 5 : index
    %c0_2 = arith.constant 0 : index
    %4 = vector.load %arg2[%c5, %c0_2] : memref<11x192xf32, #tpu.memory_space<vmem>>, vector<1x192xf32>
    %5 = vector.shape_cast %4 : vector<1x192xf32> to vector<1x192xf32>
    %6 = vector.broadcast %5 : vector<1x192xf32> to vector<2x192xf32>
    %c6 = arith.constant 6 : index
    %c0_3 = arith.constant 0 : index
    %7 = vector.load %arg2[%c6, %c0_3] : memref<11x192xf32, #tpu.memory_space<vmem>>, vector<1x64xf32>
    %8 = vector.shape_cast %7 : vector<1x64xf32> to vector<1x64xf32>
    %9 = vector.broadcast %8 : vector<1x64xf32> to vector<2x64xf32>
    %c7 = arith.constant 7 : index
    %c0_4 = arith.constant 0 : index
    %10 = vector.load %arg2[%c7, %c0_4] : memref<11x192xf32, #tpu.memory_space<vmem>>, vector<1x192xf32>
    %11 = vector.shape_cast %10 : vector<1x192xf32> to vector<1x192xf32>
    %12 = vector.broadcast %11 : vector<1x192xf32> to vector<2x192xf32>
    %c8 = arith.constant 8 : index
    %c0_5 = arith.constant 0 : index
    %13 = vector.load %arg2[%c8, %c0_5] : memref<11x192xf32, #tpu.memory_space<vmem>>, vector<1x64xf32>
    %14 = vector.shape_cast %13 : vector<1x64xf32> to vector<1x64xf32>
    %15 = vector.broadcast %14 : vector<1x64xf32> to vector<2x64xf32>
    %c9 = arith.constant 9 : index
    %c0_6 = arith.constant 0 : index
    %16 = vector.load %arg2[%c9, %c0_6] : memref<11x192xf32, #tpu.memory_space<vmem>>, vector<1x64xf32>
    %17 = vector.shape_cast %16 : vector<1x64xf32> to vector<1x64xf32>
    %18 = vector.broadcast %17 : vector<1x64xf32> to vector<10x64xf32>
    %c10 = arith.constant 10 : index
    %c0_7 = arith.constant 0 : index
    %19 = vector.load %arg2[%c10, %c0_7] : memref<11x192xf32, #tpu.memory_space<vmem>>, vector<1x1xf32>
    %c0_8 = arith.constant 0 : index
    %c0_9 = arith.constant 0 : index
    %c0_10 = arith.constant 0 : index
    %20 = vector.load %arg1[%c0_8, %c0_9, %c0_10] : memref<3x64x192xf32, #tpu.memory_space<vmem>>, vector<1x64x192xf32>
    %21 = vector.shape_cast %20 : vector<1x64x192xf32> to vector<64x192xf32>
    %c1 = arith.constant 1 : index
    %c0_11 = arith.constant 0 : index
    %c0_12 = arith.constant 0 : index
    %22 = vector.load %arg1[%c1, %c0_11, %c0_12] : memref<3x64x192xf32, #tpu.memory_space<vmem>>, vector<1x64x192xf32>
    %23 = vector.shape_cast %22 : vector<1x64x192xf32> to vector<64x192xf32>
    %c2 = arith.constant 2 : index
    %c0_13 = arith.constant 0 : index
    %c0_14 = arith.constant 0 : index
    %24 = vector.load %arg1[%c2, %c0_13, %c0_14] : memref<3x64x192xf32, #tpu.memory_space<vmem>>, vector<1x64x192xf32>
    %25 = vector.shape_cast %24 : vector<1x64x192xf32> to vector<64x192xf32>
    %c0_15 = arith.constant 0 : index
    %c0_16 = arith.constant 0 : index
    %26 = vector.load %arg0[%c0_15, %c0_16] : memref<2x4xf32, #tpu.memory_space<vmem>>, vector<2x4xf32>
    %cst = arith.constant dense<0.000000e+00> : vector<2x64xf32>
    %27 = tpu.matmul %26, %0, %cst {dimension_numbers = #tpu.dot_dimension_numbers<[1], [0], [0], [1], [0, 0, 1, 1], [], []>, precision = #tpu.contract_precision<fp32>} : vector<2x4xf32>, vector<4x64xf32>, vector<2x64xf32> -> vector<2x64xf32>
    %28 = arith.addf %27, %3 : vector<2x64xf32>
    %cst_17 = arith.constant dense<0.000000e+00> : vector<2x192xf32>
    %29 = tpu.matmul %28, %21, %cst_17 {dimension_numbers = #tpu.dot_dimension_numbers<[1], [0], [0], [1], [0, 0, 1, 1], [], []>, precision = #tpu.contract_precision<fp32>} : vector<2x64xf32>, vector<64x192xf32>, vector<2x192xf32> -> vector<2x192xf32>
    %30 = arith.addf %29, %6 : vector<2x192xf32>
    %31 = vector.extract_strided_slice %30 {offsets = [0, 0], sizes = [2, 64], strides = [1, 1]} : vector<2x192xf32> to vector<2x64xf32>
    %32 = arith.negf %31 : vector<2x64xf32>
    %33 = math.exp %32 : vector<2x64xf32>
    %cst_18 = arith.constant 1.000000e+00 : f32
    %34 = vector.broadcast %cst_18 : f32 to vector<2x64xf32>
    %35 = arith.addf %34, %33 : vector<2x64xf32>
    %36 = arith.divf %34, %35 : vector<2x64xf32>
    %37 = vector.extract_strided_slice %30 {offsets = [0, 64], sizes = [2, 64], strides = [1, 1]} : vector<2x192xf32> to vector<2x64xf32>
    %38 = arith.negf %37 : vector<2x64xf32>
    %39 = math.exp %38 : vector<2x64xf32>
    %cst_19 = arith.constant 1.000000e+00 : f32
    %40 = vector.broadcast %cst_19 : f32 to vector<2x64xf32>
    %41 = arith.addf %40, %39 : vector<2x64xf32>
    %42 = arith.divf %40, %41 : vector<2x64xf32>
    %43 = vector.extract_strided_slice %30 {offsets = [0, 128], sizes = [2, 64], strides = [1, 1]} : vector<2x192xf32> to vector<2x64xf32>
    %44 = arith.mulf %36, %43 : vector<2x64xf32>
    %45 = arith.addf %9, %44 : vector<2x64xf32>
    %46 = math.tanh %45 : vector<2x64xf32>
    %cst_20 = arith.constant 1.000000e+00 : f32
    %47 = vector.broadcast %cst_20 : f32 to vector<2x64xf32>
    %48 = arith.subf %47, %42 : vector<2x64xf32>
    %49 = arith.mulf %48, %46 : vector<2x64xf32>
    %50 = arith.mulf %42, %28 : vector<2x64xf32>
    %51 = arith.addf %49, %50 : vector<2x64xf32>
    %cst_21 = arith.constant dense<0.000000e+00> : vector<2x192xf32>
    %52 = tpu.matmul %51, %23, %cst_21 {dimension_numbers = #tpu.dot_dimension_numbers<[1], [0], [0], [1], [0, 0, 1, 1], [], []>, precision = #tpu.contract_precision<fp32>} : vector<2x64xf32>, vector<64x192xf32>, vector<2x192xf32> -> vector<2x192xf32>
    %53 = arith.addf %52, %12 : vector<2x192xf32>
    %cst_22 = arith.constant dense<0.000000e+00> : vector<2x192xf32>
    %54 = tpu.matmul %28, %25, %cst_22 {dimension_numbers = #tpu.dot_dimension_numbers<[1], [0], [0], [1], [0, 0, 1, 1], [], []>, precision = #tpu.contract_precision<fp32>} : vector<2x64xf32>, vector<64x192xf32>, vector<2x192xf32> -> vector<2x192xf32>
    %55 = vector.extract_strided_slice %53 {offsets = [0, 0], sizes = [2, 64], strides = [1, 1]} : vector<2x192xf32> to vector<2x64xf32>
    %56 = vector.extract_strided_slice %54 {offsets = [0, 0], sizes = [2, 64], strides = [1, 1]} : vector<2x192xf32> to vector<2x64xf32>
    %57 = arith.addf %55, %56 : vector<2x64xf32>
    %58 = arith.negf %57 : vector<2x64xf32>
    %59 = math.exp %58 : vector<2x64xf32>
    %cst_23 = arith.constant 1.000000e+00 : f32
    %60 = vector.broadcast %cst_23 : f32 to vector<2x64xf32>
    %61 = arith.addf %60, %59 : vector<2x64xf32>
    %62 = arith.divf %60, %61 : vector<2x64xf32>
    %63 = vector.extract_strided_slice %53 {offsets = [0, 64], sizes = [2, 64], strides = [1, 1]} : vector<2x192xf32> to vector<2x64xf32>
    %64 = vector.extract_strided_slice %54 {offsets = [0, 64], sizes = [2, 64], strides = [1, 1]} : vector<2x192xf32> to vector<2x64xf32>
    %65 = arith.addf %63, %64 : vector<2x64xf32>
    %66 = arith.negf %65 : vector<2x64xf32>
    %67 = math.exp %66 : vector<2x64xf32>
    %cst_24 = arith.constant 1.000000e+00 : f32
    %68 = vector.broadcast %cst_24 : f32 to vector<2x64xf32>
    %69 = arith.addf %68, %67 : vector<2x64xf32>
    %70 = arith.divf %68, %69 : vector<2x64xf32>
    %71 = vector.extract_strided_slice %53 {offsets = [0, 128], sizes = [2, 64], strides = [1, 1]} : vector<2x192xf32> to vector<2x64xf32>
    %72 = vector.extract_strided_slice %54 {offsets = [0, 128], sizes = [2, 64], strides = [1, 1]} : vector<2x192xf32> to vector<2x64xf32>
    %73 = arith.addf %72, %15 : vector<2x64xf32>
    %74 = arith.mulf %62, %73 : vector<2x64xf32>
    %75 = arith.addf %71, %74 : vector<2x64xf32>
    %76 = math.tanh %75 : vector<2x64xf32>
    %cst_25 = arith.constant 1.000000e+00 : f32
    %77 = vector.broadcast %cst_25 : f32 to vector<2x64xf32>
    %78 = arith.subf %77, %70 : vector<2x64xf32>
    %79 = arith.mulf %78, %76 : vector<2x64xf32>
    %80 = arith.mulf %70, %28 : vector<2x64xf32>
    %81 = arith.addf %79, %80 : vector<2x64xf32>
    %cst_26 = arith.constant dense<0.000000e+00> : vector<2x192xf32>
    %82 = tpu.matmul %51, %21, %cst_26 {dimension_numbers = #tpu.dot_dimension_numbers<[1], [0], [0], [1], [0, 0, 1, 1], [], []>, precision = #tpu.contract_precision<fp32>} : vector<2x64xf32>, vector<64x192xf32>, vector<2x192xf32> -> vector<2x192xf32>
    %83 = arith.addf %82, %6 : vector<2x192xf32>
    %84 = vector.extract_strided_slice %83 {offsets = [0, 0], sizes = [2, 64], strides = [1, 1]} : vector<2x192xf32> to vector<2x64xf32>
    %85 = arith.negf %84 : vector<2x64xf32>
    %86 = math.exp %85 : vector<2x64xf32>
    %cst_27 = arith.constant 1.000000e+00 : f32
    %87 = vector.broadcast %cst_27 : f32 to vector<2x64xf32>
    %88 = arith.addf %87, %86 : vector<2x64xf32>
    %89 = arith.divf %87, %88 : vector<2x64xf32>
    %90 = vector.extract_strided_slice %83 {offsets = [0, 64], sizes = [2, 64], strides = [1, 1]} : vector<2x192xf32> to vector<2x64xf32>
    %91 = arith.negf %90 : vector<2x64xf32>
    %92 = math.exp %91 : vector<2x64xf32>
    %cst_28 = arith.constant 1.000000e+00 : f32
    %93 = vector.broadcast %cst_28 : f32 to vector<2x64xf32>
    %94 = arith.addf %93, %92 : vector<2x64xf32>
    %95 = arith.divf %93, %94 : vector<2x64xf32>
    %96 = vector.extract_strided_slice %83 {offsets = [0, 128], sizes = [2, 64], strides = [1, 1]} : vector<2x192xf32> to vector<2x64xf32>
    %97 = arith.mulf %89, %96 : vector<2x64xf32>
    %98 = arith.addf %9, %97 : vector<2x64xf32>
    %99 = math.tanh %98 : vector<2x64xf32>
    %cst_29 = arith.constant 1.000000e+00 : f32
    %100 = vector.broadcast %cst_29 : f32 to vector<2x64xf32>
    %101 = arith.subf %100, %95 : vector<2x64xf32>
    %102 = arith.mulf %101, %99 : vector<2x64xf32>
    %103 = arith.mulf %95, %51 : vector<2x64xf32>
    %104 = arith.addf %102, %103 : vector<2x64xf32>
    %cst_30 = arith.constant dense<0.000000e+00> : vector<2x192xf32>
    %105 = tpu.matmul %104, %23, %cst_30 {dimension_numbers = #tpu.dot_dimension_numbers<[1], [0], [0], [1], [0, 0, 1, 1], [], []>, precision = #tpu.contract_precision<fp32>} : vector<2x64xf32>, vector<64x192xf32>, vector<2x192xf32> -> vector<2x192xf32>
    %106 = arith.addf %105, %12 : vector<2x192xf32>
    %cst_31 = arith.constant dense<0.000000e+00> : vector<2x192xf32>
    %107 = tpu.matmul %81, %25, %cst_31 {dimension_numbers = #tpu.dot_dimension_numbers<[1], [0], [0], [1], [0, 0, 1, 1], [], []>, precision = #tpu.contract_precision<fp32>} : vector<2x64xf32>, vector<64x192xf32>, vector<2x192xf32> -> vector<2x192xf32>
    %108 = vector.extract_strided_slice %106 {offsets = [0, 0], sizes = [2, 64], strides = [1, 1]} : vector<2x192xf32> to vector<2x64xf32>
    %109 = vector.extract_strided_slice %107 {offsets = [0, 0], sizes = [2, 64], strides = [1, 1]} : vector<2x192xf32> to vector<2x64xf32>
    %110 = arith.addf %108, %109 : vector<2x64xf32>
    %111 = arith.negf %110 : vector<2x64xf32>
    %112 = math.exp %111 : vector<2x64xf32>
    %cst_32 = arith.constant 1.000000e+00 : f32
    %113 = vector.broadcast %cst_32 : f32 to vector<2x64xf32>
    %114 = arith.addf %113, %112 : vector<2x64xf32>
    %115 = arith.divf %113, %114 : vector<2x64xf32>
    %116 = vector.extract_strided_slice %106 {offsets = [0, 64], sizes = [2, 64], strides = [1, 1]} : vector<2x192xf32> to vector<2x64xf32>
    %117 = vector.extract_strided_slice %107 {offsets = [0, 64], sizes = [2, 64], strides = [1, 1]} : vector<2x192xf32> to vector<2x64xf32>
    %118 = arith.addf %116, %117 : vector<2x64xf32>
    %119 = arith.negf %118 : vector<2x64xf32>
    %120 = math.exp %119 : vector<2x64xf32>
    %cst_33 = arith.constant 1.000000e+00 : f32
    %121 = vector.broadcast %cst_33 : f32 to vector<2x64xf32>
    %122 = arith.addf %121, %120 : vector<2x64xf32>
    %123 = arith.divf %121, %122 : vector<2x64xf32>
    %124 = vector.extract_strided_slice %106 {offsets = [0, 128], sizes = [2, 64], strides = [1, 1]} : vector<2x192xf32> to vector<2x64xf32>
    %125 = vector.extract_strided_slice %107 {offsets = [0, 128], sizes = [2, 64], strides = [1, 1]} : vector<2x192xf32> to vector<2x64xf32>
    %126 = arith.addf %125, %15 : vector<2x64xf32>
    %127 = arith.mulf %115, %126 : vector<2x64xf32>
    %128 = arith.addf %124, %127 : vector<2x64xf32>
    %129 = math.tanh %128 : vector<2x64xf32>
    %cst_34 = arith.constant 1.000000e+00 : f32
    %130 = vector.broadcast %cst_34 : f32 to vector<2x64xf32>
    %131 = arith.subf %130, %123 : vector<2x64xf32>
    %132 = arith.mulf %131, %129 : vector<2x64xf32>
    %133 = arith.mulf %123, %81 : vector<2x64xf32>
    %134 = arith.addf %132, %133 : vector<2x64xf32>
    %cst_35 = arith.constant dense<0.000000e+00> : vector<2x192xf32>
    %135 = tpu.matmul %104, %21, %cst_35 {dimension_numbers = #tpu.dot_dimension_numbers<[1], [0], [0], [1], [0, 0, 1, 1], [], []>, precision = #tpu.contract_precision<fp32>} : vector<2x64xf32>, vector<64x192xf32>, vector<2x192xf32> -> vector<2x192xf32>
    %136 = arith.addf %135, %6 : vector<2x192xf32>
    %137 = vector.extract_strided_slice %136 {offsets = [0, 0], sizes = [2, 64], strides = [1, 1]} : vector<2x192xf32> to vector<2x64xf32>
    %138 = arith.negf %137 : vector<2x64xf32>
    %139 = math.exp %138 : vector<2x64xf32>
    %cst_36 = arith.constant 1.000000e+00 : f32
    %140 = vector.broadcast %cst_36 : f32 to vector<2x64xf32>
    %141 = arith.addf %140, %139 : vector<2x64xf32>
    %142 = arith.divf %140, %141 : vector<2x64xf32>
    %143 = vector.extract_strided_slice %136 {offsets = [0, 64], sizes = [2, 64], strides = [1, 1]} : vector<2x192xf32> to vector<2x64xf32>
    %144 = arith.negf %143 : vector<2x64xf32>
    %145 = math.exp %144 : vector<2x64xf32>
    %cst_37 = arith.constant 1.000000e+00 : f32
    %146 = vector.broadcast %cst_37 : f32 to vector<2x64xf32>
    %147 = arith.addf %146, %145 : vector<2x64xf32>
    %148 = arith.divf %146, %147 : vector<2x64xf32>
    %149 = vector.extract_strided_slice %136 {offsets = [0, 128], sizes = [2, 64], strides = [1, 1]} : vector<2x192xf32> to vector<2x64xf32>
    %150 = arith.mulf %142, %149 : vector<2x64xf32>
    %151 = arith.addf %9, %150 : vector<2x64xf32>
    %152 = math.tanh %151 : vector<2x64xf32>
    %cst_38 = arith.constant 1.000000e+00 : f32
    %153 = vector.broadcast %cst_38 : f32 to vector<2x64xf32>
    %154 = arith.subf %153, %148 : vector<2x64xf32>
    %155 = arith.mulf %154, %152 : vector<2x64xf32>
    %156 = arith.mulf %148, %104 : vector<2x64xf32>
    %157 = arith.addf %155, %156 : vector<2x64xf32>
    %cst_39 = arith.constant dense<0.000000e+00> : vector<2x192xf32>
    %158 = tpu.matmul %157, %23, %cst_39 {dimension_numbers = #tpu.dot_dimension_numbers<[1], [0], [0], [1], [0, 0, 1, 1], [], []>, precision = #tpu.contract_precision<fp32>} : vector<2x64xf32>, vector<64x192xf32>, vector<2x192xf32> -> vector<2x192xf32>
    %159 = arith.addf %158, %12 : vector<2x192xf32>
    %cst_40 = arith.constant dense<0.000000e+00> : vector<2x192xf32>
    %160 = tpu.matmul %134, %25, %cst_40 {dimension_numbers = #tpu.dot_dimension_numbers<[1], [0], [0], [1], [0, 0, 1, 1], [], []>, precision = #tpu.contract_precision<fp32>} : vector<2x64xf32>, vector<64x192xf32>, vector<2x192xf32> -> vector<2x192xf32>
    %161 = vector.extract_strided_slice %159 {offsets = [0, 0], sizes = [2, 64], strides = [1, 1]} : vector<2x192xf32> to vector<2x64xf32>
    %162 = vector.extract_strided_slice %160 {offsets = [0, 0], sizes = [2, 64], strides = [1, 1]} : vector<2x192xf32> to vector<2x64xf32>
    %163 = arith.addf %161, %162 : vector<2x64xf32>
    %164 = arith.negf %163 : vector<2x64xf32>
    %165 = math.exp %164 : vector<2x64xf32>
    %cst_41 = arith.constant 1.000000e+00 : f32
    %166 = vector.broadcast %cst_41 : f32 to vector<2x64xf32>
    %167 = arith.addf %166, %165 : vector<2x64xf32>
    %168 = arith.divf %166, %167 : vector<2x64xf32>
    %169 = vector.extract_strided_slice %159 {offsets = [0, 64], sizes = [2, 64], strides = [1, 1]} : vector<2x192xf32> to vector<2x64xf32>
    %170 = vector.extract_strided_slice %160 {offsets = [0, 64], sizes = [2, 64], strides = [1, 1]} : vector<2x192xf32> to vector<2x64xf32>
    %171 = arith.addf %169, %170 : vector<2x64xf32>
    %172 = arith.negf %171 : vector<2x64xf32>
    %173 = math.exp %172 : vector<2x64xf32>
    %cst_42 = arith.constant 1.000000e+00 : f32
    %174 = vector.broadcast %cst_42 : f32 to vector<2x64xf32>
    %175 = arith.addf %174, %173 : vector<2x64xf32>
    %176 = arith.divf %174, %175 : vector<2x64xf32>
    %177 = vector.extract_strided_slice %159 {offsets = [0, 128], sizes = [2, 64], strides = [1, 1]} : vector<2x192xf32> to vector<2x64xf32>
    %178 = vector.extract_strided_slice %160 {offsets = [0, 128], sizes = [2, 64], strides = [1, 1]} : vector<2x192xf32> to vector<2x64xf32>
    %179 = arith.addf %178, %15 : vector<2x64xf32>
    %180 = arith.mulf %168, %179 : vector<2x64xf32>
    %181 = arith.addf %177, %180 : vector<2x64xf32>
    %182 = math.tanh %181 : vector<2x64xf32>
    %cst_43 = arith.constant 1.000000e+00 : f32
    %183 = vector.broadcast %cst_43 : f32 to vector<2x64xf32>
    %184 = arith.subf %183, %176 : vector<2x64xf32>
    %185 = arith.mulf %184, %182 : vector<2x64xf32>
    %186 = arith.mulf %176, %134 : vector<2x64xf32>
    %187 = arith.addf %185, %186 : vector<2x64xf32>
    %cst_44 = arith.constant dense<0.000000e+00> : vector<2x192xf32>
    %188 = tpu.matmul %157, %21, %cst_44 {dimension_numbers = #tpu.dot_dimension_numbers<[1], [0], [0], [1], [0, 0, 1, 1], [], []>, precision = #tpu.contract_precision<fp32>} : vector<2x64xf32>, vector<64x192xf32>, vector<2x192xf32> -> vector<2x192xf32>
    %189 = arith.addf %188, %6 : vector<2x192xf32>
    %190 = vector.extract_strided_slice %189 {offsets = [0, 0], sizes = [2, 64], strides = [1, 1]} : vector<2x192xf32> to vector<2x64xf32>
    %191 = arith.negf %190 : vector<2x64xf32>
    %192 = math.exp %191 : vector<2x64xf32>
    %cst_45 = arith.constant 1.000000e+00 : f32
    %193 = vector.broadcast %cst_45 : f32 to vector<2x64xf32>
    %194 = arith.addf %193, %192 : vector<2x64xf32>
    %195 = arith.divf %193, %194 : vector<2x64xf32>
    %196 = vector.extract_strided_slice %189 {offsets = [0, 64], sizes = [2, 64], strides = [1, 1]} : vector<2x192xf32> to vector<2x64xf32>
    %197 = arith.negf %196 : vector<2x64xf32>
    %198 = math.exp %197 : vector<2x64xf32>
    %cst_46 = arith.constant 1.000000e+00 : f32
    %199 = vector.broadcast %cst_46 : f32 to vector<2x64xf32>
    %200 = arith.addf %199, %198 : vector<2x64xf32>
    %201 = arith.divf %199, %200 : vector<2x64xf32>
    %202 = vector.extract_strided_slice %189 {offsets = [0, 128], sizes = [2, 64], strides = [1, 1]} : vector<2x192xf32> to vector<2x64xf32>
    %203 = arith.mulf %195, %202 : vector<2x64xf32>
    %204 = arith.addf %9, %203 : vector<2x64xf32>
    %205 = math.tanh %204 : vector<2x64xf32>
    %cst_47 = arith.constant 1.000000e+00 : f32
    %206 = vector.broadcast %cst_47 : f32 to vector<2x64xf32>
    %207 = arith.subf %206, %201 : vector<2x64xf32>
    %208 = arith.mulf %207, %205 : vector<2x64xf32>
    %209 = arith.mulf %201, %157 : vector<2x64xf32>
    %210 = arith.addf %208, %209 : vector<2x64xf32>
    %cst_48 = arith.constant dense<0.000000e+00> : vector<2x192xf32>
    %211 = tpu.matmul %210, %23, %cst_48 {dimension_numbers = #tpu.dot_dimension_numbers<[1], [0], [0], [1], [0, 0, 1, 1], [], []>, precision = #tpu.contract_precision<fp32>} : vector<2x64xf32>, vector<64x192xf32>, vector<2x192xf32> -> vector<2x192xf32>
    %212 = arith.addf %211, %12 : vector<2x192xf32>
    %cst_49 = arith.constant dense<0.000000e+00> : vector<2x192xf32>
    %213 = tpu.matmul %187, %25, %cst_49 {dimension_numbers = #tpu.dot_dimension_numbers<[1], [0], [0], [1], [0, 0, 1, 1], [], []>, precision = #tpu.contract_precision<fp32>} : vector<2x64xf32>, vector<64x192xf32>, vector<2x192xf32> -> vector<2x192xf32>
    %214 = vector.extract_strided_slice %212 {offsets = [0, 0], sizes = [2, 64], strides = [1, 1]} : vector<2x192xf32> to vector<2x64xf32>
    %215 = vector.extract_strided_slice %213 {offsets = [0, 0], sizes = [2, 64], strides = [1, 1]} : vector<2x192xf32> to vector<2x64xf32>
    %216 = arith.addf %214, %215 : vector<2x64xf32>
    %217 = arith.negf %216 : vector<2x64xf32>
    %218 = math.exp %217 : vector<2x64xf32>
    %cst_50 = arith.constant 1.000000e+00 : f32
    %219 = vector.broadcast %cst_50 : f32 to vector<2x64xf32>
    %220 = arith.addf %219, %218 : vector<2x64xf32>
    %221 = arith.divf %219, %220 : vector<2x64xf32>
    %222 = vector.extract_strided_slice %212 {offsets = [0, 64], sizes = [2, 64], strides = [1, 1]} : vector<2x192xf32> to vector<2x64xf32>
    %223 = vector.extract_strided_slice %213 {offsets = [0, 64], sizes = [2, 64], strides = [1, 1]} : vector<2x192xf32> to vector<2x64xf32>
    %224 = arith.addf %222, %223 : vector<2x64xf32>
    %225 = arith.negf %224 : vector<2x64xf32>
    %226 = math.exp %225 : vector<2x64xf32>
    %cst_51 = arith.constant 1.000000e+00 : f32
    %227 = vector.broadcast %cst_51 : f32 to vector<2x64xf32>
    %228 = arith.addf %227, %226 : vector<2x64xf32>
    %229 = arith.divf %227, %228 : vector<2x64xf32>
    %230 = vector.extract_strided_slice %212 {offsets = [0, 128], sizes = [2, 64], strides = [1, 1]} : vector<2x192xf32> to vector<2x64xf32>
    %231 = vector.extract_strided_slice %213 {offsets = [0, 128], sizes = [2, 64], strides = [1, 1]} : vector<2x192xf32> to vector<2x64xf32>
    %232 = arith.addf %231, %15 : vector<2x64xf32>
    %233 = arith.mulf %221, %232 : vector<2x64xf32>
    %234 = arith.addf %230, %233 : vector<2x64xf32>
    %235 = math.tanh %234 : vector<2x64xf32>
    %cst_52 = arith.constant 1.000000e+00 : f32
    %236 = vector.broadcast %cst_52 : f32 to vector<2x64xf32>
    %237 = arith.subf %236, %229 : vector<2x64xf32>
    %238 = arith.mulf %237, %235 : vector<2x64xf32>
    %239 = arith.mulf %229, %187 : vector<2x64xf32>
    %240 = arith.addf %238, %239 : vector<2x64xf32>
    %cst_53 = arith.constant dense<0.000000e+00> : vector<2x192xf32>
    %241 = tpu.matmul %210, %21, %cst_53 {dimension_numbers = #tpu.dot_dimension_numbers<[1], [0], [0], [1], [0, 0, 1, 1], [], []>, precision = #tpu.contract_precision<fp32>} : vector<2x64xf32>, vector<64x192xf32>, vector<2x192xf32> -> vector<2x192xf32>
    %242 = arith.addf %241, %6 : vector<2x192xf32>
    %243 = vector.extract_strided_slice %242 {offsets = [0, 0], sizes = [2, 64], strides = [1, 1]} : vector<2x192xf32> to vector<2x64xf32>
    %244 = arith.negf %243 : vector<2x64xf32>
    %245 = math.exp %244 : vector<2x64xf32>
    %cst_54 = arith.constant 1.000000e+00 : f32
    %246 = vector.broadcast %cst_54 : f32 to vector<2x64xf32>
    %247 = arith.addf %246, %245 : vector<2x64xf32>
    %248 = arith.divf %246, %247 : vector<2x64xf32>
    %249 = vector.extract_strided_slice %242 {offsets = [0, 64], sizes = [2, 64], strides = [1, 1]} : vector<2x192xf32> to vector<2x64xf32>
    %250 = arith.negf %249 : vector<2x64xf32>
    %251 = math.exp %250 : vector<2x64xf32>
    %cst_55 = arith.constant 1.000000e+00 : f32
    %252 = vector.broadcast %cst_55 : f32 to vector<2x64xf32>
    %253 = arith.addf %252, %251 : vector<2x64xf32>
    %254 = arith.divf %252, %253 : vector<2x64xf32>
    %255 = vector.extract_strided_slice %242 {offsets = [0, 128], sizes = [2, 64], strides = [1, 1]} : vector<2x192xf32> to vector<2x64xf32>
    %256 = arith.mulf %248, %255 : vector<2x64xf32>
    %257 = arith.addf %9, %256 : vector<2x64xf32>
    %258 = math.tanh %257 : vector<2x64xf32>
    %cst_56 = arith.constant 1.000000e+00 : f32
    %259 = vector.broadcast %cst_56 : f32 to vector<2x64xf32>
    %260 = arith.subf %259, %254 : vector<2x64xf32>
    %261 = arith.mulf %260, %258 : vector<2x64xf32>
    %262 = arith.mulf %254, %210 : vector<2x64xf32>
    %263 = arith.addf %261, %262 : vector<2x64xf32>
    %cst_57 = arith.constant dense<0.000000e+00> : vector<2x192xf32>
    %264 = tpu.matmul %263, %23, %cst_57 {dimension_numbers = #tpu.dot_dimension_numbers<[1], [0], [0], [1], [0, 0, 1, 1], [], []>, precision = #tpu.contract_precision<fp32>} : vector<2x64xf32>, vector<64x192xf32>, vector<2x192xf32> -> vector<2x192xf32>
    %265 = arith.addf %264, %12 : vector<2x192xf32>
    %cst_58 = arith.constant dense<0.000000e+00> : vector<2x192xf32>
    %266 = tpu.matmul %240, %25, %cst_58 {dimension_numbers = #tpu.dot_dimension_numbers<[1], [0], [0], [1], [0, 0, 1, 1], [], []>, precision = #tpu.contract_precision<fp32>} : vector<2x64xf32>, vector<64x192xf32>, vector<2x192xf32> -> vector<2x192xf32>
    %267 = vector.extract_strided_slice %265 {offsets = [0, 0], sizes = [2, 64], strides = [1, 1]} : vector<2x192xf32> to vector<2x64xf32>
    %268 = vector.extract_strided_slice %266 {offsets = [0, 0], sizes = [2, 64], strides = [1, 1]} : vector<2x192xf32> to vector<2x64xf32>
    %269 = arith.addf %267, %268 : vector<2x64xf32>
    %270 = arith.negf %269 : vector<2x64xf32>
    %271 = math.exp %270 : vector<2x64xf32>
    %cst_59 = arith.constant 1.000000e+00 : f32
    %272 = vector.broadcast %cst_59 : f32 to vector<2x64xf32>
    %273 = arith.addf %272, %271 : vector<2x64xf32>
    %274 = arith.divf %272, %273 : vector<2x64xf32>
    %275 = vector.extract_strided_slice %265 {offsets = [0, 64], sizes = [2, 64], strides = [1, 1]} : vector<2x192xf32> to vector<2x64xf32>
    %276 = vector.extract_strided_slice %266 {offsets = [0, 64], sizes = [2, 64], strides = [1, 1]} : vector<2x192xf32> to vector<2x64xf32>
    %277 = arith.addf %275, %276 : vector<2x64xf32>
    %278 = arith.negf %277 : vector<2x64xf32>
    %279 = math.exp %278 : vector<2x64xf32>
    %cst_60 = arith.constant 1.000000e+00 : f32
    %280 = vector.broadcast %cst_60 : f32 to vector<2x64xf32>
    %281 = arith.addf %280, %279 : vector<2x64xf32>
    %282 = arith.divf %280, %281 : vector<2x64xf32>
    %283 = vector.extract_strided_slice %265 {offsets = [0, 128], sizes = [2, 64], strides = [1, 1]} : vector<2x192xf32> to vector<2x64xf32>
    %284 = vector.extract_strided_slice %266 {offsets = [0, 128], sizes = [2, 64], strides = [1, 1]} : vector<2x192xf32> to vector<2x64xf32>
    %285 = arith.addf %284, %15 : vector<2x64xf32>
    %286 = arith.mulf %274, %285 : vector<2x64xf32>
    %287 = arith.addf %283, %286 : vector<2x64xf32>
    %288 = math.tanh %287 : vector<2x64xf32>
    %cst_61 = arith.constant 1.000000e+00 : f32
    %289 = vector.broadcast %cst_61 : f32 to vector<2x64xf32>
    %290 = arith.subf %289, %282 : vector<2x64xf32>
    %291 = arith.mulf %290, %288 : vector<2x64xf32>
    %292 = arith.mulf %282, %240 : vector<2x64xf32>
    %293 = arith.addf %291, %292 : vector<2x64xf32>
    %294 = tpu.concatenate %81, %134, %187, %240, %293 in 0 : vector<2x64xf32>, vector<2x64xf32>, vector<2x64xf32>, vector<2x64xf32>, vector<2x64xf32> -> vector<10x64xf32>
    %295 = arith.mulf %294, %18 : vector<10x64xf32>
    %cst_62 = arith.constant dense<0.000000e+00> : vector<10xf32>
    %296 = vector.multi_reduction <add>, %295, %cst_62 [1] : vector<10x64xf32> to vector<10xf32>
    %297 = vector.shape_cast %296 : vector<10xf32> to vector<10x1xf32>
    %298 = vector.broadcast %19 : vector<1x1xf32> to vector<10x1xf32>
    %299 = arith.addf %297, %298 : vector<10x1xf32>
    %300 = arith.negf %299 : vector<10x1xf32>
    %301 = math.exp %300 : vector<10x1xf32>
    %cst_63 = arith.constant 1.000000e+00 : f32
    %302 = vector.broadcast %cst_63 : f32 to vector<10x1xf32>
    %303 = arith.addf %302, %301 : vector<10x1xf32>
    %304 = arith.divf %302, %303 : vector<10x1xf32>
    %c0_64 = arith.constant 0 : index
    %c0_65 = arith.constant 0 : index
    %305 = vector.load %arg3[%c0_64, %c0_65] : memref<10x1xf32, #tpu.memory_space<vmem>>, vector<10x1xf32>
    tpu.vector_store %arg3[%c0_64, %c0_65], %304 {strides = array<i32>} : memref<10x1xf32, #tpu.memory_space<vmem>>, vector<10x1xf32>,
    return
  }
}

</mosaic_0001>

<bundles_post_ra>
// kernel: tpu_custom_call.1
= control target key start
LH: loop header
LB: loop body
LE: loop exit
PB: predicated region body
PF: predicated region fallthrough
CT: control target
= control target key end

     0   :  { %8 = vsyncpa [#allocation3], 0  ;;  %s14150_s0 = inlined_call_operand.hbm [shape: f32[2,4], index: 0, kind: input, shape index: {}]   ;;  %s14151_s1 = inlined_call_operand.hbm [shape: f32[3,64,192], index: 1, kind: input, shape index: {}]   ;;  %s14152_s2 = inlined_call_operand.hbm [shape: f32[11,192], index: 2, kind: input, shape index: {}]   ;;  %s14153_s3 = inlined_call_operand.vmem [shape: f32[10,1], index: 3, kind: output, shape index: {}]  }
   0x1   :  { %9 = vsyncpa [#allocation5], 0  ;;  %s12406_s12 = smov [#allocation4]   ;;  %s12336_s16 = scalar_lea.hbm %s14151_s1, 6144 }
   0x2   :  { %s25_s13 = sshll.u32 %s12406_s12, 4  ;;  %p12337_p0 = scmp.ne.s32.totalorder %s14151_s1, %s12336_s16  ;;  %s26_s13 = int_to_ptr.vmem [resolvable:$true] %s25_s13 }
   0x3   :  { %p12340_p1 = scmp.lt.u32.totalorder %s12336_s16, %s14151_s1 }
   0x5   :  { %p12342_p2 = pnand %p12340_p1, %p12337_p0 }
   0x7   :  { %12345 = shalt.err (!%p12342_p2)
}
   0x8   :  { %s12346_s21 = scalar_lea.vmem %s26_s13, 6144  ;;  %p12351_p4 = scmp.lt.s32.totalorder %s26_s13, %s26_s13 }
   0x9   :  { %p12347_p3 = scmp.ne.s32.totalorder %s26_s13, %s12346_s21  ;;  %p12352_p5 = scmp.lt.s32.totalorder %s12346_s21, %s12346_s21 }
   0xb   :  { %p12353_p6 = por %p12352_p5, %p12351_p4 }
   0xd   :  { %p12354_p7 = pnand %p12353_p6, %p12347_p3 }
   0xf   :  { %12357 = shalt.err (!%p12354_p7)
}
  0x10   :  { %s12407_s22 = smov 256   ;;  %s12408_s23 = smov 16  }
  0x11   :  { %31 = dma.hbm_to_vmem [thread:$0]  %s14151_s1, 6144, %s26_s13, [#allocation5], %s12407_s22, %s12407_s22, %s12408_s23  }
  0x12   :  { %s12409_s26 = smov [#allocation2]   ;;  %s12410_s28 = smov [#allocation6]  }
  0x13   :  { %s16_s27 = sshll.u32 %s12409_s26, 4  ;;  %s37_s29 = sshll.u32 %s12410_s28, 4  ;;  %s17_s27 = int_to_ptr.vmem [resolvable:$true] %s16_s27  ;;  %s38_s29 = int_to_ptr.vmem [resolvable:$true] %s37_s29 }
  0x14   :  { %s12358_s5 = scalar_lea.hbm %s14150_s0, 32 }
  0x15   :  { %p12359_p8 = scmp.ne.s32.totalorder %s14150_s0, %s12358_s5  ;;  %p12362_p9 = scmp.lt.u32.totalorder %s12358_s5, %s14150_s0 }
  0x17   :  { %p12364_p10 = pnand %p12362_p9, %p12359_p8 }
  0x19   :  { %12367 = shalt.err (!%p12364_p10)
}
  0x1a   :  { %s12368_s1 = scalar_lea.vmem %s17_s27, 32  ;;  %p12373_p12 = scmp.lt.s32.totalorder %s17_s27, %s17_s27 }
  0x1b   :  { %p12369_p11 = scmp.ne.s32.totalorder %s17_s27, %s12368_s1  ;;  %p12374_p13 = scmp.lt.s32.totalorder %s12368_s1, %s12368_s1 }
  0x1d   :  { %p12375_p0 = por %p12374_p13, %p12373_p12 }
  0x1f   :  { %p12376_p1 = pnand %p12375_p0, %p12369_p11 }
  0x21   :  { %12379 = shalt.err (!%p12376_p1)
}
  0x22   :  { %19 = dma.hbm_to_vmem [thread:$0]  %s14150_s0, 32, %s17_s27, [#allocation3]  }
  0x23   :  { %s12380_s14 = scalar_lea.hbm %s14152_s2, 512 }
  0x24   :  { %p12381_p2 = scmp.ne.s32.totalorder %s14152_s2, %s12380_s14  ;;  %p12384_p3 = scmp.lt.u32.totalorder %s12380_s14, %s14152_s2 }
  0x26   :  { %p12386_p4 = pnand %p12384_p3, %p12381_p2 }
  0x28   :  { %12389 = shalt.err (!%p12386_p4)
}
  0x29   :  { %s12390_s19 = scalar_lea.vmem %s38_s29, 512  ;;  %p12395_p6 = scmp.lt.s32.totalorder %s38_s29, %s38_s29 }
  0x2a   :  { %p12391_p5 = scmp.ne.s32.totalorder %s38_s29, %s12390_s19  ;;  %p12396_p7 = scmp.lt.s32.totalorder %s12390_s19, %s12390_s19 }
  0x2c   :  { %p12397_p8 = por %p12396_p7, %p12395_p6 }
  0x2e   :  { %p12398_p9 = pnand %p12397_p8, %p12391_p5 }
  0x30   :  { %12401 = shalt.err (!%p12398_p9)
}
  0x31   :  { %43 = dma.hbm_to_vmem [thread:$0]  %s14152_s2, 512, %s38_s29, [#allocation5], %s12407_s22, %s12407_s22, %s12408_s23  }
  0x32   :  { %12402 = dma.done.wait [#allocation3], 32  }
  0x33   :  { %12403 = vsyncadd [#allocation3], 4294967264 }
  0x34   :  { %12404 = dma.done.wait [#allocation5], 6656  }
  0x35   :  { %12405 = vsyncadd [#allocation5], 4294960640  ;;  %v14154_v0 = vmov 0.0   ;;  %vm12412_vm0 = vmmov 0   ;;  %vm140_vm1 = vcmask 1043456   ;;  %vm136_vm2 = vcmask 31744  }
  0x36   :  { %10607 = vmatprep.subr.mxu0 %v14154_v0  ;;  %10609 = vmatprep.mubr.msk.f32.mxu0 %vm12412_vm0, %v14154_v0  ;;  %v53_v1 = vld [vmem:[#allocation6] sm:$0xf]  ;;  %v135_v2 = vld [vmem:[#allocation2] sm:$0x3]  ;;  %v12480_v3 = vld [vmem:[#allocation4 + $0x8] sm:$0xff]  ;;  %vm590_vm3 = vcmask 523264  }
  0x37   :  { %934 = vmatprep.mubr.f32.mxu1 %v14154_v0  ;;  %v142_v4 = vsel %vm140_vm1, %v53_v1, 0  ;;  %v138_v5 = vsel %vm136_vm2, %v135_v2, 0  ;;  %v12483_v6 = vld [vmem:[#allocation4 + $0x18] sm:$0xff]  ;;  %v594_v7 = vand.u32 4294901760, %v12480_v3  ;;  %v12486_v8 = vld [vmem:[#allocation4] sm:$0xff]  ;;  %v12488_v9 = vld [vmem:[#allocation4 + $0x10] sm:$0xff] }
  0x38   :  { %v12490_v10 = vand.u32 4294901760, %v142_v4  ;;  %v12492_v11 = vand.u32 4294901760, %v138_v5  ;;  %v598_v12 = vand.u32 4294901760, %v12483_v6  ;;  %v596_v13 = vand.u32 4294901760, %v12486_v8  ;;  %v12496_v14 = vld [vmem:[#allocation4 + $0x28] sm:$0xff]  ;;  %v12498_v15 = vld [vmem:[#allocation4 + $0x38] sm:$0xff] }
  0x39   :  { %v12503_v16 = vsub.f32 %v12480_v3, %v594_v7  ;;  %v600_v17 = vand.u32 4294901760, %v12488_v9  ;;  %v602_v18 = vand.u32 4294901760, %v12496_v14  ;;  %v606_v19 = vand.u32 4294901760, %v12498_v15  ;;  %v89_v23 = vld [vmem:[#allocation4 + $0x20] sm:$0xff]  ;;  %v91_v24 = vld [vmem:[#allocation4 + $0x30] sm:$0xff]  ;;  %v94_v27 = vld [vmem:[#allocation4 + $0x48] sm:$0xff] }
  0x3a   :  { %10608 = vmatpush3.msra.mxu0 %v12490_v10  ;;  %v222_v20 = vsub.f32 %v142_v4, %v12490_v10  ;;  %v211_v21 = vsub.f32 %v138_v5, %v12492_v11  ;;  %v12512_v22 = vsub.f32 %v12483_v6, %v598_v12  ;;  %v12518_v25 = vsub.f32 %v12486_v8, %v596_v13  ;;  %v96_v28 = vld [vmem:[#allocation4 + $0x58] sm:$0xff]  ;;  %v93_v55 = vld [vmem:[#allocation4 + $0x40] sm:$0xff]  ;;  %v95_v56 = vld [vmem:[#allocation4 + $0x50] sm:$0xff]  ;;  %s12413_s2 = smov 64  }
  0x3b   :  { %10612 = vmatprep.subr.mxu0 %v14154_v0  ;;  %v12521_v26 = vsub.f32 %v12488_v9, %v600_v17  ;;  %v12528_v32 = vsub.f32 %v12496_v14, %v602_v18  ;;  %v12535_v34 = vsub.f32 %v12498_v15, %v606_v19  ;;  %v604_v35 = vand.u32 4294901760, %v89_v23  ;;  %v98_v61 = vld [vmem:[#allocation4 + $0x68] sm:$0xff]  ;;  %v100_v62 = vld [vmem:[#allocation4 + $0x78] sm:$0xff]  ;;  %v97_v2 = vld [vmem:[#allocation4 + $0x60] sm:$0xff] }
  0x3c   :  { %v212_v29 = vand.u32 4294901760, %v211_v21  ;;  %v223_v30 = vand.u32 4294901760, %v222_v20  ;;  %v12525_v31 = vpack.c.bf16 %v12512_v22, %v12503_v16  ;;  %v608_v36 = vand.u32 4294901760, %v91_v24  ;;  %v99_v3 = vld [vmem:[#allocation4 + $0x70] sm:$0xff] }
  0x3d   :  { %v12532_v33 = vpack.c.bf16 %v12521_v26, %v12518_v25  ;;  %v610_v39 = vand.u32 4294901760, %v94_v27  ;;  %v614_v40 = vand.u32 4294901760, %v96_v28  ;;  %v12541_v41 = vpack.c.bf16 %v12535_v34, %v12528_v32 }
  0x3e   :  { %14374 = vst [vmem:[#allocation9_spill] sm:$0xff] %v12525_v31  ;;  %v213_v37 = vsub.f32 %v211_v21, %v212_v29  ;;  %v224_v38 = vsub.f32 %v222_v20, %v223_v30  ;;  %10670 = vmatprep.subr.bf16.mxu1 %v12525_v31  ;;  %v12543_v42 = vsub.f32 %v89_v23, %v604_v35  ;;  %v612_v57 = vand.u32 4294901760, %v93_v55 }
  0x3f   :  { %14375 = vst [vmem:[#allocation10_spill] sm:$0xff] %v12532_v33  ;;  %10672 = vmatpush1.bf16.msra.mxu1 %v12532_v33  ;;  %14376 = vst [vmem:[#allocation11_spill] sm:$0xff] %v12541_v41  ;;  %v12545_v43 = vsub.f32 %v91_v24, %v608_v36  ;;  %v12547_v46 = vsub.f32 %v94_v27, %v610_v39  ;;  %v12554_v48 = vsub.f32 %v96_v28, %v614_v40  ;;  %vm10533_vm4 = vcmask 1041408  }
  0x40   :  { %v214_v44 = vand.u32 4294901760, %v213_v37  ;;  %v225_v45 = vand.u32 4294901760, %v224_v38  ;;  %10674 = vmatprep.subr.bf16.mxu1 %v12541_v41  ;;  %v12578_v50 = vpack.c.bf16 %v598_v12, %v594_v7  ;;  %v12587_v51 = vpack.c.bf16 %v600_v17, %v596_v13 }
  0x41   :  { %v12552_v47 = vpack.c.bf16 %v12545_v43, %v12543_v42  ;;  %v12560_v49 = vpack.c.bf16 %v12554_v48, %v12547_v46  ;;  %v12589_v52 = vpack.c.bf16 %v606_v19, %v602_v18  ;;  %v12592_v53 = vpack.c.bf16 %v608_v36, %v604_v35 }
  0x42   :  { %10610 = vmatmul.mubr.f32.vlgmr.msra.gmra.mrb[0].mxu0 %v214_v44  ;;  %v12596_v54 = vpack.c.bf16 %v614_v40, %v610_v39  ;;  %v616_v58 = vand.u32 4294901760, %v95_v56  ;;  %v741_v59 = vsub.f32 %v93_v55, %v612_v57  ;;  %v618_v63 = vand.u32 4294901760, %v98_v61 }
  0x43   :  { %14377 = vst [vmem:[#allocation12_spill] sm:$0xff] %v12552_v47  ;;  %10613 = vmatpush3.msra.mxu0 %v225_v45  ;;  %10614 = vmatprep.mubr.msk.f32.mxu0 %vm12412_vm0, %v14154_v0  ;;  %14378 = vst [vmem:[#allocation13_spill] sm:$0xff] %v12560_v49  ;;  %v622_v1 = vand.u32 4294901760, %v100_v62  ;;  %v620_v5 = vand.u32 4294901760, %v97_v2  ;;  %v624_v6 = vand.u32 4294901760, %v99_v3  ;;  %v688_v14 = vand.u32 4294901760, %v12503_v16 }
  0x44   :  { %10617 = vmatprep.subr.mxu0 %v14154_v0  ;;  %10676 = vmatpush1.bf16.msra.mxu1 %v12552_v47  ;;  %14379 = vst [vmem:[#allocation14_spill] sm:$0xff] %v12589_v52  ;;  %14380 = vst [vmem:[#allocation15_spill] sm:$0xff] %v12592_v53  ;;  %v753_v60 = vsub.f32 %v95_v56, %v616_v58  ;;  %v759_v7 = vsub.f32 %v98_v61, %v618_v63  ;;  %v700_v15 = vand.u32 4294901760, %v12512_v22  ;;  %vm10536_vm5 = vcmask 1045504  }
  0x45   :  { %10678 = vmatprep.subr.bf16.mxu1 %v12560_v49  ;;  %14381 = vst [vmem:[#allocation16_spill] sm:$0xff] %v12596_v54  ;;  %v771_v8 = vsub.f32 %v100_v62, %v622_v1  ;;  %v765_v9 = vsub.f32 %v97_v2, %v620_v5  ;;  %v12609_v13 = vpack.c.bf16 %v616_v58, %v612_v57  ;;  %v742_v27 = vand.u32 4294901760, %v741_v59 }
  0x46   :  { %v12601_v4 = vpack.c.bf16 %v753_v60, %v741_v59  ;;  %v12616_v17 = vpack.c.bf16 %v622_v1, %v618_v63  ;;  %v12618_v18 = vpack.c.bf16 %v624_v6, %v620_v5  ;;  %v689_v19 = vsub.f32 %v12503_v16, %v688_v14 }
  0x47   :  { %14385 = vst [vmem:[#allocation20_spill] sm:$0xff] %v12609_v13  ;;  %v754_v28 = vand.u32 4294901760, %v753_v60  ;;  %v760_v35 = vand.u32 4294901760, %v759_v7  ;;  %v772_v36 = vand.u32 4294901760, %v771_v8  ;;  %v766_v38 = vand.u32 4294901760, %v765_v9 }
  0x48   :  { %14382 = vst [vmem:[#allocation17_spill] sm:$0xff] %v12601_v4  ;;  %10680 = vmatpush1.bf16.msra.mxu1 %v12601_v4  ;;  %14386 = vst [vmem:[#allocation21_spill] sm:$0xff] %v12616_v17  ;;  %v12629_v56 = vpack.c.bf16 %v700_v15, %v688_v14  ;;  %v694_v5 = vand.u32 4294901760, %v12518_v25  ;;  %vm10555_vm6 = vcmask 517120   ;;  %vm10573_vm7 = vcmask 7168  }
  0x49   :  { %14387 = vst [vmem:[#allocation22_spill] sm:$0xff] %v12618_v18  ;;  %v761_v39 = vsub.f32 %v759_v7, %v760_v35  ;;  %v773_v40 = vsub.f32 %v771_v8, %v772_v36  ;;  %v767_v45 = vsub.f32 %v765_v9, %v766_v38  ;;  %v12635_v63 = vpack.c.bf16 %v754_v28, %v742_v27 }
  0x4a   :  { %10615 = vmatmul.mubr.f32.vlgmr.msra.gmra.mrb[0].mxu0 %v12492_v11  ;;  %14390 = vst [vmem:[#allocation25_spill] sm:$0xff] %v12629_v56  ;;  %v12637_v1 = vpack.c.bf16 %v772_v36, %v760_v35  ;;  %v748_v35 = vand.u32 4294901760, %v12554_v48  ;;  %vm10575_vm8 = vcmask 1024  }
  0x4b   :  { %10618 = vmatpush3.msra.mxu0 %v222_v20  ;;  %10619 = vmatprep.mubr.msk.f32.mxu0 %vm12412_vm0, %v14154_v0  ;;  %v701_v20 = vsub.f32 %v12512_v22, %v700_v15  ;;  %v762_v57 = vand.u32 4294901760, %v761_v39  ;;  %v774_v58 = vand.u32 4294901760, %v773_v40  ;;  %v768_v61 = vand.u32 4294901760, %v767_v45  ;;  %14393 = vst [vmem:[#allocation28_spill] sm:$0xff] %v12635_v63 }
  0x4c   :  { %10622 = vmatprep.subr.mxu0 %v14154_v0  ;;  %14394 = vst [vmem:[#allocation29_spill] sm:$0xff] %v12637_v1  ;;  %v695_v15 = vsub.f32 %v12518_v25, %v694_v5  ;;  %v749_v39 = vsub.f32 %v12554_v48, %v748_v35 }
  0x4d   :  { %v702_v23 = vand.u32 4294901760, %v701_v20 }
  0x52   :  { %10620 = vmatmul.mubr.f32.vlgmr.msra.gmra.mrb[0].mxu0 %v211_v21  ;;  %v690_v21 = vand.u32 4294901760, %v689_v19 }
  0x53   :  { %10623 = vmatpush3.msra.mxu0 %v12490_v10  ;;  %10624 = vmatprep.mubr.msk.f32.mxu0 %vm12412_vm0, %v14154_v0 }
  0x54   :  { %10627 = vmatprep.subr.mxu0 %v14154_v0  ;;  %v12624_v24 = vpack.c.bf16 %v702_v23, %v690_v21  ;;  %v718_v23 = vand.u32 4294901760, %v12543_v42 }
  0x56   :  { %14388 = vst [vmem:[#allocation23_spill] sm:$0xff] %v12624_v24 }
  0x5a   :  { %10625 = vmatmul.mubr.f32.vlgmr.msra.gmra.mrb[0].mxu0 %v212_v29  ;;  %v743_v29 = vsub.f32 %v741_v59, %v742_v27  ;;  %v12631_v59 = vpack.c.bf16 %v774_v58, %v762_v57  ;;  %v730_v27 = vand.u32 4294901760, %v12545_v43  ;;  %v750_v58 = vand.u32 4294901760, %v749_v39  ;;  %v130_v39 = vld [vmem:[#allocation4 + $0x158] sm:$0xff] }
  0x5b   :  { %10628 = vmatpush3.msra.mxu0 %v223_v30  ;;  %10629 = vmatprep.mubr.msk.f32.mxu0 %vm12412_vm0, %v14154_v0  ;;  %v755_v30 = vsub.f32 %v753_v60, %v754_v28 }
  0x5c   :  { %10632 = vmatprep.subr.mxu0 %v14154_v0  ;;  %v744_v37 = vand.u32 4294901760, %v743_v29  ;;  %14391 = vst [vmem:[#allocation26_spill] sm:$0xff] %v12631_v59 }
  0x5d   :  { %v756_v16 = vand.u32 4294901760, %v755_v30  ;;  %v736_v30 = vand.u32 4294901760, %v12547_v46 }
  0x5f   :  { %v12627_v44 = vpack.c.bf16 %v756_v16, %v744_v37  ;;  %v731_v16 = vsub.f32 %v12545_v43, %v730_v27 }
  0x61   :  { %14389 = vst [vmem:[#allocation24_spill] sm:$0xff] %v12627_v44  ;;  %v732_v45 = vand.u32 4294901760, %v731_v16 }
  0x62   :  { %10630 = vmatmul.mubr.f32.vlgmr.msra.gmra.mrb[0].mxu0 %v12492_v11 }
  0x63   :  { %10633 = vmatpush3.msra.mxu0 %v12490_v10  ;;  %10634 = vmatprep.mubr.msk.f32.mxu0 %vm12412_vm0, %v14154_v0  ;;  %v777_v10 = vsub.f32 %v99_v3, %v624_v6  ;;  %v54_v3 = vld [vmem:[#allocation6 + $0x4] ss:$0 sm:$0xff]  ;;  %v706_v6 = vand.u32 4294901760, %v12521_v26 }
  0x64   :  { %10638 = vmatprep.subr.bf16.mxu0 %v12578_v50 }
  0x65   :  { %v12606_v12 = vpack.c.bf16 %v777_v10, %v765_v9  ;;  %v778_v22 = vand.u32 4294901760, %v777_v10  ;;  %v724_v9 = vand.u32 4294901760, %v12535_v34  ;;  %v707_v19 = vsub.f32 %v12521_v26, %v706_v6 }
  0x66   :  { %v696_v26 = vand.u32 4294901760, %v695_v15  ;;  %v119_v15 = vld [vmem:[#allocation4 + $0x100] sm:$0xff] }
  0x67   :  { %14384 = vst [vmem:[#allocation19_spill] sm:$0xff] %v12606_v12  ;;  %v779_v55 = vsub.f32 %v777_v10, %v778_v22  ;;  %v12639_v2 = vpack.c.bf16 %v778_v22, %v766_v38  ;;  %v725_v29 = vsub.f32 %v12535_v34, %v724_v9  ;;  %v708_v36 = vand.u32 4294901760, %v707_v19  ;;  %v121_v19 = vld [vmem:[#allocation4 + $0x110] sm:$0xff] }
  0x68   :  { %v737_v22 = vsub.f32 %v12547_v46, %v736_v30 }
  0x69   :  { %v780_v62 = vand.u32 4294901760, %v779_v55  ;;  %14395 = vst [vmem:[#allocation30_spill] sm:$0xff] %v12639_v2  ;;  %v726_v34 = vand.u32 4294901760, %v725_v29  ;;  %v12675_v43 = vpack.c.bf16 %v708_v36, %v696_v26  ;;  %v1915_v26 = vand.u32 4294901760, %v119_v15 }
  0x6a   :  { %10635 = vmatmul.mubr.f32.vlgmr.msra.gmra.mrb[0].mxu0 %v12492_v11  ;;  %v12604_v11 = vpack.c.bf16 %v771_v8, %v759_v7  ;;  %v712_v7 = vand.u32 4294901760, %v12528_v32  ;;  %v738_v46 = vand.u32 4294901760, %v737_v22  ;;  %v1919_v36 = vand.u32 4294901760, %v121_v19  ;;  %v128_v22 = vld [vmem:[#allocation4 + $0x148] sm:$0xff] }
  0x6b   :  { %10640 = vmatpush1.bf16.msra.mxu0 %v12587_v51  ;;  %674 = vmatprep.mubr.f32.mxu0 %v14154_v0  ;;  %v12633_v60 = vpack.c.bf16 %v780_v62, %v768_v61  ;;  %14396 = vst [vmem:[#allocation31_spill] sm:$0xff] %v12675_v43  ;;  %v12696_v62 = vpack.c.bf16 %v706_v6, %v694_v5  ;;  %v120_v6 = vld [vmem:[#allocation4 + $0x108] sm:$0xff] }
  0x6c   :  { %10642 = vmatprep.subr.bf16.mxu0 %v12589_v52  ;;  %14383 = vst [vmem:[#allocation18_spill] sm:$0xff] %v12604_v11  ;;  %10682 = vmatprep.subr.bf16.mxu1 %v12604_v11  ;;  %v713_v21 = vsub.f32 %v12528_v32, %v712_v7  ;;  %v719_v32 = vsub.f32 %v12543_v42, %v718_v23 }
  0x6d   :  { %10684 = vmatpush1.bf16.msra.mxu1 %v12606_v12  ;;  %14392 = vst [vmem:[#allocation27_spill] sm:$0xff] %v12633_v60  ;;  %v12689_v61 = vpack.c.bf16 %v750_v58, %v738_v46  ;;  %14400 = vst [vmem:[#allocation35_spill] sm:$0xff] %v12696_v62  ;;  %v12709_v5 = vpack.c.bf16 %v748_v35, %v736_v30  ;;  %v12736_v46 = vsub.f32 %v119_v15, %v1915_v26  ;;  %v129_v15 = vld [vmem:[#allocation4 + $0x150] sm:$0xff] }
  0x6e   :  { %10686 = vmatprep.subr.bf16.mxu1 %v12578_v50  ;;  %v714_v37 = vand.u32 4294901760, %v713_v21  ;;  %v720_v40 = vand.u32 4294901760, %v719_v32  ;;  %v126_v21 = vld [vmem:[#allocation4 + $0x138] sm:$0xff]  ;;  %v12738_v58 = vsub.f32 %v121_v19, %v1919_v36  ;;  %v132_v19 = vld [vmem:[#allocation4 + $0x168] sm:$0xff]  ;;  %v1935_v12 = vand.u32 4294901760, %v129_v15 }
  0x6f   :  { %10644 = vmatpush1.bf16.msra.mxu0 %v12592_v53  ;;  %14399 = vst [vmem:[#allocation34_spill] sm:$0xff] %v12689_v61  ;;  %14403 = vst [vmem:[#allocation38_spill] sm:$0xff] %v12709_v5  ;;  %v1925_v32 = vand.u32 4294901760, %v126_v21 }
  0x70   :  { %10646 = vmatprep.subr.bf16.mxu0 %v12596_v54  ;;  %v12679_v57 = vpack.c.bf16 %v726_v34, %v714_v37  ;;  %v12685_v48 = vpack.c.bf16 %v732_v45, %v720_v40  ;;  %v14413_v49 = vand.u32 4294901760, %v12738_v58 }
  0x72   :  { %14397 = vst [vmem:[#allocation32_spill] sm:$0xff] %v12679_v57  ;;  %14398 = vst [vmem:[#allocation33_spill] sm:$0xff] %v12685_v48  ;;  %v2026_v47 = vsub.f32 %v12738_v58, %v14413_v49  ;;  %v12797_v49 = vsub.f32 %v129_v15, %v1935_v12 }
  0x73   :  { %10648 = vmatpush1.bf16.msra.mxu0 %v12609_v13 }
  0x74   :  { %10650 = vmatprep.subr.bf16.mxu0 %v12616_v17 }
  0x77   :  { %10652 = vmatpush1.bf16.msra.mxu0 %v12618_v18 }
  0x78   :  { %10654 = vmatprep.subr.bf16.mxu0 %v12624_v24 }
 0x13d   :  { %v586_v8 = vpop.f32.mrb[0].mxu0 }
 0x13e   :  { %v12645_v10 = vadd.f32 %v586_v8, %v54_v3  ;;  %v10636_v14 = vpop.f32.mrb[1].mxu0  ;;  %v12699_v3 = vpack.c.bf16 %v724_v9, %v712_v7  ;;  %v12705_v8 = vpack.c.bf16 %v730_v27, %v718_v23  ;;  %v122_v7 = vld [vmem:[#allocation4 + $0x118] sm:$0xff]  ;;  %v1913_v9 = vand.u32 4294901760, %v120_v6  ;;  %v123_v23 = vld [vmem:[#allocation4 + $0x120] sm:$0xff]  ;;  %v125_v27 = vld [vmem:[#allocation4 + $0x130] sm:$0xff] }
 0x13f   :  { %v1917_v14 = vand.u32 4294901760, %v122_v7  ;;  %v1923_v16 = vand.u32 4294901760, %v123_v23  ;;  %v1927_v34 = vand.u32 4294901760, %v125_v27 }
 0x140   :  { %v592_v20 = vsel %vm590_vm3, %v12645_v10, 0  ;;  %14401 = vst [vmem:[#allocation36_spill] sm:$0xff] %v12699_v3  ;;  %14402 = vst [vmem:[#allocation37_spill] sm:$0xff] %v12705_v8  ;;  %v12726_v29 = vsub.f32 %v120_v6, %v1913_v9 }
 0x141   :  { %v12654_v28 = vand.u32 4294901760, %v592_v20  ;;  %v12728_v30 = vsub.f32 %v122_v7, %v1917_v14  ;;  %v12731_v35 = vpack.c.bf16 %v1917_v14, %v1913_v9  ;;  %v12742_v7 = vsub.f32 %v126_v21, %v1925_v32 }
 0x142   :  { %v12745_v9 = vpack.c.bf16 %v1919_v36, %v1915_v26  ;;  %v1929_v14 = vand.u32 4294901760, %v128_v22  ;;  %v12750_v40 = vpack.c.bf16 %v1927_v34, %v1923_v16  ;;  %v14408_v21 = vand.u32 4294901760, %v12726_v29 }
 0x143   :  { %v12660_v25 = vsub.f32 %v592_v20, %v12654_v28  ;;  %v124_v20 = vld [vmem:[#allocation4 + $0x128] sm:$0xff]  ;;  %14404 = vst [vmem:[#allocation39_spill] sm:$0xff] %v12731_v35  ;;  %v14409_v26 = vand.u32 4294901760, %v12728_v30  ;;  %v14415_v31 = vand.u32 4294901760, %v12742_v7 }
 0x144   :  { %v1921_v37 = vand.u32 4294901760, %v124_v20  ;;  %14405 = vst [vmem:[#allocation40_spill] sm:$0xff] %v12745_v9  ;;  %14407 = vst [vmem:[#allocation42_spill] sm:$0xff] %v12750_v40 }
 0x145   :  { %v12665_v38 = vand.u32 4294901760, %v12660_v25  ;;  %937 = vmatmul.mubr.f32.vlgmr.msra.gmra.mrb[0].mxu1 %v12660_v25  ;;  %v2020_v36 = vsub.f32 %v12728_v30, %v14409_v26  ;;  %v1937_v26 = vand.u32 4294901760, %v132_v19 }
 0x146   :  { %10688 = vmatpush1.bf16.msra.mxu1 %v12587_v51  ;;  %1023 = vmatprep.mubr.f32.mxu1 %v14154_v0  ;;  %v12740_v6 = vsub.f32 %v124_v20, %v1921_v37  ;;  %v131_v20 = vld [vmem:[#allocation4 + $0x160] sm:$0xff] }
 0x147   :  { %10690 = vmatprep.subr.bf16.mxu1 %v12589_v52  ;;  %v678_v42 = vsub.f32 %v12660_v25, %v12665_v38 }
 0x148   :  { %v14414_v41 = vand.u32 4294901760, %v12740_v6 }
 0x149   :  { %v12677_v55 = vand.u32 4294901760, %v678_v42  ;;  %v127_v42 = vld [vmem:[#allocation4 + $0x140] sm:$0xff] }
 0x14a   :  { %10692 = vmatpush1.bf16.msra.mxu1 %v12592_v53  ;;  %v1931_v45 = vand.u32 4294901760, %v127_v42  ;;  %v2032_v33 = vsub.f32 %v12740_v6, %v14414_v41 }
 0x14b   :  { %680 = vmatmul.mubr.f32.vlgmr.msra.gmra.mrb[2].mxu0 %v12677_v55  ;;  %10694 = vmatprep.subr.bf16.mxu1 %v12596_v54 }
 0x14c   :  { %10656 = vmatpush1.bf16.msra.mxu0 %v12675_v43  ;;  %830 = vmatprep.mubr.f32.mxu0 %v14154_v0 }
 0x14d   :  { %10658 = vmatprep.subr.bf16.mxu0 %v12679_v57 }
 0x14e   :  { %10696 = vmatpush1.bf16.msra.mxu1 %v12609_v13 }
 0x14f   :  { %10698 = vmatprep.subr.bf16.mxu1 %v12616_v17 }
 0x150   :  { %10660 = vmatpush1.bf16.msra.mxu0 %v12685_v48 }
 0x151   :  { %10662 = vmatprep.subr.bf16.mxu0 %v12689_v61 }
 0x152   :  { %10700 = vmatpush1.bf16.msra.mxu1 %v12618_v18 }
 0x153   :  { %10702 = vmatprep.subr.bf16.mxu1 %v12629_v56  ;;  %v12765_v56 = vsub.f32 %v125_v27, %v1927_v34  ;;  %v2021_v27 = vand.u32 4294901760, %v2020_v36  ;;  %v12795_v36 = vsub.f32 %v127_v42, %v1931_v45  ;;  %v2033_v42 = vand.u32 4294901760, %v2032_v33 }
 0x154   :  { %10664 = vmatpush1.bf16.msra.mxu0 %v12627_v44  ;;  %v2027_v44 = vand.u32 4294901760, %v2026_v47 }
 0x155   :  { %1027 = vmatmul.mubr.f32.vlgmr.msra.gmra.mrb[0].mxu1 %v12665_v38  ;;  %10666 = vmatprep.subr.bf16.mxu0 %v12631_v59  ;;  %v14421_v41 = vand.u32 4294901760, %v12765_v56 }
 0x156   :  { %10704 = vmatpush1.bf16.msra.mxu1 %v12696_v62  ;;  %1145 = vmatprep.mubr.f32.mxu1 %v14154_v0  ;;  %v12763_v62 = vsub.f32 %v123_v23, %v1923_v16  ;;  %v14412_v16 = vand.u32 4294901760, %v12736_v46 }
 0x157   :  { %10706 = vmatprep.subr.bf16.mxu1 %v12699_v3 }
 0x158   :  { %10668 = vmatpush1.bf16.msra.mxu0 %v12633_v60  ;;  %v2014_v34 = vsub.f32 %v12736_v46, %v14412_v16  ;;  %v12802_v16 = vsub.f32 %v132_v19, %v1937_v26 }
 0x15a   :  { %10708 = vmatpush1.bf16.msra.mxu1 %v12705_v8  ;;  %v14411_v8 = vmov 0.0   ;;  %v2015_v59 = vand.u32 4294901760, %v2014_v34  ;;  %v14198_v34 = vand.u32 4294901760, %v12802_v16 }
 0x15b   :  { %832 = vmatmul.mubr.f32.vlgmr.msra.gmra.mrb[2].mxu0 %v12654_v28  ;;  %10710 = vmatprep.subr.bf16.mxu1 %v12709_v5  ;;  %v2008_v5 = vsub.f32 %v12726_v29, %v14408_v21 }
 0x15c   :  { %1346 = vmatprep.mubr.f32.mxu0 %v14154_v0 }
 0x15d   :  { %v2009_v23 = vand.u32 4294901760, %v2008_v5 }
 0x15e   :  { %10712 = vmatpush1.bf16.msra.mxu1 %v12635_v63  ;;  %v133_v63 = vld [vmem:[#allocation4 + $0x170] sm:$0xff] }
 0x15f   :  { %10714 = vmatprep.subr.bf16.mxu1 %v12637_v1  ;;  %v134_v1 = vld [vmem:[#allocation4 + $0x178] sm:$0xff]  ;;  %v1943_v4 = vand.u32 4294901760, %v133_v63  ;;  %v12808_v60 = vpack.c.bf16 %v2021_v27, %v2009_v23 }
 0x160   :  { %v1941_v11 = vand.u32 4294901760, %v134_v1 }
 0x161   :  { %14419 = vst [vmem:[#allocation47_spill] sm:$0xff] %v12808_v60 }
 0x162   :  { %10716 = vmatpush1.bf16.msra.mxu1 %v12639_v2  ;;  %v12748_v2 = vpack.c.bf16 %v1925_v32, %v1921_v37  ;;  %v1939_v37 = vand.u32 4294901760, %v131_v20  ;;  %v12772_v32 = vsub.f32 %v128_v22, %v1929_v14  ;;  %v2044_v22 = vsub.f32 %v12742_v7, %v14415_v31 }
 0x163   :  { %10718 = vmatprep.subr.bf16.mxu1 %v12578_v50  ;;  %v2050_v31 = vsub.f32 %v12765_v56, %v14421_v41  ;;  %v12832_v41 = vpack.c.bf16 %v2027_v44, %v2015_v59 }
 0x164   :  { %14406 = vst [vmem:[#allocation41_spill] sm:$0xff] %v12748_v2  ;;  %v12806_v5 = vpack.c.bf16 %v1943_v4, %v1939_v37  ;;  %v12819_v19 = vsub.f32 %v131_v20, %v1939_v37  ;;  %v14422_v33 = vand.u32 4294901760, %v12772_v32 }
 0x165   :  { %1147 = vmatmul.mubr.f32.vlgmr.msra.gmra.mrb[0].mxu1 %v12654_v28  ;;  %14424 = vst [vmem:[#allocation48_spill] sm:$0xff] %v12832_v41 }
 0x166   :  { %10720 = vmatpush1.bf16.msra.mxu1 %v12587_v51  ;;  %1233 = vmatprep.mubr.f32.mxu1 %v14154_v0  ;;  %v1933_v0 = vand.u32 4294901760, %v130_v39  ;;  %14418 = vst [vmem:[#allocation46_spill] sm:$0xff] %v12806_v5  ;;  %v2056_v47 = vsub.f32 %v12772_v32, %v14422_v33  ;;  %v14196_v33 = vand.u32 4294901760, %v12819_v19 }
 0x167   :  { %10722 = vmatprep.subr.bf16.mxu1 %v12589_v52 }
 0x168   :  { %v12768_v21 = vpack.c.bf16 %v1933_v0, %v1929_v14  ;;  %v12774_v3 = vsub.f32 %v130_v39, %v1933_v0  ;;  %v12791_v39 = vpack.c.bf16 %v1935_v12, %v1931_v45  ;;  %v12793_v14 = vpack.c.bf16 %v1941_v11, %v1937_v26 }
 0x169   :  { %v12804_v0 = vsub.f32 %v134_v1, %v1941_v11  ;;  %v2045_v45 = vand.u32 4294901760, %v2044_v22  ;;  %v14420_v12 = vand.u32 4294901760, %v12763_v62  ;;  %v14199_v11 = vand.u32 4294901760, %v12795_v36 }
 0x16a   :  { %10724 = vmatpush1.bf16.msra.mxu1 %v12592_v53  ;;  %14410 = vst [vmem:[#allocation43_spill] sm:$0xff] %v12768_v21  ;;  %14416 = vst [vmem:[#allocation44_spill] sm:$0xff] %v12791_v39  ;;  %v14194_v1 = vand.u32 4294901760, %v12797_v49  ;;  %v12821_v26 = vsub.f32 %v133_v63, %v1943_v4  ;;  %v14423_v23 = vand.u32 4294901760, %v12774_v3  ;;  %v2051_v63 = vand.u32 4294901760, %v2050_v31 }
 0x16b   :  { %10726 = vmatprep.subr.bf16.mxu1 %v12596_v54  ;;  %14417 = vst [vmem:[#allocation45_spill] sm:$0xff] %v12793_v14  ;;  %v2038_v15 = vsub.f32 %v12763_v62, %v14420_v12  ;;  %v14195_v22 = vand.u32 4294901760, %v12804_v0  ;;  %v12834_v20 = vpack.c.bf16 %v2045_v45, %v2033_v42  ;;  %v2062_v37 = vsub.f32 %v12795_v36, %v14199_v11 }
 0x16c   :  { %v2068_v27 = vsub.f32 %v12774_v3, %v14423_v23  ;;  %v2074_v12 = vsub.f32 %v12797_v49, %v14194_v1  ;;  %v14197_v23 = vand.u32 4294901760, %v12821_v26  ;;  %v2057_v44 = vand.u32 4294901760, %v2056_v47 }
 0x16d   :  { %14425 = vst [vmem:[#allocation49_spill] sm:$0xff] %v12834_v20  ;;  %v2039_v4 = vand.u32 4294901760, %v2038_v15  ;;  %v2080_v31 = vsub.f32 %v12802_v16, %v14198_v34  ;;  %v2092_v42 = vsub.f32 %v12804_v0, %v14195_v22  ;;  %v2063_v15 = vand.u32 4294901760, %v2062_v37 }
 0x16e   :  { %10728 = vmatpush1.bf16.msra.mxu1 %v12609_v13  ;;  %v2069_v59 = vand.u32 4294901760, %v2068_v27  ;;  %v2075_v1 = vand.u32 4294901760, %v2074_v12  ;;  %v2086_v47 = vsub.f32 %v12819_v19, %v14196_v33  ;;  %v2098_v27 = vsub.f32 %v12821_v26, %v14197_v23 }
 0x16f   :  { %10730 = vmatprep.subr.bf16.mxu1 %v12616_v17  ;;  %v12853_v45 = vpack.c.bf16 %v2051_v63, %v2039_v4  ;;  %v2093_v4 = vand.u32 4294901760, %v2092_v42  ;;  %v12900_v42 = vpack.c.bf16 %v12774_v3, %v12772_v32  ;;  %v14445_v11 = vand.u32 4294901760, %v12740_v6 }
 0x170   :  { %v12864_v22 = vpack.c.bf16 %v2069_v59, %v2057_v44  ;;  %v12867_v63 = vpack.c.bf16 %v2075_v1, %v2063_v15  ;;  %v2087_v37 = vand.u32 4294901760, %v2086_v47  ;;  %v2099_v12 = vand.u32 4294901760, %v2098_v27 }
 0x171   :  { %14426 = vst [vmem:[#allocation50_spill] sm:$0xff] %v12853_v45  ;;  %v12878_v44 = vpack.c.bf16 %v12728_v30, %v12726_v29  ;;  %v12883_v1 = vpack.c.bf16 %v12738_v58, %v12736_v46  ;;  %v12888_v59 = vpack.c.bf16 %v12742_v7, %v12740_v6  ;;  %14435 = vst [vmem:[#allocation59_spill] sm:$0xff] %v12900_v42  ;;  %v14452_v6 = vand.u32 4294901760, %v12774_v3 }
 0x172   :  { %10732 = vmatpush1.bf16.msra.mxu1 %v12618_v18  ;;  %14427 = vst [vmem:[#allocation51_spill] sm:$0xff] %v12864_v22  ;;  %14428 = vst [vmem:[#allocation52_spill] sm:$0xff] %v12867_v63  ;;  %v12873_v23 = vpack.c.bf16 %v2099_v12, %v2087_v37  ;;  %v12905_v15 = vpack.c.bf16 %v12797_v49, %v12795_v36  ;;  %v12910_v47 = vpack.c.bf16 %v12804_v0, %v12802_v16 }
 0x173   :  { %10830 = vmatprep.subr.bf16.mxu1 %v12731_v35  ;;  %14431 = vst [vmem:[#allocation55_spill] sm:$0xff] %v12878_v44  ;;  %14432 = vst [vmem:[#allocation56_spill] sm:$0xff] %v12883_v1  ;;  %v12915_v27 = vpack.c.bf16 %v12821_v26, %v12819_v19  ;;  %v14443_v12 = vand.u32 4294901760, %v12738_v58  ;;  %v14451_v58 = vand.u32 4294901760, %v12772_v32  ;;  %v14460_v3 = vand.u32 4294901760, %v12819_v19 }
 0x174   :  { %14430 = vst [vmem:[#allocation54_spill] sm:$0xff] %v12873_v23  ;;  %14433 = vst [vmem:[#allocation57_spill] sm:$0xff] %v12888_v59  ;;  %v14461_v32 = vand.u32 4294901760, %v12821_v26  ;;  %v56_v26 = vld [vmem:[#allocation6 + $0x5] ss:$8 sm:$0x3] }
 0x175   :  { %1235 = vmatmul.mubr.f32.vlgmr.msra.gmra.mrb[0].mxu1 %v12654_v28  ;;  %14436 = vst [vmem:[#allocation60_spill] sm:$0xff] %v12905_v15  ;;  %14437 = vst [vmem:[#allocation61_spill] sm:$0xff] %v12910_v47 }
 0x176   :  { %10832 = vmatpush1.bf16.msra.mxu1 %v12745_v9  ;;  %1993 = vmatprep.mubr.f32.mxu1 %v14411_v8  ;;  %14438 = vst [vmem:[#allocation62_spill] sm:$0xff] %v12915_v27 }
 0x177   :  { %10834 = vmatprep.subr.bf16.mxu1 %v12748_v2 }
 0x17a   :  { %10836 = vmatpush1.bf16.msra.mxu1 %v12750_v40 }
 0x17b   :  { %10838 = vmatprep.subr.bf16.mxu1 %v12768_v21 }
 0x17e   :  { %10840 = vmatpush1.bf16.msra.mxu1 %v12791_v39 }
 0x17f   :  { %10842 = vmatprep.subr.bf16.mxu1 %v12793_v14 }
 0x182   :  { %10844 = vmatpush1.bf16.msra.mxu1 %v12806_v5 }
 0x183   :  { %10846 = vmatprep.subr.bf16.mxu1 %v12808_v60 }
 0x185   :  { %1999 = vmatmul.mubr.f32.vlgmr.msra.gmra.mrb[2].mxu1 %v12677_v55  ;;  %v2081_v55 = vand.u32 4294901760, %v2080_v31  ;;  %v12894_v31 = vpack.c.bf16 %v12765_v56, %v12763_v62 }
 0x186   :  { %10848 = vmatpush1.bf16.msra.mxu1 %v12832_v41  ;;  %2149 = vmatprep.mubr.f32.mxu1 %v14411_v8 }
 0x187   :  { %10850 = vmatprep.subr.bf16.mxu1 %v12834_v20  ;;  %v12870_v33 = vpack.c.bf16 %v2093_v4, %v2081_v55  ;;  %14434 = vst [vmem:[#allocation58_spill] sm:$0xff] %v12894_v31  ;;  %v14439_v55 = vand.u32 4294901760, %v12726_v29  ;;  %v14440_v4 = vand.u32 4294901760, %v12728_v30  ;;  %v14448_v29 = vand.u32 4294901760, %v12763_v62 }
 0x188   :  { %v14449_v30 = vand.u32 4294901760, %v12765_v56  ;;  %v14455_v62 = vand.u32 4294901760, %v12797_v49  ;;  %v14457_v56 = vand.u32 4294901760, %v12802_v16  ;;  %v58_v49 = vlaneseq }
 0x189   :  { %14429 = vst [vmem:[#allocation53_spill] sm:$0xff] %v12870_v33  ;;  %v12932_v37 = vpack.c.bf16 %v14440_v4, %v14439_v55  ;;  %v12983_v4 = vpack.c.bf16 %v14461_v32, %v14460_v3 }
 0x18a   :  { %10852 = vmatpush1.bf16.msra.mxu1 %v12853_v45  ;;  %v12999_v16 = vshrl.u32 %v58_v49, 7  ;;  %v13015_v49 = vld [vmem:[#allocation6 + $0x6] ss:$0 sm:$0xff]  ;;  %v116_v45 = vld [vmem:[#allocation4 + $0xf0] sm:$0xff] }
 0x18b   :  { %10854 = vmatprep.subr.bf16.mxu1 %v12864_v22  ;;  %14441 = vst [vmem:[#allocation63_spill] sm:$0xff] %v12932_v37  ;;  %14462 = vst [vmem:[#allocation70_spill] sm:$0xff] %v12983_v4  ;;  %v114_v22 = vld [vmem:[#allocation4 + $0xe0] sm:$0xff] }
 0x18c   :  { %14463 = vst [vmem:[#allocation71_spill] sm:$0xff] %v12999_v16  ;;  %v14205_v19 = vsub.s32 0, %v12999_v16  ;;  %14466 = vst [vmem:[#allocation74_spill] sm:$0xff] %v13015_v49 }
 0x18e   :  { %10856 = vmatpush1.bf16.msra.mxu1 %v12867_v63 }
 0x18f   :  { %10858 = vmatprep.subr.bf16.mxu1 %v12870_v33 }
 0x192   :  { %10860 = vmatpush1.bf16.msra.mxu1 %v12873_v23  ;;  %v117_v23 = vld [vmem:[#allocation4 + $0xf8] sm:$0xff] }
 0x193   :  { %10862 = vmatprep.subr.bf16.mxu1 %v12878_v44  ;;  %v115_v44 = vld [vmem:[#allocation4 + $0xe8] sm:$0xff]  ;;  %v1294_v63 = vand.u32 4294901760, %v117_v23 }
 0x194   :  { %v1290_v33 = vand.u32 4294901760, %v115_v44 }
 0x195   :  { %2151 = vmatmul.mubr.f32.vlgmr.msra.gmra.mrb[2].mxu1 %v12654_v28 }
 0x196   :  { %10864 = vmatpush1.bf16.msra.mxu1 %v12883_v1  ;;  %2253 = vmatprep.mubr.f32.mxu1 %v14411_v8 }
 0x197   :  { %10866 = vmatprep.subr.bf16.mxu1 %v12888_v59 }
 0x19a   :  { %10868 = vmatpush1.bf16.msra.mxu1 %v12894_v31 }
 0x19b   :  { %10870 = vmatprep.subr.bf16.mxu1 %v12900_v42 }
 0x19e   :  { %10872 = vmatpush1.bf16.msra.mxu1 %v12905_v15 }
 0x19f   :  { %10874 = vmatprep.subr.bf16.mxu1 %v12910_v47 }
 0x1a2   :  { %10876 = vmatpush1.bf16.msra.mxu1 %v12915_v27  ;;  %v14446_v27 = vand.u32 4294901760, %v12742_v7  ;;  %v12962_v7 = vpack.c.bf16 %v14452_v6, %v14451_v58 }
 0x1a3   :  { %10878 = vmatprep.subr.bf16.mxu1 %v12731_v35 }
 0x1a4   :  { %v12946_v47 = vpack.c.bf16 %v14446_v27, %v14445_v11  ;;  %14453 = vst [vmem:[#allocation67_spill] sm:$0xff] %v12962_v7  ;;  %v14458_v27 = vand.u32 4294901760, %v12804_v0 }
 0x1a5   :  { %2256 = vmatmul.mubr.f32.vlgmr.msra.gmra.mrb[2].mxu1 %v12660_v25  ;;  %v14442_v25 = vand.u32 4294901760, %v12736_v46  ;;  %v12954_v46 = vpack.c.bf16 %v14449_v30, %v14448_v29 }
 0x1a6   :  { %10880 = vmatpush1.bf16.msra.mxu1 %v12745_v9  ;;  %2342 = vmatprep.mubr.f32.mxu1 %v14411_v8  ;;  %14447 = vst [vmem:[#allocation65_spill] sm:$0xff] %v12946_v47  ;;  %v12976_v55 = vpack.c.bf16 %v14458_v27, %v14457_v56 }
 0x1a7   :  { %10882 = vmatprep.subr.bf16.mxu1 %v12748_v2  ;;  %v12939_v34 = vpack.c.bf16 %v14443_v12, %v14442_v25  ;;  %14450 = vst [vmem:[#allocation66_spill] sm:$0xff] %v12954_v46  ;;  %v14204_v25 = vsub.s32 1, %v12999_v16  ;;  %v13005_v12 = vrot.slane %v56_v26, %v14205_v19  ;;  %v13019_v19 = vld [vmem:[#allocation4 + $0x80] sm:$0xff] }
 0x1a8   :  { %14459 = vst [vmem:[#allocation69_spill] sm:$0xff] %v12976_v55 }
 0x1a9   :  { %14444 = vst [vmem:[#allocation64_spill] sm:$0xff] %v12939_v34  ;;  %14464 = vst [vmem:[#allocation72_spill] sm:$0xff] %v13005_v12  ;;  %v13009_v29 = vrot.slane %v56_v26, %v14204_v25 }
 0x1aa   :  { %10884 = vmatpush1.bf16.msra.mxu1 %v12750_v40 }
 0x1ab   :  { %10886 = vmatprep.subr.bf16.mxu1 %v12768_v21  ;;  %14465 = vst [vmem:[#allocation73_spill] sm:$0xff] %v13009_v29 }
 0x1ae   :  { %10888 = vmatpush1.bf16.msra.mxu1 %v12791_v39 }
 0x1af   :  { %10890 = vmatprep.subr.bf16.mxu1 %v12793_v14 }
 0x1b2   :  { %10892 = vmatpush1.bf16.msra.mxu1 %v12806_v5 }
 0x1b3   :  { %10894 = vmatprep.subr.bf16.mxu1 %v12932_v37  ;;  %v112_v37 = vld [vmem:[#allocation4 + $0xd0] sm:$0xff] }
 0x1b4   :  { %v1288_v42 = vand.u32 4294901760, %v112_v37 }
 0x1b5   :  { %2346 = vmatmul.mubr.f32.vlgmr.msra.gmra.mrb[2].mxu1 %v12665_v38  ;;  %v14454_v38 = vand.u32 4294901760, %v12795_v36 }
 0x1b6   :  { %10896 = vmatpush1.bf16.msra.mxu1 %v12939_v34  ;;  %2464 = vmatprep.mubr.f32.mxu1 %v14411_v8 }
 0x1b7   :  { %10898 = vmatprep.subr.bf16.mxu1 %v12946_v47  ;;  %v12969_v11 = vpack.c.bf16 %v14455_v62, %v14454_v38 }
 0x1b9   :  { %14456 = vst [vmem:[#allocation68_spill] sm:$0xff] %v12969_v11 }
 0x1ba   :  { %10900 = vmatpush1.bf16.msra.mxu1 %v12954_v46 }
 0x1bb   :  { %10902 = vmatprep.subr.bf16.mxu1 %v12962_v7  ;;  %v14468_v7 = vand.u32 4294901760, %v13019_v19 }
 0x1be   :  { %10904 = vmatpush1.bf16.msra.mxu1 %v12969_v11 }
 0x1bf   :  { %10906 = vmatprep.subr.bf16.mxu1 %v12976_v55 }
 0x1c2   :  { %10908 = vmatpush1.bf16.msra.mxu1 %v12983_v4 }
 0x1c3   :  { %10910 = vmatprep.subr.bf16.mxu1 %v12731_v35 }
 0x1c5   :  { %2466 = vmatmul.mubr.f32.vlgmr.msra.gmra.mrb[2].mxu1 %v12654_v28 }
 0x1c6   :  { %10912 = vmatpush1.bf16.msra.mxu1 %v12745_v9  ;;  %2552 = vmatprep.mubr.f32.mxu1 %v14411_v8  ;;  %v1443_v9 = vsub.f32 %v117_v23, %v1294_v63 }
 0x1c7   :  { %10914 = vmatprep.subr.bf16.mxu1 %v12748_v2  ;;  %v1431_v2 = vsub.f32 %v115_v44, %v1290_v33 }
 0x1ca   :  { %10916 = vmatpush1.bf16.msra.mxu1 %v12750_v40 }
 0x1cb   :  { %10918 = vmatprep.subr.bf16.mxu1 %v12768_v21 }
 0x1ce   :  { %10920 = vmatpush1.bf16.msra.mxu1 %v12791_v39 }
 0x1cf   :  { %10922 = vmatprep.subr.bf16.mxu1 %v12793_v14 }
 0x1d2   :  { %10924 = vmatpush1.bf16.msra.mxu1 %v12806_v5 }
 0x1d5   :  { %2554 = vmatmul.mubr.f32.vlgmr.msra.gmra.mrb[2].mxu1 %v12654_v28 }
 0x1d6   :  { %3328 = vmatprep.mubr.f32.mxu1 %v14411_v8 }
 0x22e   :  { %v833_v0 = vpop.f32.mrb[2].mxu0 }
 0x22f   :  { %v835_v36 = vpop.f32.mrb[3].mxu0  ;;  %v12078_v28 = vadd.f32 %v833_v0, %v13005_v12  ;;  %v103_v0 = vld [vmem:[#allocation4 + $0x88] sm:$0xff] }
 0x230   :  { %v12080_v30 = vadd.f32 %v835_v36, %v13009_v29  ;;  %v105_v36 = vld [vmem:[#allocation4 + $0x98] sm:$0xff] }
 0x248   :  { %v1236_v58 = vpop.f32.mrb[0].mxu1 }
 0x249   :  { %v12079_v6 = vadd.f32 %v12078_v28, %v1236_v58  ;;  %v1238_v38 = vpop.f32.mrb[1].mxu1  ;;  %v1266_v28 = vand.u32 4294901760, %v103_v0  ;;  %v13021_v58 = vld [vmem:[#allocation4 + $0x90] sm:$0xff] }
 0x24a   :  { %v12081_v62 = vadd.f32 %v12080_v30, %v1238_v38  ;;  %v1270_v30 = vand.u32 4294901760, %v105_v36  ;;  %v13024_v38 = vld [vmem:[#allocation4 + $0xa8] sm:$0xff] }
 0x24b   :  { %v10583_v56 = vmul.f32 -1.442695, %v12079_v6  ;;  %v13074_v59 = vsub.f32 %v103_v0, %v1266_v28  ;;  %v1292_v0 = vand.u32 4294901760, %v114_v22 }
 0x24c   :  { %v13035_v4 = vpack.c.bf16 %v1270_v30, %v1266_v28 }
 0x24d   :  { %12266 = vpow2.f32 %v10583_v56  ;;  %v13026_v56 = vld [vmem:[#allocation4 + $0xb8] sm:$0xff]  ;;  %v14262_v20 = vand.u32 4294901760, %v13074_v59 }
 0x24e   :  { %14467 = vst [vmem:[#allocation75_spill] sm:$0xff] %v13035_v4  ;;  %10734 = vmatprep.subr.bf16.mxu0 %v13035_v4  ;;  %11022 = vmatprep.subr.bf16.mxu1 %v13035_v4 }
 0x257   :  { %v12267_v27 = vpop.eup %12266 }
 0x258   :  { %v1244_v3 = vadd.f32 1.0, %v12267_v27  ;;  %v14224_v27 = vand.u32 4294901760, %v13021_v58 }
 0x25a   :  { %12268 = vrcp.f32 %v1244_v3  ;;  %v13031_v3 = vld [vmem:[#allocation4 + $0xa0] sm:$0xff]  ;;  %v13043_v46 = vpack.c.bf16 %v14224_v27, %v14468_v7 }
 0x25b   :  { %v14221_v55 = vand.u32 4294901760, %v13031_v3  ;;  %v110_v27 = vld [vmem:[#allocation4 + $0xc0] sm:$0xff] }
 0x25c   :  { %14469 = vst [vmem:[#allocation76_spill] sm:$0xff] %v13043_v46  ;;  %10736 = vmatpush1.bf16.msra.mxu0 %v13043_v46  ;;  %11024 = vmatpush1.bf16.msra.mxu1 %v13043_v46  ;;  %v1284_v15 = vand.u32 4294901760, %v110_v27 }
 0x25e   :  { %v13078_v1 = vpack.c.bf16 %v1288_v42, %v1284_v15  ;;  %v1413_v39 = vsub.f32 %v110_v27, %v1284_v15 }
 0x260   :  { %14475 = vst [vmem:[#allocation82_spill] sm:$0xff] %v13078_v1 }
 0x264   :  { %v13013_v32 = vpop.eup %12268 }
 0x265   :  { %v1247_v26 = vmul.f32 %v13013_v32, %v12081_v62  ;;  %v14223_v62 = vand.u32 4294901760, %v13024_v38  ;;  %v1250_v16 = vsub.f32 1.0, %v13013_v32 }
 0x267   :  { %v1248_v25 = vadd.f32 %v1247_v26, %v13015_v49  ;;  %v13033_v26 = vld [vmem:[#allocation4 + $0xb0] sm:$0xff]  ;;  %v1361_v49 = vsub.f32 %v13074_v59, %v14262_v20 }
 0x268   :  { %v14220_v6 = vand.u32 4294901760, %v13033_v26 }
 0x269   :  { %12270 = vtanh.f32 %v1248_v25  ;;  %v14222_v25 = vand.u32 4294901760, %v13026_v56 }
 0x26a   :  { %v13058_v34 = vpack.c.bf16 %v14220_v6, %v14221_v55  ;;  %v111_v6 = vld [vmem:[#allocation4 + $0xc8] sm:$0xff]  ;;  %v113_v55 = vld [vmem:[#allocation4 + $0xd8] sm:$0xff] }
 0x26b   :  { %v13049_v47 = vpack.c.bf16 %v14222_v25, %v14223_v62  ;;  %v1282_v25 = vand.u32 4294901760, %v111_v6  ;;  %v1286_v62 = vand.u32 4294901760, %v113_v55 }
 0x26c   :  { %14471 = vst [vmem:[#allocation78_spill] sm:$0xff] %v13058_v34 }
 0x26d   :  { %14470 = vst [vmem:[#allocation77_spill] sm:$0xff] %v13049_v47  ;;  %10738 = vmatprep.subr.bf16.mxu0 %v13049_v47  ;;  %11026 = vmatprep.subr.bf16.mxu1 %v13049_v47  ;;  %v13072_v31 = vpack.c.bf16 %v1286_v62, %v1282_v25 }
 0x26e   :  { %10740 = vmatpush1.bf16.msra.mxu0 %v13058_v34  ;;  %11028 = vmatpush1.bf16.msra.mxu1 %v13058_v34 }
 0x26f   :  { %14474 = vst [vmem:[#allocation81_spill] sm:$0xff] %v13072_v31  ;;  %10742 = vmatprep.subr.bf16.mxu0 %v13072_v31  ;;  %11030 = vmatprep.subr.bf16.mxu1 %v13072_v31 }
 0x272   :  { %10744 = vmatpush1.bf16.msra.mxu0 %v13078_v1  ;;  %11032 = vmatpush1.bf16.msra.mxu1 %v13078_v1 }
 0x273   :  { %v12271_v11 = vpop.eup %12270 }
 0x274   :  { %1252 = vrot.lane.b32.xlu0 %v12271_v11, %s12413_s2 }
 0x278   :  { %1256 = vrot.lane.b32.xlu0 %v12645_v10, %s12413_s2  ;;  %v13076_v10 = vsub.f32 %v105_v36, %v1270_v30  ;;  %v1296_v36 = vand.u32 4294901760, %v116_v45  ;;  %v13086_v30 = vpack.c.bf16 %v1294_v63, %v1290_v33 }
 0x27a   :  { %v14265_v41 = vand.u32 4294901760, %v13076_v10  ;;  %14476 = vst [vmem:[#allocation83_spill] sm:$0xff] %v13086_v30  ;;  %v13094_v12 = vpack.c.bf16 %v1296_v36, %v1292_v0  ;;  %10746 = vmatprep.subr.bf16.mxu0 %v13086_v30  ;;  %11034 = vmatprep.subr.bf16.mxu1 %v13086_v30 }
 0x27c   :  { %v1373_v29 = vsub.f32 %v13076_v10, %v14265_v41  ;;  %10748 = vmatpush1.bf16.msra.mxu0 %v13094_v12  ;;  %11036 = vmatpush1.bf16.msra.mxu1 %v13094_v12 }
 0x2a8   :  { %v13068_v7 = vpop.f32.mrb[2].mxu1 }
 0x2a9   :  { %14472 = vst [vmem:[#allocation79_spill] sm:$0xff] %v13068_v7  ;;  %v13070_v11 = vpop.f32.mrb[3].mxu1  ;;  %v1374_v7 = vand.u32 4294901760, %v1373_v29  ;;  %v1419_v29 = vsub.f32 %v113_v55, %v1286_v62  ;;  %v1444_v62 = vand.u32 4294901760, %v1443_v9 }
 0x2aa   :  { %14473 = vst [vmem:[#allocation80_spill] sm:$0xff] %v13070_v11  ;;  %v1362_v11 = vand.u32 4294901760, %v1361_v49  ;;  %v1407_v49 = vsub.f32 %v111_v6, %v1282_v25  ;;  %v1449_v25 = vsub.f32 %v116_v45, %v1296_v36  ;;  %v13123_v45 = vpack.c.bf16 %v13076_v10, %v13074_v59 }
 0x2ab   :  { %v1420_v40 = vand.u32 4294901760, %v1419_v29 }
 0x2ac   :  { %v13103_v20 = vpack.c.bf16 %v1374_v7, %v1362_v11  ;;  %v1408_v21 = vand.u32 4294901760, %v1407_v49  ;;  %v1414_v7 = vand.u32 4294901760, %v1413_v39  ;;  %v1425_v11 = vsub.f32 %v112_v37, %v1288_v42  ;;  %14483 = vst [vmem:[#allocation90_spill] sm:$0xff] %v13123_v45 }
 0x2ad   :  { %v1445_v42 = vsub.f32 %v1443_v9, %v1444_v62  ;;  %v1450_v37 = vand.u32 4294901760, %v1449_v25  ;;  %v13125_v36 = vpack.c.bf16 %v1419_v29, %v1407_v49 }
 0x2ae   :  { %14478 = vst [vmem:[#allocation85_spill] sm:$0xff] %v13103_v20  ;;  %10750 = vmatprep.subr.bf16.mxu0 %v13103_v20  ;;  %11038 = vmatprep.subr.bf16.mxu1 %v13103_v20 }
 0x2af   :  { %v1446_v23 = vand.u32 4294901760, %v1445_v42  ;;  %v1451_v63 = vsub.f32 %v1449_v25, %v1450_v37  ;;  %14484 = vst [vmem:[#allocation91_spill] sm:$0xff] %v13125_v36 }
 0x2e6   :  { %v1253_v28 = vpop.permute.xlu0 %1252 }
 0x2e7   :  { %v1255_v5 = vmul.f32 %v1253_v28, %v1250_v16  ;;  %v1409_v16 = vsub.f32 %v1407_v49, %v1408_v21  ;;  %v1421_v28 = vsub.f32 %v1419_v29, %v1420_v40  ;;  %v14499_v29 = vand.u32 4294901760, %v13031_v3 }
 0x2e9   :  { %v1410_v6 = vand.u32 4294901760, %v1409_v16  ;;  %v1422_v55 = vand.u32 4294901760, %v1421_v28 }
 0x2ea   :  { %v13101_v60 = vpop.permute.xlu0 %1256 }
 0x2eb   :  { %14477 = vst [vmem:[#allocation84_spill] sm:$0xff] %v13101_v60  ;;  %v1259_v41 = vmul.f32 %v13013_v32, %v13101_v60  ;;  %v1415_v32 = vsub.f32 %v1413_v39, %v1414_v7  ;;  %v1426_v60 = vand.u32 4294901760, %v1425_v11  ;;  %v13113_v20 = vpack.c.bf16 %v1422_v55, %v1410_v6 }
 0x2ec   :  { %v14488_v6 = vand.u32 4294901760, %v13074_v59 }
 0x2ed   :  { %v13108_v14 = vadd.f32 %v1259_v41, %v1255_v5  ;;  %v1432_v5 = vand.u32 4294901760, %v1431_v2  ;;  %v1437_v41 = vsub.f32 %v114_v22, %v1292_v0  ;;  %v1416_v15 = vand.u32 4294901760, %v1415_v32 }
 0x2ee   :  { %v1427_v27 = vsub.f32 %v1425_v11, %v1426_v60  ;;  %v1452_v22 = vand.u32 4294901760, %v1451_v63  ;;  %v13127_v32 = vpack.c.bf16 %v1425_v11, %v1413_v39  ;;  %v14495_v39 = vand.u32 4294901760, %v13019_v19 }
 0x2ef   :  { %14479 = vst [vmem:[#allocation86_spill] sm:$0xff] %v13108_v14  ;;  %1262 = vrot.lane.b32.xlu1 %v13108_v14, %s12413_s2  ;;  %v1433_v35 = vsub.f32 %v1431_v2, %v1432_v5  ;;  %v1438_v14 = vand.u32 4294901760, %v1437_v41  ;;  %v13143_v42 = vpack.c.bf16 %v1444_v62, %v1432_v5 }
 0x2f0   :  { %v1428_v61 = vand.u32 4294901760, %v1427_v27  ;;  %14485 = vst [vmem:[#allocation92_spill] sm:$0xff] %v13127_v32  ;;  %v13141_v27 = vpack.c.bf16 %v1426_v60, %v1414_v7  ;;  %v14498_v60 = vand.u32 4294901760, %v13026_v56  ;;  %v13172_v7 = vsub.f32 %v13031_v3, %v14499_v29 }
 0x2f1   :  { %v1434_v48 = vand.u32 4294901760, %v1433_v35  ;;  %v1439_v33 = vsub.f32 %v1437_v41, %v1438_v14  ;;  %v13129_v35 = vpack.c.bf16 %v1443_v9, %v1431_v2  ;;  %14493 = vst [vmem:[#allocation98_spill] sm:$0xff] %v13143_v42  ;;  %v13145_v49 = vpack.c.bf16 %v1450_v37, %v1438_v14 }
 0x2f2   :  { %v13115_v44 = vpack.c.bf16 %v1428_v61, %v1416_v15  ;;  %v13131_v61 = vpack.c.bf16 %v1449_v25, %v1437_v41  ;;  %v13139_v15 = vpack.c.bf16 %v1420_v40, %v1408_v21  ;;  %14492 = vst [vmem:[#allocation97_spill] sm:$0xff] %v13141_v27  ;;  %v13150_v2 = vsub.f32 %v13019_v19, %v14495_v39 }
 0x2f3   :  { %v1440_v16 = vand.u32 4294901760, %v1439_v33  ;;  %v13117_v28 = vpack.c.bf16 %v1446_v23, %v1434_v48  ;;  %14486 = vst [vmem:[#allocation93_spill] sm:$0xff] %v13129_v35  ;;  %v14489_v48 = vand.u32 4294901760, %v13076_v10  ;;  %14494 = vst [vmem:[#allocation99_spill] sm:$0xff] %v13145_v49  ;;  %v14496_v9 = vand.u32 4294901760, %v13021_v58 }
 0x2f4   :  { %14480 = vst [vmem:[#allocation87_spill] sm:$0xff] %v13115_v44  ;;  %14487 = vst [vmem:[#allocation94_spill] sm:$0xff] %v13131_v61  ;;  %v14497_v10 = vand.u32 4294901760, %v13024_v38  ;;  %v13165_v21 = vsub.f32 %v13026_v56, %v14498_v60  ;;  %v1366_v14 = vand.u32 4294901760, %v13150_v2  ;;  %v1390_v37 = vand.u32 4294901760, %v13172_v7 }
 0x2f5   :  { %14481 = vst [vmem:[#allocation88_spill] sm:$0xff] %v13117_v28  ;;  %v13119_v0 = vpack.c.bf16 %v1452_v22, %v1440_v16  ;;  %v13137_v55 = vpack.c.bf16 %v14489_v48, %v14488_v6  ;;  %14491 = vst [vmem:[#allocation96_spill] sm:$0xff] %v13139_v15  ;;  %v13155_v59 = vsub.f32 %v13021_v58, %v14496_v9  ;;  %v14500_v58 = vand.u32 4294901760, %v13033_v26 }
 0x2f6   :  { %v13160_v40 = vsub.f32 %v13024_v38, %v14497_v10  ;;  %v1396_v5 = vand.u32 4294901760, %v13165_v21  ;;  %v1367_v41 = vsub.f32 %v13150_v2, %v1366_v14  ;;  %v1391_v6 = vsub.f32 %v13172_v7, %v1390_v37 }
 0x2f7   :  { %14482 = vst [vmem:[#allocation89_spill] sm:$0xff] %v13119_v0  ;;  %14490 = vst [vmem:[#allocation95_spill] sm:$0xff] %v13137_v55  ;;  %v1378_v19 = vand.u32 4294901760, %v13155_v59  ;;  %v13177_v11 = vsub.f32 %v13033_v26, %v14500_v58 }
 0x2f8   :  { %v1384_v38 = vand.u32 4294901760, %v13160_v40  ;;  %v1397_v23 = vsub.f32 %v13165_v21, %v1396_v5  ;;  %v1368_v16 = vand.u32 4294901760, %v1367_v41  ;;  %v1392_v58 = vand.u32 4294901760, %v1391_v6  ;;  %v14517_v6 = vld [vmem:[#allocation17_spill] sm:$0xff] }
 0x2f9   :  { %v1379_v25 = vsub.f32 %v13155_v59, %v1378_v19  ;;  %v1402_v3 = vand.u32 4294901760, %v13177_v11 }
 0x2fa   :  { %v1385_v26 = vsub.f32 %v13160_v40, %v1384_v38  ;;  %v1398_v10 = vand.u32 4294901760, %v1397_v23  ;;  %v13224_v23 = vpack.c.bf16 %v13165_v21, %v13160_v40  ;;  %v14507_v21 = vld [vmem:[#allocation33_spill] sm:$0xff] }
 0x2fb   :  { %v1380_v22 = vand.u32 4294901760, %v1379_v25  ;;  %v1403_v48 = vsub.f32 %v13177_v11, %v1402_v3  ;;  %v13256_v40 = vpack.c.bf16 %v1402_v3, %v1390_v37  ;;  %v14514_v37 = vld [vmem:[#allocation11_spill] sm:$0xff]  ;;  %v14515_v3 = vld [vmem:[#allocation12_spill] sm:$0xff] }
 0x2fc   :  { %v1386_v9 = vand.u32 4294901760, %v1385_v26  ;;  %v13219_v26 = vpack.c.bf16 %v13155_v59, %v13150_v2  ;;  %14502 = vst [vmem:[#allocation101_spill] sm:$0xff] %v13224_v23  ;;  %v13249_v2 = vpack.c.bf16 %v1378_v19, %v1366_v14  ;;  %v13252_v59 = vpack.c.bf16 %v1396_v5, %v1384_v38  ;;  %v14508_v14 = vld [vmem:[#allocation34_spill] sm:$0xff]  ;;  %v14509_v19 = vld [vmem:[#allocation24_spill] sm:$0xff]  ;;  %v14512_v38 = vld [vmem:[#allocation9_spill] sm:$0xff] }
 0x2fd   :  { %v13200_v29 = vpack.c.bf16 %v1380_v22, %v1368_v16  ;;  %v13230_v16 = vpack.c.bf16 %v13177_v11, %v13172_v7  ;;  %14506 = vst [vmem:[#allocation105_spill] sm:$0xff] %v13256_v40  ;;  %v14510_v7 = vld [vmem:[#allocation26_spill] sm:$0xff]  ;;  %v14511_v11 = vld [vmem:[#allocation27_spill] sm:$0xff]  ;;  %v14516_v22 = vld [vmem:[#allocation13_spill] sm:$0xff] }
 0x2fe   :  { %v13204_v41 = vpack.c.bf16 %v1398_v10, %v1386_v9  ;;  %14501 = vst [vmem:[#allocation100_spill] sm:$0xff] %v13219_v26  ;;  %14504 = vst [vmem:[#allocation103_spill] sm:$0xff] %v13249_v2  ;;  %v14513_v5 = vld [vmem:[#allocation10_spill] sm:$0xff]  ;;  %v14519_v9 = vld [vmem:[#allocation19_spill] sm:$0xff] }
 0x2ff   :  { %14503 = vst [vmem:[#allocation102_spill] sm:$0xff] %v13230_v16  ;;  %14505 = vst [vmem:[#allocation104_spill] sm:$0xff] %v13252_v59  ;;  %v14520_v10 = vld [vmem:[#allocation25_spill] sm:$0xff] }
 0x361   :  { %v1263_v56 = vpop.permute.xlu1 %1262 }
 0x362   :  { %v1264_v62 = vsel %vm590_vm3, %v1263_v56, 0  ;;  %v1404_v56 = vand.u32 4294901760, %v1403_v48  ;;  %v14518_v48 = vld [vmem:[#allocation18_spill] sm:$0xff] }
 0x363   :  { %v13186_v33 = vand.u32 4294901760, %v1264_v62 }
 0x364   :  { %v13208_v25 = vpack.c.bf16 %v1404_v56, %v1392_v58  ;;  %v14523_v58 = vld [vmem:[#allocation37_spill] sm:$0xff]  ;;  %v14524_v56 = vld [vmem:[#allocation38_spill] sm:$0xff] }
 0x365   :  { %v13191_v63 = vsub.f32 %v1264_v62, %v13186_v33 }
 0x367   :  { %v13196_v39 = vand.u32 4294901760, %v13191_v63 }
 0x369   :  { %v1350_v60 = vsub.f32 %v13191_v63, %v13196_v39 }
 0x36b   :  { %v13202_v62 = vand.u32 4294901760, %v1350_v60  ;;  %v14522_v60 = vld [vmem:[#allocation36_spill] sm:$0xff] }
 0x36d   :  { %1352 = vmatmul.mubr.f32.vlgmr.msra.gmra.mrb[4].mxu0 %v13202_v62 }
 0x36e   :  { %10752 = vmatpush1.bf16.msra.mxu0 %v13200_v29  ;;  %1502 = vmatprep.mubr.f32.mxu0 %v14411_v8 }
 0x36f   :  { %10754 = vmatprep.subr.bf16.mxu0 %v13204_v41 }
 0x372   :  { %10756 = vmatpush1.bf16.msra.mxu0 %v13208_v25 }
 0x373   :  { %10758 = vmatprep.subr.bf16.mxu0 %v13113_v20 }
 0x376   :  { %10760 = vmatpush1.bf16.msra.mxu0 %v13115_v44 }
 0x377   :  { %10762 = vmatprep.subr.bf16.mxu0 %v13117_v28 }
 0x37a   :  { %10764 = vmatpush1.bf16.msra.mxu0 %v13119_v0 }
 0x37b   :  { %10766 = vmatprep.subr.bf16.mxu0 %v13123_v45 }
 0x37d   :  { %1504 = vmatmul.mubr.f32.vlgmr.msra.gmra.mrb[4].mxu0 %v13186_v33 }
 0x37e   :  { %10768 = vmatpush1.bf16.msra.mxu0 %v13219_v26  ;;  %1606 = vmatprep.mubr.f32.mxu0 %v14411_v8 }
 0x37f   :  { %10770 = vmatprep.subr.bf16.mxu0 %v13224_v23 }
 0x382   :  { %10772 = vmatpush1.bf16.msra.mxu0 %v13230_v16 }
 0x383   :  { %10774 = vmatprep.subr.bf16.mxu0 %v13125_v36 }
 0x386   :  { %10776 = vmatpush1.bf16.msra.mxu0 %v13127_v32 }
 0x387   :  { %10778 = vmatprep.subr.bf16.mxu0 %v13129_v35 }
 0x38a   :  { %10780 = vmatpush1.bf16.msra.mxu0 %v13131_v61 }
 0x38b   :  { %10782 = vmatprep.subr.bf16.mxu0 %v13035_v4 }
 0x38d   :  { %1609 = vmatmul.mubr.f32.vlgmr.msra.gmra.mrb[4].mxu0 %v13191_v63 }
 0x38e   :  { %10784 = vmatpush1.bf16.msra.mxu0 %v13043_v46  ;;  %1695 = vmatprep.mubr.f32.mxu0 %v14411_v8 }
 0x38f   :  { %10786 = vmatprep.subr.bf16.mxu0 %v13049_v47 }
 0x392   :  { %10788 = vmatpush1.bf16.msra.mxu0 %v13058_v34 }
 0x393   :  { %10790 = vmatprep.subr.bf16.mxu0 %v13072_v31 }
 0x396   :  { %10792 = vmatpush1.bf16.msra.mxu0 %v13078_v1 }
 0x397   :  { %10794 = vmatprep.subr.bf16.mxu0 %v13086_v30 }
 0x39a   :  { %10796 = vmatpush1.bf16.msra.mxu0 %v13094_v12 }
 0x39b   :  { %10798 = vmatprep.subr.bf16.mxu0 %v13137_v55 }
 0x39d   :  { %1699 = vmatmul.mubr.f32.vlgmr.msra.gmra.mrb[4].mxu0 %v13196_v39 }
 0x39e   :  { %10800 = vmatpush1.bf16.msra.mxu0 %v13249_v2  ;;  %1817 = vmatprep.mubr.f32.mxu0 %v14411_v8 }
 0x39f   :  { %10802 = vmatprep.subr.bf16.mxu0 %v13252_v59 }
 0x3a2   :  { %10804 = vmatpush1.bf16.msra.mxu0 %v13256_v40 }
 0x3a3   :  { %10806 = vmatprep.subr.bf16.mxu0 %v13139_v15 }
 0x3a6   :  { %10808 = vmatpush1.bf16.msra.mxu0 %v13141_v27 }
 0x3a7   :  { %10810 = vmatprep.subr.bf16.mxu0 %v13143_v42 }
 0x3aa   :  { %10812 = vmatpush1.bf16.msra.mxu0 %v13145_v49 }
 0x3ab   :  { %10814 = vmatprep.subr.bf16.mxu0 %v13035_v4 }
 0x3ad   :  { %1819 = vmatmul.mubr.f32.vlgmr.msra.gmra.mrb[4].mxu0 %v13186_v33 }
 0x3ae   :  { %10816 = vmatpush1.bf16.msra.mxu0 %v13043_v46  ;;  %1905 = vmatprep.mubr.f32.mxu0 %v14411_v8 }
 0x3af   :  { %10818 = vmatprep.subr.bf16.mxu0 %v13049_v47 }
 0x3b2   :  { %10820 = vmatpush1.bf16.msra.mxu0 %v13058_v34 }
 0x3b3   :  { %10822 = vmatprep.subr.bf16.mxu0 %v13072_v31 }
 0x3b6   :  { %10824 = vmatpush1.bf16.msra.mxu0 %v13078_v1 }
 0x3b7   :  { %10826 = vmatprep.subr.bf16.mxu0 %v13086_v30 }
 0x3ba   :  { %10828 = vmatpush1.bf16.msra.mxu0 %v13094_v12 }
 0x3bb   :  { %10926 = vmatprep.subr.bf16.mxu0 %v12578_v50 }
 0x3bd   :  { %1907 = vmatmul.mubr.f32.vlgmr.msra.gmra.mrb[4].mxu0 %v13186_v33 }
 0x3be   :  { %10928 = vmatpush1.bf16.msra.mxu0 %v12587_v51  ;;  %2659 = vmatprep.mubr.f32.mxu0 %v14411_v8 }
 0x3bf   :  { %10930 = vmatprep.subr.bf16.mxu0 %v12589_v52 }
 0x3c2   :  { %10932 = vmatpush1.bf16.msra.mxu0 %v12592_v53 }
 0x3c3   :  { %10934 = vmatprep.subr.bf16.mxu0 %v12596_v54 }
 0x3c6   :  { %10936 = vmatpush1.bf16.msra.mxu0 %v12609_v13 }
 0x3c7   :  { %10938 = vmatprep.subr.bf16.mxu0 %v12616_v17 }
 0x3ca   :  { %10940 = vmatpush1.bf16.msra.mxu0 %v12618_v18 }
 0x3cb   :  { %10942 = vmatprep.subr.bf16.mxu0 %v12624_v24 }
 0x3cd   :  { %2665 = vmatmul.mubr.f32.vlgmr.msra.gmra.mrb[6].mxu0 %v13202_v62  ;;  %v14525_v62 = vld [vmem:[#allocation28_spill] sm:$0xff] }
 0x3ce   :  { %10944 = vmatpush1.bf16.msra.mxu0 %v12675_v43  ;;  %2815 = vmatprep.mubr.f32.mxu0 %v14411_v8 }
 0x3cf   :  { %10946 = vmatprep.subr.bf16.mxu0 %v12679_v57  ;;  %v13352_v57 = vld [vmem:[#allocation6 + $0x10] ss:$0 sm:$0xff] }
 0x3d2   :  { %10948 = vmatpush1.bf16.msra.mxu0 %v14507_v21 }
 0x3d3   :  { %10950 = vmatprep.subr.bf16.mxu0 %v14508_v14 }
 0x3d6   :  { %10952 = vmatpush1.bf16.msra.mxu0 %v14509_v19 }
 0x3d7   :  { %10954 = vmatprep.subr.bf16.mxu0 %v14510_v7 }
 0x3da   :  { %10956 = vmatpush1.bf16.msra.mxu0 %v14511_v11  ;;  %v14540_v11 = vld [vmem:[#allocation79_spill] sm:$0xff] }
 0x3db   :  { %10958 = vmatprep.subr.bf16.mxu0 %v14512_v38 }
 0x3dd   :  { %2817 = vmatmul.mubr.f32.vlgmr.msra.gmra.mrb[6].mxu0 %v13186_v33 }
 0x3de   :  { %10960 = vmatpush1.bf16.msra.mxu0 %v14513_v5  ;;  %2919 = vmatprep.mubr.f32.mxu0 %v14411_v8 }
 0x3df   :  { %10962 = vmatprep.subr.bf16.mxu0 %v14514_v37 }
 0x3e2   :  { %10964 = vmatpush1.bf16.msra.mxu0 %v14515_v3 }
 0x3e3   :  { %10966 = vmatprep.subr.bf16.mxu0 %v14516_v22 }
 0x3e6   :  { %10968 = vmatpush1.bf16.msra.mxu0 %v14517_v6  ;;  %v70_v6 = vld [vmem:[#allocation6 + $0x7] ss:$8 sm:$0x3] }
 0x3e7   :  { %10970 = vmatprep.subr.bf16.mxu0 %v14518_v48  ;;  %v14527_v48 = vld [vmem:[#allocation30_spill] sm:$0xff] }
 0x3ea   :  { %10972 = vmatpush1.bf16.msra.mxu0 %v14519_v9  ;;  %v14526_v9 = vld [vmem:[#allocation29_spill] sm:$0xff] }
 0x3eb   :  { %10974 = vmatprep.subr.bf16.mxu0 %v12578_v50 }
 0x3ed   :  { %2922 = vmatmul.mubr.f32.vlgmr.msra.gmra.mrb[6].mxu0 %v13191_v63  ;;  %v14521_v63 = vld [vmem:[#allocation35_spill] sm:$0xff] }
 0x3ee   :  { %10976 = vmatpush1.bf16.msra.mxu0 %v12587_v51  ;;  %3008 = vmatprep.mubr.f32.mxu0 %v14411_v8 }
 0x3ef   :  { %10978 = vmatprep.subr.bf16.mxu0 %v12589_v52 }
 0x3f2   :  { %10980 = vmatpush1.bf16.msra.mxu0 %v12592_v53 }
 0x3f3   :  { %10982 = vmatprep.subr.bf16.mxu0 %v12596_v54 }
 0x3f6   :  { %10984 = vmatpush1.bf16.msra.mxu0 %v12609_v13 }
 0x3f7   :  { %10986 = vmatprep.subr.bf16.mxu0 %v12616_v17 }
 0x3fa   :  { %10988 = vmatpush1.bf16.msra.mxu0 %v12618_v18 }
 0x3fb   :  { %10990 = vmatprep.subr.bf16.mxu0 %v14520_v10  ;;  %v14536_v10 = vld [vmem:[#allocation47_spill] sm:$0xff] }
 0x3fd   :  { %3012 = vmatmul.mubr.f32.vlgmr.msra.gmra.mrb[6].mxu0 %v13196_v39  ;;  %v14528_v39 = vld [vmem:[#allocation39_spill] sm:$0xff] }
 0x3fe   :  { %10992 = vmatpush1.bf16.msra.mxu0 %v14521_v63  ;;  %3130 = vmatprep.mubr.f32.mxu0 %v14411_v8  ;;  %v14535_v63 = vld [vmem:[#allocation46_spill] sm:$0xff] }
 0x3ff   :  { %10994 = vmatprep.subr.bf16.mxu0 %v14522_v60  ;;  %v14534_v60 = vld [vmem:[#allocation45_spill] sm:$0xff] }
 0x402   :  { %10996 = vmatpush1.bf16.msra.mxu0 %v14523_v58  ;;  %v14533_v58 = vld [vmem:[#allocation44_spill] sm:$0xff] }
 0x403   :  { %10998 = vmatprep.subr.bf16.mxu0 %v14524_v56  ;;  %v14532_v56 = vld [vmem:[#allocation43_spill] sm:$0xff] }
 0x406   :  { %11000 = vmatpush1.bf16.msra.mxu0 %v14525_v62  ;;  %v14531_v62 = vld [vmem:[#allocation42_spill] sm:$0xff] }
 0x407   :  { %11002 = vmatprep.subr.bf16.mxu0 %v14526_v9  ;;  %v14530_v9 = vld [vmem:[#allocation41_spill] sm:$0xff] }
 0x40a   :  { %11004 = vmatpush1.bf16.msra.mxu0 %v14527_v48  ;;  %v14529_v48 = vld [vmem:[#allocation40_spill] sm:$0xff] }
 0x40b   :  { %11006 = vmatprep.subr.bf16.mxu0 %v12578_v50 }
 0x40d   :  { %3132 = vmatmul.mubr.f32.vlgmr.msra.gmra.mrb[6].mxu0 %v13186_v33 }
 0x40e   :  { %11008 = vmatpush1.bf16.msra.mxu0 %v12587_v51  ;;  %3218 = vmatprep.mubr.f32.mxu0 %v14411_v8 }
 0x40f   :  { %11010 = vmatprep.subr.bf16.mxu0 %v12589_v52 }
 0x412   :  { %11012 = vmatpush1.bf16.msra.mxu0 %v12592_v53  ;;  %v14545_v53 = vld [vmem:[#allocation74_spill] sm:$0xff] }
 0x413   :  { %11014 = vmatprep.subr.bf16.mxu0 %v12596_v54 }
 0x416   :  { %11016 = vmatpush1.bf16.msra.mxu0 %v12609_v13 }
 0x417   :  { %11018 = vmatprep.subr.bf16.mxu0 %v12616_v17 }
 0x41a   :  { %11020 = vmatpush1.bf16.msra.mxu0 %v12618_v18 }
 0x41b   :  { %11118 = vmatprep.subr.bf16.mxu0 %v14528_v39 }
 0x41d   :  { %3220 = vmatmul.mubr.f32.vlgmr.msra.gmra.mrb[6].mxu0 %v13186_v33  ;;  %v14537_v33 = vld [vmem:[#allocation71_spill] sm:$0xff] }
 0x41e   :  { %11120 = vmatpush1.bf16.msra.mxu0 %v14529_v48  ;;  %3980 = vmatprep.mubr.f32.mxu0 %v14411_v8  ;;  %v14538_v22 = vsub.s32 0, %v14537_v33 }
 0x41f   :  { %11122 = vmatprep.subr.bf16.mxu0 %v14530_v9 }
 0x420   :  { %v13348_v3 = vrot.slane %v70_v6, %v14538_v22  ;;  %v14542_v22 = vld [vmem:[#allocation80_spill] sm:$0xff] }
 0x421   :  { %v2567_v24 = vadd.f32 %v14542_v22, %v13352_v57 }
 0x422   :  { %11124 = vmatpush1.bf16.msra.mxu0 %v14531_v62  ;;  %14539 = vst [vmem:[#allocation39_spill] sm:$0xff] %v13348_v3 }
 0x423   :  { %11126 = vmatprep.subr.bf16.mxu0 %v14532_v56 }
 0x426   :  { %11128 = vmatpush1.bf16.msra.mxu0 %v14533_v58 }
 0x427   :  { %11130 = vmatprep.subr.bf16.mxu0 %v14534_v60 }
 0x42a   :  { %11132 = vmatpush1.bf16.msra.mxu0 %v14535_v63 }
 0x42b   :  { %11134 = vmatprep.subr.bf16.mxu0 %v14536_v10  ;;  %v14541_v10 = vsub.s32 1, %v14537_v33  ;;  %v14544_v33 = vld [vmem:[#allocation73_spill] sm:$0xff] }
 0x42d   :  { %v13356_v43 = vrot.slane %v70_v6, %v14541_v10 }
 0x490   :  { %v1908_v37 = vpop.f32.mrb[4].mxu0 }
 0x491   :  { %v12082_v5 = vadd.f32 %v1908_v37, %v13348_v3  ;;  %v1910_v38 = vpop.f32.mrb[5].mxu0 }
 0x492   :  { %v12083_v37 = vadd.f32 %v1910_v38, %v13356_v43 }
 0x493   :  { %v2560_v7 = vadd.f32 %v12082_v5, %v14540_v11 }
 0x495   :  { %v10584_v19 = vmul.f32 -1.442695, %v2560_v7  ;;  %v14543_v7 = vld [vmem:[#allocation72_spill] sm:$0xff] }
 0x497   :  { %12272 = vpow2.f32 %v10584_v19 }
 0x4a1   :  { %v12273_v14 = vpop.eup %12272 }
 0x4a2   :  { %v2564_v21 = vadd.f32 1.0, %v12273_v14 }
 0x4a4   :  { %12274 = vrcp.f32 %v2564_v21 }
 0x4ae   :  { %v12275_v18 = vpop.eup %12274 }
 0x4af   :  { %v2568_v3 = vmul.f32 %v12275_v18, %v2567_v24 }
 0x4b1   :  { %v2569_v17 = vadd.f32 %v12083_v37, %v2568_v3 }
 0x4f0   :  { %v3221_v11 = vpop.f32.mrb[6].mxu0 }
 0x4f1   :  { %v12084_v19 = vadd.f32 %v3221_v11, %v14543_v7  ;;  %v3223_v5 = vpop.f32.mrb[7].mxu0  ;;  %v14546_v11 = vld [vmem:[#allocation86_spill] sm:$0xff] }
 0x4f2   :  { %v12085_v6 = vadd.f32 %v3223_v5, %v14544_v33  ;;  %v2571_v5 = vsub.f32 1.0, %v12275_v18 }
 0x4f3   :  { %v10585_v14 = vmul.f32 -1.442695, %v12084_v19 }
 0x4f5   :  { %12276 = vpow2.f32 %v10585_v14 }
 0x4ff   :  { %v12277_v21 = vpop.eup %12276 }
 0x500   :  { %v3229_v13 = vadd.f32 1.0, %v12277_v21 }
 0x502   :  { %12278 = vrcp.f32 %v3229_v13 }
 0x50c   :  { %v12279_v10 = vpop.eup %12278 }
 0x50d   :  { %v3232_v54 = vmul.f32 %v12279_v10, %v12085_v6  ;;  %v3235_v3 = vsub.f32 1.0, %v12279_v10  ;;  %v3241_v19 = vmul.f32 %v12279_v10, %v14546_v11  ;;  %v14547_v6 = vld [vmem:[#allocation84_spill] sm:$0xff] }
 0x50e   :  { %v2577_v33 = vmul.f32 %v12275_v18, %v14547_v6  ;;  %v14549_v6 = vld [vmem:[#allocation48_spill] sm:$0xff] }
 0x50f   :  { %v3233_v22 = vadd.f32 %v3232_v54, %v14545_v53 }
 0x511   :  { %12280 = vtanh.f32 %v3233_v22 }
 0x512   :  { %12282 = vtanh.f32 %v2569_v17 }
 0x51b   :  { %v12281_v38 = vpop.eup %12280 }
 0x51c   :  { %3237 = vrot.lane.b32.xlu1 %v12281_v38, %s12413_s2  ;;  %v12283_v24 = vpop.eup %12282 }
 0x520   :  { %2573 = vrot.lane.b32.xlu1 %v12283_v24, %s12413_s2 }
 0x58e   :  { %v3238_v37 = vpop.permute.xlu1 %3237 }
 0x58f   :  { %v3240_v14 = vmul.f32 %v3238_v37, %v3235_v3 }
 0x591   :  { %v13367_v13 = vadd.f32 %v3241_v19, %v3240_v14 }
 0x592   :  { %v2574_v21 = vpop.permute.xlu1 %2573 }
 0x593   :  { %v2576_v53 = vmul.f32 %v2574_v21, %v2571_v5  ;;  %3244 = vrot.lane.b32.xlu0 %v13367_v13, %s12413_s2 }
 0x595   :  { %v13372_v54 = vadd.f32 %v2577_v33, %v2576_v53  ;;  %v14550_v53 = vld [vmem:[#allocation49_spill] sm:$0xff] }
 0x597   :  { %14548 = vst [vmem:[#allocation40_spill] sm:$0xff] %v13372_v54  ;;  %3896 = vrot.lane.b32.xlu0 %v13372_v54, %s12413_s2 }
 0x605   :  { %v3245_v17 = vpop.permute.xlu0 %3244 }
 0x606   :  { %v3246_v22 = vsel %vm590_vm3, %v3245_v17, 0  ;;  %v14551_v17 = vld [vmem:[#allocation50_spill] sm:$0xff] }
 0x607   :  { %v13377_v10 = vand.u32 4294901760, %v3246_v22 }
 0x609   :  { %v13380_v38 = vsub.f32 %v3246_v22, %v13377_v10  ;;  %v3897_v24 = vpop.permute.xlu0 %3896  ;;  %v14552_v22 = vld [vmem:[#allocation51_spill] sm:$0xff] }
 0x60a   :  { %v3898_v18 = vsel %vm590_vm3, %v3897_v24, 0  ;;  %v14553_v24 = vld [vmem:[#allocation52_spill] sm:$0xff] }
 0x60b   :  { %v13384_v3 = vand.u32 4294901760, %v13380_v38  ;;  %v13386_v37 = vand.u32 4294901760, %v3898_v18 }
 0x60d   :  { %v13389_v33 = vsub.f32 %v3898_v18, %v13386_v37  ;;  %v3332_v11 = vsub.f32 %v13380_v38, %v13384_v3  ;;  %v14554_v18 = vld [vmem:[#allocation53_spill] sm:$0xff] }
 0x60f   :  { %v14306_v19 = vand.u32 4294901760, %v13389_v33  ;;  %v13394_v14 = vand.u32 4294901760, %v3332_v11  ;;  %v14555_v11 = vld [vmem:[#allocation54_spill] sm:$0xff] }
 0x611   :  { %v3984_v5 = vsub.f32 %v13389_v33, %v14306_v19  ;;  %3334 = vmatmul.mubr.f32.vlgmr.msra.gmra.mrb[4].mxu1 %v13394_v14  ;;  %v14558_v19 = vld [vmem:[#allocation57_spill] sm:$0xff] }
 0x612   :  { %11040 = vmatpush1.bf16.msra.mxu1 %v13200_v29  ;;  %3484 = vmatprep.mubr.f32.mxu1 %v14411_v8 }
 0x613   :  { %v3985_v21 = vand.u32 4294901760, %v3984_v5  ;;  %11042 = vmatprep.subr.bf16.mxu1 %v13204_v41  ;;  %v14556_v5 = vld [vmem:[#allocation55_spill] sm:$0xff] }
 0x615   :  { %3986 = vmatmul.mubr.f32.vlgmr.msra.gmra.mrb[8].mxu0 %v3985_v21  ;;  %v14557_v21 = vld [vmem:[#allocation56_spill] sm:$0xff] }
 0x616   :  { %11044 = vmatpush1.bf16.msra.mxu1 %v13208_v25  ;;  %11136 = vmatpush1.bf16.msra.mxu0 %v14549_v6 }
 0x617   :  { %11046 = vmatprep.subr.bf16.mxu1 %v13113_v20  ;;  %11138 = vmatprep.subr.bf16.mxu0 %v14550_v53 }
 0x618   :  { %4136 = vmatprep.mubr.f32.mxu0 %v14411_v8 }
 0x61a   :  { %11048 = vmatpush1.bf16.msra.mxu1 %v13115_v44  ;;  %11140 = vmatpush1.bf16.msra.mxu0 %v14551_v17 }
 0x61b   :  { %11050 = vmatprep.subr.bf16.mxu1 %v13117_v28  ;;  %11142 = vmatprep.subr.bf16.mxu0 %v14552_v22 }
 0x61e   :  { %11052 = vmatpush1.bf16.msra.mxu1 %v13119_v0  ;;  %11144 = vmatpush1.bf16.msra.mxu0 %v14553_v24 }
 0x61f   :  { %11054 = vmatprep.subr.bf16.mxu1 %v13123_v45  ;;  %11146 = vmatprep.subr.bf16.mxu0 %v14554_v18 }
 0x621   :  { %3486 = vmatmul.mubr.f32.vlgmr.msra.gmra.mrb[4].mxu1 %v13377_v10 }
 0x622   :  { %11056 = vmatpush1.bf16.msra.mxu1 %v13219_v26  ;;  %11148 = vmatpush1.bf16.msra.mxu0 %v14555_v11  ;;  %v14559_v11 = vld [vmem:[#allocation58_spill] sm:$0xff] }
 0x623   :  { %11058 = vmatprep.subr.bf16.mxu1 %v13224_v23  ;;  %11150 = vmatprep.subr.bf16.mxu0 %v14556_v5  ;;  %v14560_v5 = vld [vmem:[#allocation59_spill] sm:$0xff]  ;;  %v14561_v23 = vld [vmem:[#allocation60_spill] sm:$0xff] }
 0x624   :  { %3588 = vmatprep.mubr.f32.mxu1 %v14411_v8 }
 0x625   :  { %4138 = vmatmul.mubr.f32.vlgmr.msra.gmra.mrb[8].mxu0 %v13386_v37 }
 0x626   :  { %11060 = vmatpush1.bf16.msra.mxu1 %v13230_v16  ;;  %11152 = vmatpush1.bf16.msra.mxu0 %v14557_v21  ;;  %v14562_v21 = vld [vmem:[#allocation61_spill] sm:$0xff] }
 0x627   :  { %11062 = vmatprep.subr.bf16.mxu1 %v13125_v36  ;;  %11154 = vmatprep.subr.bf16.mxu0 %v14558_v19  ;;  %v14563_v19 = vld [vmem:[#allocation62_spill] sm:$0xff] }
 0x628   :  { %4240 = vmatprep.mubr.f32.mxu0 %v14411_v8 }
 0x62a   :  { %11064 = vmatpush1.bf16.msra.mxu1 %v13127_v32  ;;  %11156 = vmatpush1.bf16.msra.mxu0 %v14559_v11 }
 0x62b   :  { %11066 = vmatprep.subr.bf16.mxu1 %v13129_v35  ;;  %11158 = vmatprep.subr.bf16.mxu0 %v14560_v5 }
 0x62e   :  { %11068 = vmatpush1.bf16.msra.mxu1 %v13131_v61  ;;  %11160 = vmatpush1.bf16.msra.mxu0 %v14561_v23  ;;  %v14567_v23 = vld [vmem:[#allocation65_spill] sm:$0xff] }
 0x62f   :  { %11070 = vmatprep.subr.bf16.mxu1 %v13035_v4  ;;  %11162 = vmatprep.subr.bf16.mxu0 %v14562_v21  ;;  %v14565_v21 = vand.u32 4294901760, %v13389_v33 }
 0x631   :  { %3591 = vmatmul.mubr.f32.vlgmr.msra.gmra.mrb[4].mxu1 %v13380_v38 }
 0x632   :  { %11072 = vmatpush1.bf16.msra.mxu1 %v13043_v46  ;;  %11164 = vmatpush1.bf16.msra.mxu0 %v14563_v19  ;;  %v14564_v19 = vld [vmem:[#allocation63_spill] sm:$0xff] }
 0x633   :  { %11074 = vmatprep.subr.bf16.mxu1 %v13049_v47  ;;  %11166 = vmatprep.subr.bf16.mxu0 %v14528_v39 }
 0x634   :  { %3677 = vmatprep.mubr.f32.mxu1 %v14411_v8 }
 0x635   :  { %4243 = vmatmul.mubr.f32.vlgmr.msra.gmra.mrb[8].mxu0 %v13389_v33  ;;  %v14570_v33 = vld [vmem:[#allocation68_spill] sm:$0xff] }
 0x636   :  { %11076 = vmatpush1.bf16.msra.mxu1 %v13058_v34  ;;  %11168 = vmatpush1.bf16.msra.mxu0 %v14529_v48 }
 0x637   :  { %11078 = vmatprep.subr.bf16.mxu1 %v13072_v31  ;;  %11170 = vmatprep.subr.bf16.mxu0 %v14530_v9 }
 0x638   :  { %4329 = vmatprep.mubr.f32.mxu0 %v14411_v8 }
 0x63a   :  { %11080 = vmatpush1.bf16.msra.mxu1 %v13078_v1  ;;  %11172 = vmatpush1.bf16.msra.mxu0 %v14531_v62 }
 0x63b   :  { %11082 = vmatprep.subr.bf16.mxu1 %v13086_v30  ;;  %11174 = vmatprep.subr.bf16.mxu0 %v14532_v56 }
 0x63e   :  { %11084 = vmatpush1.bf16.msra.mxu1 %v13094_v12  ;;  %11176 = vmatpush1.bf16.msra.mxu0 %v14533_v58 }
 0x63f   :  { %11086 = vmatprep.subr.bf16.mxu1 %v13137_v55  ;;  %11178 = vmatprep.subr.bf16.mxu0 %v14534_v60  ;;  %v14566_v55 = vld [vmem:[#allocation64_spill] sm:$0xff] }
 0x641   :  { %3681 = vmatmul.mubr.f32.vlgmr.msra.gmra.mrb[4].mxu1 %v13384_v3 }
 0x642   :  { %11088 = vmatpush1.bf16.msra.mxu1 %v13249_v2  ;;  %11180 = vmatpush1.bf16.msra.mxu0 %v14535_v63  ;;  %v14586_v2 = vld [vmem:[#allocation27_spill] sm:$0xff] }
 0x643   :  { %11090 = vmatprep.subr.bf16.mxu1 %v13252_v59  ;;  %11182 = vmatprep.subr.bf16.mxu0 %v14564_v19  ;;  %v14568_v59 = vld [vmem:[#allocation66_spill] sm:$0xff]  ;;  %v14569_v19 = vld [vmem:[#allocation67_spill] sm:$0xff] }
 0x644   :  { %3799 = vmatprep.mubr.f32.mxu1 %v14411_v8 }
 0x645   :  { %4333 = vmatmul.mubr.f32.vlgmr.msra.gmra.mrb[8].mxu0 %v14565_v21  ;;  %v14571_v21 = vld [vmem:[#allocation69_spill] sm:$0xff] }
 0x646   :  { %11092 = vmatpush1.bf16.msra.mxu1 %v13256_v40  ;;  %11184 = vmatpush1.bf16.msra.mxu0 %v14566_v55  ;;  %v14583_v55 = vld [vmem:[#allocation34_spill] sm:$0xff]  ;;  %v14584_v40 = vld [vmem:[#allocation24_spill] sm:$0xff] }
 0x647   :  { %11094 = vmatprep.subr.bf16.mxu1 %v13139_v15  ;;  %11186 = vmatprep.subr.bf16.mxu0 %v14567_v23  ;;  %v14572_v23 = vld [vmem:[#allocation70_spill] sm:$0xff]  ;;  %v14582_v15 = vld [vmem:[#allocation33_spill] sm:$0xff] }
 0x648   :  { %4451 = vmatprep.mubr.f32.mxu0 %v14411_v8 }
 0x64a   :  { %11096 = vmatpush1.bf16.msra.mxu1 %v13141_v27  ;;  %11188 = vmatpush1.bf16.msra.mxu0 %v14568_v59  ;;  %v14580_v59 = vld [vmem:[#allocation32_spill] sm:$0xff]  ;;  %v14581_v27 = vld [vmem:[#allocation85_spill] sm:$0xff] }
 0x64b   :  { %11098 = vmatprep.subr.bf16.mxu1 %v13143_v42  ;;  %11190 = vmatprep.subr.bf16.mxu0 %v14569_v19  ;;  %v14577_v19 = vld [vmem:[#allocation22_spill] sm:$0xff]  ;;  %v14579_v42 = vld [vmem:[#allocation31_spill] sm:$0xff] }
 0x64e   :  { %11100 = vmatpush1.bf16.msra.mxu1 %v13145_v49  ;;  %11192 = vmatpush1.bf16.msra.mxu0 %v14570_v33  ;;  %v14575_v33 = vld [vmem:[#allocation20_spill] sm:$0xff]  ;;  %v14576_v49 = vld [vmem:[#allocation21_spill] sm:$0xff] }
 0x64f   :  { %11102 = vmatprep.subr.bf16.mxu1 %v13035_v4  ;;  %11194 = vmatprep.subr.bf16.mxu0 %v14571_v21  ;;  %v14574_v21 = vld [vmem:[#allocation16_spill] sm:$0xff] }
 0x651   :  { %3801 = vmatmul.mubr.f32.vlgmr.msra.gmra.mrb[4].mxu1 %v13377_v10 }
 0x652   :  { %11104 = vmatpush1.bf16.msra.mxu1 %v13043_v46  ;;  %11196 = vmatpush1.bf16.msra.mxu0 %v14572_v23  ;;  %v14573_v23 = vld [vmem:[#allocation15_spill] sm:$0xff] }
 0x653   :  { %11106 = vmatprep.subr.bf16.mxu1 %v13049_v47  ;;  %11198 = vmatprep.subr.bf16.mxu0 %v14528_v39 }
 0x654   :  { %3887 = vmatprep.mubr.f32.mxu1 %v14411_v8 }
 0x655   :  { %4453 = vmatmul.mubr.f32.vlgmr.msra.gmra.mrb[8].mxu0 %v13386_v37 }
 0x656   :  { %11108 = vmatpush1.bf16.msra.mxu1 %v13058_v34  ;;  %11200 = vmatpush1.bf16.msra.mxu0 %v14529_v48 }
 0x657   :  { %11110 = vmatprep.subr.bf16.mxu1 %v13072_v31  ;;  %11202 = vmatprep.subr.bf16.mxu0 %v14530_v9 }
 0x658   :  { %4539 = vmatprep.mubr.f32.mxu0 %v14411_v8 }
 0x65a   :  { %11112 = vmatpush1.bf16.msra.mxu1 %v13078_v1  ;;  %11204 = vmatpush1.bf16.msra.mxu0 %v14531_v62 }
 0x65b   :  { %11114 = vmatprep.subr.bf16.mxu1 %v13086_v30  ;;  %11206 = vmatprep.subr.bf16.mxu0 %v14532_v56 }
 0x65e   :  { %11116 = vmatpush1.bf16.msra.mxu1 %v13094_v12  ;;  %11208 = vmatpush1.bf16.msra.mxu0 %v14533_v58 }
 0x65f   :  { %11210 = vmatprep.subr.bf16.mxu0 %v14534_v60  ;;  %11214 = vmatprep.subr.bf16.mxu1 %v12578_v50 }
 0x661   :  { %3889 = vmatmul.mubr.f32.vlgmr.msra.gmra.mrb[4].mxu1 %v13377_v10 }
 0x662   :  { %11212 = vmatpush1.bf16.msra.mxu0 %v14535_v63  ;;  %11216 = vmatpush1.bf16.msra.mxu1 %v12587_v51 }
 0x663   :  { %11218 = vmatprep.subr.bf16.mxu1 %v12589_v52  ;;  %4646 = vmatprep.mubr.f32.mxu1 %v14411_v8 }
 0x664   :  { %11310 = vmatprep.subr.bf16.mxu0 %v13035_v4 }
 0x665   :  { %4541 = vmatmul.mubr.f32.vlgmr.msra.gmra.mrb[8].mxu0 %v13386_v37  ;;  %v14578_v37 = vld [vmem:[#allocation23_spill] sm:$0xff] }
 0x666   :  { %11220 = vmatpush1.bf16.msra.mxu1 %v14573_v23  ;;  %11312 = vmatpush1.bf16.msra.mxu0 %v13043_v46 }
 0x667   :  { %11222 = vmatprep.subr.bf16.mxu1 %v14574_v21  ;;  %11314 = vmatprep.subr.bf16.mxu0 %v13049_v47 }
 0x668   :  { %5315 = vmatprep.mubr.f32.mxu0 %v14411_v8 }
 0x66a   :  { %11224 = vmatpush1.bf16.msra.mxu1 %v14575_v33  ;;  %11316 = vmatpush1.bf16.msra.mxu0 %v13058_v34 }
 0x66b   :  { %11226 = vmatprep.subr.bf16.mxu1 %v14576_v49  ;;  %11318 = vmatprep.subr.bf16.mxu0 %v13072_v31 }
 0x66e   :  { %11228 = vmatpush1.bf16.msra.mxu1 %v14577_v19  ;;  %11320 = vmatpush1.bf16.msra.mxu0 %v13078_v1 }
 0x66f   :  { %11230 = vmatprep.subr.bf16.mxu1 %v14578_v37  ;;  %11322 = vmatprep.subr.bf16.mxu0 %v13086_v30  ;;  %v14585_v37 = vld [vmem:[#allocation26_spill] sm:$0xff] }
 0x671   :  { %4652 = vmatmul.mubr.f32.vlgmr.msra.gmra.mrb[6].mxu1 %v13394_v14  ;;  %v14587_v14 = vld [vmem:[#allocation9_spill] sm:$0xff] }
 0x672   :  { %11232 = vmatpush1.bf16.msra.mxu1 %v14579_v42  ;;  %4802 = vmatprep.mubr.f32.mxu1 %v14411_v8  ;;  %v14588_v42 = vld [vmem:[#allocation10_spill] sm:$0xff] }
 0x673   :  { %11234 = vmatprep.subr.bf16.mxu1 %v14580_v59  ;;  %11324 = vmatpush1.bf16.msra.mxu0 %v13094_v12  ;;  %v14589_v59 = vld [vmem:[#allocation11_spill] sm:$0xff] }
 0x674   :  { %11326 = vmatprep.subr.bf16.mxu0 %v14581_v27  ;;  %v14590_v27 = vld [vmem:[#allocation12_spill] sm:$0xff] }
 0x676   :  { %11236 = vmatpush1.bf16.msra.mxu1 %v14582_v15  ;;  %v14591_v15 = vld [vmem:[#allocation13_spill] sm:$0xff] }
 0x677   :  { %11238 = vmatprep.subr.bf16.mxu1 %v14583_v55  ;;  %v14592_v55 = vld [vmem:[#allocation17_spill] sm:$0xff] }
 0x67a   :  { %11240 = vmatpush1.bf16.msra.mxu1 %v14584_v40  ;;  %v14593_v40 = vld [vmem:[#allocation18_spill] sm:$0xff] }
 0x67b   :  { %11242 = vmatprep.subr.bf16.mxu1 %v14585_v37  ;;  %v14594_v37 = vld [vmem:[#allocation19_spill] sm:$0xff] }
 0x67e   :  { %11244 = vmatpush1.bf16.msra.mxu1 %v14586_v2 }
 0x67f   :  { %11246 = vmatprep.subr.bf16.mxu1 %v14587_v14 }
 0x681   :  { %4804 = vmatmul.mubr.f32.vlgmr.msra.gmra.mrb[6].mxu1 %v13377_v10 }
 0x682   :  { %11248 = vmatpush1.bf16.msra.mxu1 %v14588_v42  ;;  %4906 = vmatprep.mubr.f32.mxu1 %v14411_v8  ;;  %v14602_v42 = vld [vmem:[#allocation30_spill] sm:$0xff] }
 0x683   :  { %11250 = vmatprep.subr.bf16.mxu1 %v14589_v59  ;;  %v14601_v59 = vld [vmem:[#allocation29_spill] sm:$0xff] }
 0x686   :  { %11252 = vmatpush1.bf16.msra.mxu1 %v14590_v27  ;;  %v14600_v27 = vld [vmem:[#allocation28_spill] sm:$0xff] }
 0x687   :  { %11254 = vmatprep.subr.bf16.mxu1 %v14591_v15  ;;  %v14599_v15 = vld [vmem:[#allocation38_spill] sm:$0xff] }
 0x68a   :  { %11256 = vmatpush1.bf16.msra.mxu1 %v14592_v55  ;;  %v14598_v55 = vld [vmem:[#allocation37_spill] sm:$0xff] }
 0x68b   :  { %11258 = vmatprep.subr.bf16.mxu1 %v14593_v40  ;;  %v14597_v40 = vld [vmem:[#allocation36_spill] sm:$0xff] }
 0x68e   :  { %11260 = vmatpush1.bf16.msra.mxu1 %v14594_v37  ;;  %v14595_v37 = vld [vmem:[#allocation25_spill] sm:$0xff] }
 0x68f   :  { %11262 = vmatprep.subr.bf16.mxu1 %v12578_v50 }
 0x691   :  { %4909 = vmatmul.mubr.f32.vlgmr.msra.gmra.mrb[6].mxu1 %v13380_v38  ;;  %v14596_v38 = vld [vmem:[#allocation35_spill] sm:$0xff] }
 0x692   :  { %11264 = vmatpush1.bf16.msra.mxu1 %v12587_v51  ;;  %4995 = vmatprep.mubr.f32.mxu1 %v14411_v8 }
 0x693   :  { %11266 = vmatprep.subr.bf16.mxu1 %v12589_v52 }
 0x696   :  { %11268 = vmatpush1.bf16.msra.mxu1 %v14573_v23 }
 0x697   :  { %11270 = vmatprep.subr.bf16.mxu1 %v14574_v21 }
 0x69a   :  { %11272 = vmatpush1.bf16.msra.mxu1 %v14575_v33 }
 0x69b   :  { %11274 = vmatprep.subr.bf16.mxu1 %v14576_v49 }
 0x69e   :  { %11276 = vmatpush1.bf16.msra.mxu1 %v14577_v19 }
 0x69f   :  { %11278 = vmatprep.subr.bf16.mxu1 %v14595_v37 }
 0x6a1   :  { %4999 = vmatmul.mubr.f32.vlgmr.msra.gmra.mrb[6].mxu1 %v13384_v3  ;;  %v14603_v3 = vld [vmem:[#allocation47_spill] sm:$0xff] }
 0x6a2   :  { %11280 = vmatpush1.bf16.msra.mxu1 %v14596_v38  ;;  %5117 = vmatprep.mubr.f32.mxu1 %v14411_v8 }
 0x6a3   :  { %11282 = vmatprep.subr.bf16.mxu1 %v14597_v40 }
 0x6a6   :  { %11284 = vmatpush1.bf16.msra.mxu1 %v14598_v55 }
 0x6a7   :  { %11286 = vmatprep.subr.bf16.mxu1 %v14599_v15 }
 0x6aa   :  { %11288 = vmatpush1.bf16.msra.mxu1 %v14600_v27 }
 0x6ab   :  { %11290 = vmatprep.subr.bf16.mxu1 %v14601_v59  ;;  %v14604_v59 = vld [vmem:[#allocation39_spill] sm:$0xff] }
 0x6ae   :  { %11292 = vmatpush1.bf16.msra.mxu1 %v14602_v42 }
 0x6af   :  { %11294 = vmatprep.subr.bf16.mxu1 %v12578_v50 }
 0x6b1   :  { %5119 = vmatmul.mubr.f32.vlgmr.msra.gmra.mrb[6].mxu1 %v13377_v10 }
 0x6b2   :  { %11296 = vmatpush1.bf16.msra.mxu1 %v12587_v51  ;;  %5205 = vmatprep.mubr.f32.mxu1 %v14411_v8 }
 0x6b3   :  { %11298 = vmatprep.subr.bf16.mxu1 %v12589_v52 }
 0x6b6   :  { %11300 = vmatpush1.bf16.msra.mxu1 %v14573_v23 }
 0x6b7   :  { %11302 = vmatprep.subr.bf16.mxu1 %v14574_v21 }
 0x6ba   :  { %11304 = vmatpush1.bf16.msra.mxu1 %v14575_v33 }
 0x6bb   :  { %11306 = vmatprep.subr.bf16.mxu1 %v14576_v49 }
 0x6be   :  { %11308 = vmatpush1.bf16.msra.mxu1 %v14577_v19 }
 0x6bf   :  { %11406 = vmatprep.subr.bf16.mxu1 %v14528_v39 }
 0x6c1   :  { %5207 = vmatmul.mubr.f32.vlgmr.msra.gmra.mrb[6].mxu1 %v13377_v10 }
 0x6c2   :  { %11408 = vmatpush1.bf16.msra.mxu1 %v14529_v48  ;;  %5967 = vmatprep.mubr.f32.mxu1 %v14411_v8 }
 0x6c3   :  { %11410 = vmatprep.subr.bf16.mxu1 %v14530_v9 }
 0x6c6   :  { %11412 = vmatpush1.bf16.msra.mxu1 %v14531_v62 }
 0x6c7   :  { %11414 = vmatprep.subr.bf16.mxu1 %v14532_v56 }
 0x6ca   :  { %11416 = vmatpush1.bf16.msra.mxu1 %v14533_v58 }
 0x6cb   :  { %11418 = vmatprep.subr.bf16.mxu1 %v14534_v60 }
 0x6ce   :  { %11420 = vmatpush1.bf16.msra.mxu1 %v14535_v63 }
 0x6cf   :  { %11422 = vmatprep.subr.bf16.mxu1 %v14603_v3 }
 0x734   :  { %v3890_v42 = vpop.f32.mrb[4].mxu1 }
 0x735   :  { %v3892_v10 = vpop.f32.mrb[5].mxu1  ;;  %v12086_v27 = vadd.f32 %v3890_v42, %v14604_v59  ;;  %v13584_v59 = vld [vmem:[#allocation6 + $0x6] ss:$0 sm:$0xff] }
 0x736   :  { %v12087_v49 = vadd.f32 %v3892_v10, %v13356_v43 }
 0x738   :  { %v4542_v15 = vpop.f32.mrb[8].mxu0 }
 0x739   :  { %v4547_v55 = vadd.f32 %v12086_v27, %v4542_v15  ;;  %v4544_v40 = vpop.f32.mrb[9].mxu0 }
 0x73a   :  { %v4554_v2 = vadd.f32 %v4544_v40, %v13352_v57 }
 0x73b   :  { %v10586_v38 = vmul.f32 -1.442695, %v4547_v55  ;;  %v14605_v55 = vld [vmem:[#allocation73_spill] sm:$0xff] }
 0x73d   :  { %12284 = vpow2.f32 %v10586_v38 }
 0x747   :  { %v12285_v37 = vpop.eup %12284 }
 0x748   :  { %v4551_v14 = vadd.f32 1.0, %v12285_v37 }
 0x74a   :  { %12286 = vrcp.f32 %v4551_v14 }
 0x754   :  { %v12287_v19 = vpop.eup %12286 }
 0x755   :  { %v4555_v33 = vmul.f32 %v12287_v19, %v4554_v2 }
 0x757   :  { %v4556_v21 = vadd.f32 %v12087_v49, %v4555_v33 }
 0x794   :  { %v5208_v3 = vpop.f32.mrb[6].mxu1 }
 0x795   :  { %v12088_v23 = vadd.f32 %v5208_v3, %v14543_v7  ;;  %v5210_v52 = vpop.f32.mrb[7].mxu1 }
 0x796   :  { %v12089_v38 = vadd.f32 %v5210_v52, %v14605_v55 }
 0x797   :  { %v10587_v42 = vmul.f32 -1.442695, %v12088_v23 }
 0x799   :  { %12288 = vpow2.f32 %v10587_v42  ;;  %v4558_v42 = vsub.f32 1.0, %v12287_v19 }
 0x7a3   :  { %v12289_v15 = vpop.eup %12288 }
 0x7a4   :  { %v5216_v27 = vadd.f32 1.0, %v12289_v15 }
 0x7a6   :  { %12290 = vrcp.f32 %v5216_v27  ;;  %v4564_v27 = vmul.f32 %v12287_v19, %v13372_v54  ;;  %v14616_v54 = vld [vmem:[#allocation103_spill] sm:$0xff] }
 0x7b0   :  { %v12291_v37 = vpop.eup %12290 }
 0x7b1   :  { %v5219_v14 = vmul.f32 %v12291_v37, %v12089_v38  ;;  %v5222_v23 = vsub.f32 1.0, %v12291_v37  ;;  %v5228_v3 = vmul.f32 %v12291_v37, %v13367_v13 }
 0x7b3   :  { %v5220_v40 = vadd.f32 %v13584_v59, %v5219_v14 }
 0x7b5   :  { %12292 = vtanh.f32 %v5220_v40 }
 0x7b6   :  { %12294 = vtanh.f32 %v4556_v21 }
 0x7bf   :  { %v12293_v49 = vpop.eup %12292 }
 0x7c0   :  { %5224 = vrot.lane.b32.xlu1 %v12293_v49, %s12413_s2  ;;  %v12295_v2 = vpop.eup %12294 }
 0x7c4   :  { %4560 = vrot.lane.b32.xlu1 %v12295_v2, %s12413_s2 }
 0x832   :  { %v5225_v33 = vpop.permute.xlu1 %5224 }
 0x833   :  { %v5227_v10 = vmul.f32 %v5225_v33, %v5222_v23 }
 0x835   :  { %v13590_v52 = vadd.f32 %v5228_v3, %v5227_v10 }
 0x836   :  { %v4561_v15 = vpop.permute.xlu1 %4560 }
 0x837   :  { %v4563_v38 = vmul.f32 %v4561_v15, %v4558_v42  ;;  %5231 = vrot.lane.b32.xlu0 %v13590_v52, %s12413_s2 }
 0x839   :  { %v13595_v21 = vadd.f32 %v4564_v27, %v4563_v38  ;;  %v14607_v38 = vld [vmem:[#allocation54_spill] sm:$0xff] }
 0x83b   :  { %14606 = vst [vmem:[#allocation41_spill] sm:$0xff] %v13595_v21  ;;  %5883 = vrot.lane.b32.xlu0 %v13595_v21, %s12413_s2 }
 0x8a9   :  { %v5232_v14 = vpop.permute.xlu0 %5231 }
 0x8aa   :  { %v5233_v40 = vsel %vm590_vm3, %v5232_v14, 0  ;;  %v14608_v14 = vld [vmem:[#allocation101_spill] sm:$0xff] }
 0x8ab   :  { %v13600_v13 = vand.u32 4294901760, %v5233_v40 }
 0x8ad   :  { %v13603_v37 = vsub.f32 %v5233_v40, %v13600_v13  ;;  %v5884_v49 = vpop.permute.xlu0 %5883  ;;  %v14609_v40 = vld [vmem:[#allocation55_spill] sm:$0xff] }
 0x8ae   :  { %v5885_v19 = vsel %vm590_vm3, %v5884_v49, 0  ;;  %v14610_v49 = vld [vmem:[#allocation56_spill] sm:$0xff] }
 0x8af   :  { %v13607_v2 = vand.u32 4294901760, %v13603_v37  ;;  %v13609_v23 = vand.u32 4294901760, %v5885_v19 }
 0x8b1   :  { %v13612_v33 = vsub.f32 %v5885_v19, %v13609_v23  ;;  %v5319_v3 = vsub.f32 %v13603_v37, %v13607_v2  ;;  %v14611_v19 = vld [vmem:[#allocation57_spill] sm:$0xff] }
 0x8b3   :  { %v14332_v10 = vand.u32 4294901760, %v13612_v33  ;;  %v13617_v42 = vand.u32 4294901760, %v5319_v3  ;;  %v14612_v3 = vld [vmem:[#allocation60_spill] sm:$0xff] }
 0x8b5   :  { %v5971_v15 = vsub.f32 %v13612_v33, %v14332_v10  ;;  %5321 = vmatmul.mubr.f32.vlgmr.msra.gmra.mrb[10].mxu0 %v13617_v42  ;;  %v14615_v10 = vld [vmem:[#allocation95_spill] sm:$0xff] }
 0x8b6   :  { %11328 = vmatpush1.bf16.msra.mxu0 %v13200_v29  ;;  %5471 = vmatprep.mubr.f32.mxu0 %v14411_v8 }
 0x8b7   :  { %v5972_v27 = vand.u32 4294901760, %v5971_v15  ;;  %11330 = vmatprep.subr.bf16.mxu0 %v13204_v41  ;;  %v14613_v15 = vld [vmem:[#allocation61_spill] sm:$0xff] }
 0x8b9   :  { %5973 = vmatmul.mubr.f32.vlgmr.msra.gmra.mrb[8].mxu1 %v5972_v27  ;;  %v14614_v27 = vld [vmem:[#allocation62_spill] sm:$0xff] }
 0x8ba   :  { %11332 = vmatpush1.bf16.msra.mxu0 %v13208_v25  ;;  %11424 = vmatpush1.bf16.msra.mxu1 %v14549_v6 }
 0x8bb   :  { %11334 = vmatprep.subr.bf16.mxu0 %v13113_v20  ;;  %11426 = vmatprep.subr.bf16.mxu1 %v14550_v53 }
 0x8bc   :  { %6123 = vmatprep.mubr.f32.mxu1 %v14411_v8 }
 0x8be   :  { %11336 = vmatpush1.bf16.msra.mxu0 %v13115_v44  ;;  %11428 = vmatpush1.bf16.msra.mxu1 %v14551_v17 }
 0x8bf   :  { %11338 = vmatprep.subr.bf16.mxu0 %v13117_v28  ;;  %11430 = vmatprep.subr.bf16.mxu1 %v14552_v22 }
 0x8c2   :  { %11340 = vmatpush1.bf16.msra.mxu0 %v13119_v0  ;;  %11432 = vmatpush1.bf16.msra.mxu1 %v14553_v24 }
 0x8c3   :  { %11342 = vmatprep.subr.bf16.mxu0 %v13123_v45  ;;  %11434 = vmatprep.subr.bf16.mxu1 %v14554_v18 }
 0x8c5   :  { %5473 = vmatmul.mubr.f32.vlgmr.msra.gmra.mrb[10].mxu0 %v13600_v13 }
 0x8c6   :  { %11344 = vmatpush1.bf16.msra.mxu0 %v13219_v26  ;;  %11436 = vmatpush1.bf16.msra.mxu1 %v14607_v38 }
 0x8c7   :  { %11346 = vmatprep.subr.bf16.mxu0 %v14608_v14  ;;  %11438 = vmatprep.subr.bf16.mxu1 %v14609_v40 }
 0x8c8   :  { %5575 = vmatprep.mubr.f32.mxu0 %v14411_v8 }
 0x8c9   :  { %6125 = vmatmul.mubr.f32.vlgmr.msra.gmra.mrb[8].mxu1 %v13609_v23 }
 0x8ca   :  { %11348 = vmatpush1.bf16.msra.mxu0 %v13230_v16  ;;  %11440 = vmatpush1.bf16.msra.mxu1 %v14610_v49 }
 0x8cb   :  { %11350 = vmatprep.subr.bf16.mxu0 %v13125_v36  ;;  %11442 = vmatprep.subr.bf16.mxu1 %v14611_v19 }
 0x8cc   :  { %6227 = vmatprep.mubr.f32.mxu1 %v14411_v8 }
 0x8ce   :  { %11352 = vmatpush1.bf16.msra.mxu0 %v13127_v32  ;;  %11444 = vmatpush1.bf16.msra.mxu1 %v14559_v11  ;;  %v14627_v11 = vld [vmem:[#allocation67_spill] sm:$0xff] }
 0x8cf   :  { %11354 = vmatprep.subr.bf16.mxu0 %v13129_v35  ;;  %11446 = vmatprep.subr.bf16.mxu1 %v14560_v5  ;;  %v14622_v5 = vld [vmem:[#allocation96_spill] sm:$0xff]  ;;  %v14623_v35 = vld [vmem:[#allocation65_spill] sm:$0xff] }
 0x8d2   :  { %11356 = vmatpush1.bf16.msra.mxu0 %v13131_v61  ;;  %11448 = vmatpush1.bf16.msra.mxu1 %v14612_v3  ;;  %v14619_v3 = vand.u32 4294901760, %v13612_v33  ;;  %v14620_v61 = vld [vmem:[#allocation105_spill] sm:$0xff] }
 0x8d3   :  { %11358 = vmatprep.subr.bf16.mxu0 %v13035_v4  ;;  %11450 = vmatprep.subr.bf16.mxu1 %v14613_v15  ;;  %v14618_v15 = vld [vmem:[#allocation63_spill] sm:$0xff] }
 0x8d5   :  { %5578 = vmatmul.mubr.f32.vlgmr.msra.gmra.mrb[10].mxu0 %v13603_v37 }
 0x8d6   :  { %11360 = vmatpush1.bf16.msra.mxu0 %v13043_v46  ;;  %11452 = vmatpush1.bf16.msra.mxu1 %v14614_v27  ;;  %v14617_v27 = vld [vmem:[#allocation104_spill] sm:$0xff] }
 0x8d7   :  { %11362 = vmatprep.subr.bf16.mxu0 %v13049_v47  ;;  %11454 = vmatprep.subr.bf16.mxu1 %v14528_v39 }
 0x8d8   :  { %5664 = vmatprep.mubr.f32.mxu0 %v14411_v8 }
 0x8d9   :  { %6230 = vmatmul.mubr.f32.vlgmr.msra.gmra.mrb[8].mxu1 %v13612_v33  ;;  %v14628_v33 = vld [vmem:[#allocation99_spill] sm:$0xff] }
 0x8da   :  { %11364 = vmatpush1.bf16.msra.mxu0 %v13058_v34  ;;  %11456 = vmatpush1.bf16.msra.mxu1 %v14529_v48 }
 0x8db   :  { %11366 = vmatprep.subr.bf16.mxu0 %v13072_v31  ;;  %11458 = vmatprep.subr.bf16.mxu1 %v14530_v9 }
 0x8dc   :  { %6316 = vmatprep.mubr.f32.mxu1 %v14411_v8 }
 0x8de   :  { %11368 = vmatpush1.bf16.msra.mxu0 %v13078_v1  ;;  %11460 = vmatpush1.bf16.msra.mxu1 %v14531_v62 }
 0x8df   :  { %11370 = vmatprep.subr.bf16.mxu0 %v13086_v30  ;;  %11462 = vmatprep.subr.bf16.mxu1 %v14532_v56 }
 0x8e2   :  { %11372 = vmatpush1.bf16.msra.mxu0 %v13094_v12  ;;  %11464 = vmatpush1.bf16.msra.mxu1 %v14533_v58 }
 0x8e3   :  { %11374 = vmatprep.subr.bf16.mxu0 %v14615_v10  ;;  %11466 = vmatprep.subr.bf16.mxu1 %v14534_v60  ;;  %v14621_v10 = vld [vmem:[#allocation64_spill] sm:$0xff] }
 0x8e5   :  { %5668 = vmatmul.mubr.f32.vlgmr.msra.gmra.mrb[10].mxu0 %v13607_v2 }
 0x8e6   :  { %11376 = vmatpush1.bf16.msra.mxu0 %v14616_v54  ;;  %11468 = vmatpush1.bf16.msra.mxu1 %v14535_v63  ;;  %v14624_v54 = vld [vmem:[#allocation97_spill] sm:$0xff] }
 0x8e7   :  { %11378 = vmatprep.subr.bf16.mxu0 %v14617_v27  ;;  %11470 = vmatprep.subr.bf16.mxu1 %v14618_v15  ;;  %v14625_v27 = vld [vmem:[#allocation66_spill] sm:$0xff] }
 0x8e8   :  { %5786 = vmatprep.mubr.f32.mxu0 %v14411_v8  ;;  %v14626_v15 = vld [vmem:[#allocation98_spill] sm:$0xff] }
 0x8e9   :  { %6320 = vmatmul.mubr.f32.vlgmr.msra.gmra.mrb[8].mxu1 %v14619_v3  ;;  %v14629_v3 = vld [vmem:[#allocation68_spill] sm:$0xff] }
 0x8ea   :  { %11380 = vmatpush1.bf16.msra.mxu0 %v14620_v61  ;;  %11472 = vmatpush1.bf16.msra.mxu1 %v14621_v10  ;;  %v14630_v10 = vld [vmem:[#allocation69_spill] sm:$0xff] }
 0x8eb   :  { %11382 = vmatprep.subr.bf16.mxu0 %v14622_v5  ;;  %11474 = vmatprep.subr.bf16.mxu1 %v14623_v35  ;;  %v14631_v35 = vld [vmem:[#allocation70_spill] sm:$0xff]  ;;  %v14641_v5 = vld [vmem:[#allocation85_spill] sm:$0xff] }
 0x8ec   :  { %6438 = vmatprep.mubr.f32.mxu1 %v14411_v8  ;;  %v14642_v61 = vld [vmem:[#allocation33_spill] sm:$0xff] }
 0x8ee   :  { %11384 = vmatpush1.bf16.msra.mxu0 %v14624_v54  ;;  %11476 = vmatpush1.bf16.msra.mxu1 %v14625_v27  ;;  %v14639_v27 = vld [vmem:[#allocation31_spill] sm:$0xff]  ;;  %v14640_v54 = vld [vmem:[#allocation32_spill] sm:$0xff] }
 0x8ef   :  { %11386 = vmatprep.subr.bf16.mxu0 %v14626_v15  ;;  %11478 = vmatprep.subr.bf16.mxu1 %v14627_v11  ;;  %v14636_v11 = vld [vmem:[#allocation21_spill] sm:$0xff]  ;;  %v14637_v15 = vld [vmem:[#allocation22_spill] sm:$0xff] }
 0x8f2   :  { %11388 = vmatpush1.bf16.msra.mxu0 %v14628_v33  ;;  %11480 = vmatpush1.bf16.msra.mxu1 %v14629_v3  ;;  %v14634_v3 = vld [vmem:[#allocation16_spill] sm:$0xff] }
 0x8f3   :  { %11390 = vmatprep.subr.bf16.mxu0 %v13035_v4  ;;  %11482 = vmatprep.subr.bf16.mxu1 %v14630_v10  ;;  %v14633_v10 = vld [vmem:[#allocation15_spill] sm:$0xff]  ;;  %v14635_v33 = vld [vmem:[#allocation20_spill] sm:$0xff] }
 0x8f5   :  { %5788 = vmatmul.mubr.f32.vlgmr.msra.gmra.mrb[10].mxu0 %v13600_v13 }
 0x8f6   :  { %11392 = vmatpush1.bf16.msra.mxu0 %v13043_v46  ;;  %11484 = vmatpush1.bf16.msra.mxu1 %v14631_v35  ;;  %v14632_v35 = vld [vmem:[#allocation14_spill] sm:$0xff] }
 0x8f7   :  { %11394 = vmatprep.subr.bf16.mxu0 %v13049_v47  ;;  %11486 = vmatprep.subr.bf16.mxu1 %v14528_v39 }
 0x8f8   :  { %5874 = vmatprep.mubr.f32.mxu0 %v14411_v8 }
 0x8f9   :  { %6440 = vmatmul.mubr.f32.vlgmr.msra.gmra.mrb[8].mxu1 %v13609_v23 }
 0x8fa   :  { %11396 = vmatpush1.bf16.msra.mxu0 %v13058_v34  ;;  %11488 = vmatpush1.bf16.msra.mxu1 %v14529_v48 }
 0x8fb   :  { %11398 = vmatprep.subr.bf16.mxu0 %v13072_v31  ;;  %11490 = vmatprep.subr.bf16.mxu1 %v14530_v9 }
 0x8fc   :  { %6526 = vmatprep.mubr.f32.mxu1 %v14411_v8 }
 0x8fe   :  { %11400 = vmatpush1.bf16.msra.mxu0 %v13078_v1  ;;  %11492 = vmatpush1.bf16.msra.mxu1 %v14531_v62 }
 0x8ff   :  { %11402 = vmatprep.subr.bf16.mxu0 %v13086_v30  ;;  %11494 = vmatprep.subr.bf16.mxu1 %v14532_v56 }
 0x902   :  { %11404 = vmatpush1.bf16.msra.mxu0 %v13094_v12  ;;  %11496 = vmatpush1.bf16.msra.mxu1 %v14533_v58 }
 0x903   :  { %11498 = vmatprep.subr.bf16.mxu1 %v14534_v60  ;;  %11502 = vmatprep.subr.bf16.mxu0 %v12578_v50 }
 0x905   :  { %5876 = vmatmul.mubr.f32.vlgmr.msra.gmra.mrb[10].mxu0 %v13600_v13 }
 0x906   :  { %11500 = vmatpush1.bf16.msra.mxu1 %v14535_v63  ;;  %11504 = vmatpush1.bf16.msra.mxu0 %v12587_v51 }
 0x907   :  { %11506 = vmatprep.subr.bf16.mxu0 %v14632_v35  ;;  %6633 = vmatprep.mubr.f32.mxu0 %v14411_v8 }
 0x908   :  { %11598 = vmatprep.subr.bf16.mxu1 %v13035_v4 }
 0x909   :  { %6528 = vmatmul.mubr.f32.vlgmr.msra.gmra.mrb[8].mxu1 %v13609_v23  ;;  %v14638_v23 = vld [vmem:[#allocation23_spill] sm:$0xff] }
 0x90a   :  { %11508 = vmatpush1.bf16.msra.mxu0 %v14633_v10  ;;  %11600 = vmatpush1.bf16.msra.mxu1 %v13043_v46 }
 0x90b   :  { %11510 = vmatprep.subr.bf16.mxu0 %v14634_v3  ;;  %11602 = vmatprep.subr.bf16.mxu1 %v13049_v47 }
 0x90c   :  { %7302 = vmatprep.mubr.f32.mxu1 %v14411_v8 }
 0x90e   :  { %11512 = vmatpush1.bf16.msra.mxu0 %v14635_v33  ;;  %11604 = vmatpush1.bf16.msra.mxu1 %v13058_v34 }
 0x90f   :  { %11514 = vmatprep.subr.bf16.mxu0 %v14636_v11  ;;  %11606 = vmatprep.subr.bf16.mxu1 %v13072_v31  ;;  %v14643_v31 = vld [vmem:[#allocation34_spill] sm:$0xff] }
 0x912   :  { %11516 = vmatpush1.bf16.msra.mxu0 %v14637_v15  ;;  %11608 = vmatpush1.bf16.msra.mxu1 %v13078_v1  ;;  %v14644_v1 = vld [vmem:[#allocation24_spill] sm:$0xff] }
 0x913   :  { %11518 = vmatprep.subr.bf16.mxu0 %v14638_v23  ;;  %11610 = vmatprep.subr.bf16.mxu1 %v13086_v30  ;;  %v14645_v23 = vld [vmem:[#allocation26_spill] sm:$0xff]  ;;  %v14646_v30 = vld [vmem:[#allocation27_spill] sm:$0xff] }
 0x915   :  { %6639 = vmatmul.mubr.f32.vlgmr.msra.gmra.mrb[12].mxu0 %v13617_v42  ;;  %v14647_v42 = vld [vmem:[#allocation9_spill] sm:$0xff] }
 0x916   :  { %11520 = vmatpush1.bf16.msra.mxu0 %v14639_v27  ;;  %6789 = vmatprep.mubr.f32.mxu0 %v14411_v8  ;;  %v14648_v27 = vld [vmem:[#allocation10_spill] sm:$0xff] }
 0x917   :  { %11522 = vmatprep.subr.bf16.mxu0 %v14640_v54  ;;  %11612 = vmatpush1.bf16.msra.mxu1 %v13094_v12  ;;  %v14649_v54 = vld [vmem:[#allocation11_spill] sm:$0xff] }
 0x918   :  { %11614 = vmatprep.subr.bf16.mxu1 %v14641_v5  ;;  %v14650_v5 = vld [vmem:[#allocation12_spill] sm:$0xff] }
 0x91a   :  { %11524 = vmatpush1.bf16.msra.mxu0 %v14642_v61  ;;  %v14651_v61 = vld [vmem:[#allocation13_spill] sm:$0xff] }
 0x91b   :  { %11526 = vmatprep.subr.bf16.mxu0 %v14643_v31  ;;  %v14652_v31 = vld [vmem:[#allocation17_spill] sm:$0xff] }
 0x91e   :  { %11528 = vmatpush1.bf16.msra.mxu0 %v14644_v1  ;;  %v14653_v1 = vld [vmem:[#allocation18_spill] sm:$0xff] }
 0x91f   :  { %11530 = vmatprep.subr.bf16.mxu0 %v14645_v23  ;;  %v14654_v23 = vld [vmem:[#allocation19_spill] sm:$0xff] }
 0x922   :  { %11532 = vmatpush1.bf16.msra.mxu0 %v14646_v30 }
 0x923   :  { %11534 = vmatprep.subr.bf16.mxu0 %v14647_v42 }
 0x925   :  { %6791 = vmatmul.mubr.f32.vlgmr.msra.gmra.mrb[12].mxu0 %v13600_v13 }
 0x926   :  { %11536 = vmatpush1.bf16.msra.mxu0 %v14648_v27  ;;  %6893 = vmatprep.mubr.f32.mxu0 %v14411_v8  ;;  %v14662_v27 = vld [vmem:[#allocation30_spill] sm:$0xff] }
 0x927   :  { %11538 = vmatprep.subr.bf16.mxu0 %v14649_v54  ;;  %v14661_v54 = vld [vmem:[#allocation29_spill] sm:$0xff] }
 0x92a   :  { %11540 = vmatpush1.bf16.msra.mxu0 %v14650_v5  ;;  %v14660_v5 = vld [vmem:[#allocation28_spill] sm:$0xff] }
 0x92b   :  { %11542 = vmatprep.subr.bf16.mxu0 %v14651_v61  ;;  %v14659_v61 = vld [vmem:[#allocation38_spill] sm:$0xff] }
 0x92e   :  { %11544 = vmatpush1.bf16.msra.mxu0 %v14652_v31  ;;  %v14658_v31 = vld [vmem:[#allocation37_spill] sm:$0xff] }
 0x92f   :  { %11546 = vmatprep.subr.bf16.mxu0 %v14653_v1  ;;  %v14657_v1 = vld [vmem:[#allocation36_spill] sm:$0xff] }
 0x932   :  { %11548 = vmatpush1.bf16.msra.mxu0 %v14654_v23  ;;  %v14655_v23 = vld [vmem:[#allocation25_spill] sm:$0xff] }
 0x933   :  { %11550 = vmatprep.subr.bf16.mxu0 %v12578_v50 }
 0x935   :  { %6896 = vmatmul.mubr.f32.vlgmr.msra.gmra.mrb[12].mxu0 %v13603_v37  ;;  %v14656_v37 = vld [vmem:[#allocation35_spill] sm:$0xff] }
 0x936   :  { %11552 = vmatpush1.bf16.msra.mxu0 %v12587_v51  ;;  %6982 = vmatprep.mubr.f32.mxu0 %v14411_v8 }
 0x937   :  { %11554 = vmatprep.subr.bf16.mxu0 %v14632_v35 }
 0x93a   :  { %11556 = vmatpush1.bf16.msra.mxu0 %v14633_v10 }
 0x93b   :  { %11558 = vmatprep.subr.bf16.mxu0 %v14634_v3 }
 0x93e   :  { %11560 = vmatpush1.bf16.msra.mxu0 %v14635_v33 }
 0x93f   :  { %11562 = vmatprep.subr.bf16.mxu0 %v14636_v11 }
 0x942   :  { %11564 = vmatpush1.bf16.msra.mxu0 %v14637_v15 }
 0x943   :  { %11566 = vmatprep.subr.bf16.mxu0 %v14655_v23 }
 0x945   :  { %6986 = vmatmul.mubr.f32.vlgmr.msra.gmra.mrb[12].mxu0 %v13607_v2  ;;  %v14663_v2 = vld [vmem:[#allocation47_spill] sm:$0xff] }
 0x946   :  { %11568 = vmatpush1.bf16.msra.mxu0 %v14656_v37  ;;  %7104 = vmatprep.mubr.f32.mxu0 %v14411_v8 }
 0x947   :  { %11570 = vmatprep.subr.bf16.mxu0 %v14657_v1 }
 0x94a   :  { %11572 = vmatpush1.bf16.msra.mxu0 %v14658_v31 }
 0x94b   :  { %11574 = vmatprep.subr.bf16.mxu0 %v14659_v61 }
 0x94e   :  { %11576 = vmatpush1.bf16.msra.mxu0 %v14660_v5 }
 0x94f   :  { %11578 = vmatprep.subr.bf16.mxu0 %v14661_v54  ;;  %v14664_v54 = vld [vmem:[#allocation39_spill] sm:$0xff] }
 0x952   :  { %11580 = vmatpush1.bf16.msra.mxu0 %v14662_v27 }
 0x953   :  { %11582 = vmatprep.subr.bf16.mxu0 %v12578_v50 }
 0x955   :  { %7106 = vmatmul.mubr.f32.vlgmr.msra.gmra.mrb[12].mxu0 %v13600_v13 }
 0x956   :  { %11584 = vmatpush1.bf16.msra.mxu0 %v12587_v51  ;;  %7192 = vmatprep.mubr.f32.mxu0 %v14411_v8 }
 0x957   :  { %11586 = vmatprep.subr.bf16.mxu0 %v14632_v35 }
 0x95a   :  { %11588 = vmatpush1.bf16.msra.mxu0 %v14633_v10 }
 0x95b   :  { %11590 = vmatprep.subr.bf16.mxu0 %v14634_v3 }
 0x95e   :  { %11592 = vmatpush1.bf16.msra.mxu0 %v14635_v33 }
 0x95f   :  { %11594 = vmatprep.subr.bf16.mxu0 %v14636_v11 }
 0x962   :  { %11596 = vmatpush1.bf16.msra.mxu0 %v14637_v15 }
 0x963   :  { %11694 = vmatprep.subr.bf16.mxu0 %v14528_v39 }
 0x965   :  { %7194 = vmatmul.mubr.f32.vlgmr.msra.gmra.mrb[12].mxu0 %v13600_v13 }
 0x966   :  { %11696 = vmatpush1.bf16.msra.mxu0 %v14529_v48  ;;  %7954 = vmatprep.mubr.f32.mxu0 %v14411_v8 }
 0x967   :  { %11698 = vmatprep.subr.bf16.mxu0 %v14530_v9 }
 0x96a   :  { %11700 = vmatpush1.bf16.msra.mxu0 %v14531_v62 }
 0x96b   :  { %11702 = vmatprep.subr.bf16.mxu0 %v14532_v56 }
 0x96e   :  { %11704 = vmatpush1.bf16.msra.mxu0 %v14533_v58 }
 0x96f   :  { %11706 = vmatprep.subr.bf16.mxu0 %v14534_v60 }
 0x972   :  { %11708 = vmatpush1.bf16.msra.mxu0 %v14535_v63 }
 0x973   :  { %11710 = vmatprep.subr.bf16.mxu0 %v14663_v2 }
 0x9d8   :  { %v5877_v27 = vpop.f32.mrb[10].mxu0 }
 0x9d9   :  { %v5879_v13 = vpop.f32.mrb[11].mxu0  ;;  %v12090_v5 = vadd.f32 %v5877_v27, %v14664_v54 }
 0x9da   :  { %v12091_v11 = vadd.f32 %v5879_v13, %v13356_v43 }
 0x9dc   :  { %v6529_v61 = vpop.f32.mrb[8].mxu1 }
 0x9dd   :  { %v6534_v31 = vadd.f32 %v12090_v5, %v6529_v61  ;;  %v6531_v1 = vpop.f32.mrb[9].mxu1 }
 0x9de   :  { %v6541_v30 = vadd.f32 %v6531_v1, %v13352_v57 }
 0x9df   :  { %v10588_v37 = vmul.f32 -1.442695, %v6534_v31 }
 0x9e1   :  { %12296 = vpow2.f32 %v10588_v37 }
 0x9eb   :  { %v12297_v23 = vpop.eup %12296 }
 0x9ec   :  { %v6538_v42 = vadd.f32 1.0, %v12297_v23 }
 0x9ee   :  { %12298 = vrcp.f32 %v6538_v42 }
 0x9f8   :  { %v12299_v15 = vpop.eup %12298 }
 0x9f9   :  { %v6542_v33 = vmul.f32 %v12299_v15, %v6541_v30 }
 0x9fb   :  { %v6543_v3 = vadd.f32 %v12091_v11, %v6542_v33 }
 0xa38   :  { %v7195_v2 = vpop.f32.mrb[12].mxu0 }
 0xa39   :  { %v12092_v10 = vadd.f32 %v7195_v2, %v14543_v7  ;;  %v7197_v35 = vpop.f32.mrb[13].mxu0 }
 0xa3a   :  { %v12093_v31 = vadd.f32 %v7197_v35, %v14605_v55  ;;  %v6545_v35 = vsub.f32 1.0, %v12299_v15 }
 0xa3b   :  { %v10589_v27 = vmul.f32 -1.442695, %v12092_v10 }
 0xa3d   :  { %12300 = vpow2.f32 %v10589_v27  ;;  %v6551_v27 = vmul.f32 %v12299_v15, %v13595_v21  ;;  %v14676_v21 = vld [vmem:[#allocation103_spill] sm:$0xff] }
 0xa47   :  { %v12301_v61 = vpop.eup %12300 }
 0xa48   :  { %v7203_v5 = vadd.f32 1.0, %v12301_v61 }
 0xa4a   :  { %12302 = vrcp.f32 %v7203_v5 }
 0xa54   :  { %v12303_v23 = vpop.eup %12302 }
 0xa55   :  { %v7206_v42 = vmul.f32 %v12303_v23, %v12093_v31  ;;  %v7209_v11 = vsub.f32 1.0, %v12303_v23  ;;  %v7215_v33 = vmul.f32 %v12303_v23, %v13590_v52 }
 0xa57   :  { %v7207_v57 = vadd.f32 %v13584_v59, %v7206_v42 }
 0xa59   :  { %12304 = vtanh.f32 %v7207_v57 }
 0xa5a   :  { %12306 = vtanh.f32 %v6543_v3 }
 0xa63   :  { %v12305_v1 = vpop.eup %12304 }
 0xa64   :  { %7211 = vrot.lane.b32.xlu1 %v12305_v1, %s12413_s2  ;;  %v12307_v30 = vpop.eup %12306 }
 0xa68   :  { %6547 = vrot.lane.b32.xlu1 %v12307_v30, %s12413_s2 }
 0xad6   :  { %v7212_v10 = vpop.permute.xlu1 %7211 }
 0xad7   :  { %v7214_v37 = vmul.f32 %v7212_v10, %v7209_v11 }
 0xad9   :  { %v13811_v2 = vadd.f32 %v7215_v33, %v7214_v37 }
 0xada   :  { %v6548_v13 = vpop.permute.xlu1 %6547 }
 0xadb   :  { %v6550_v61 = vmul.f32 %v6548_v13, %v6545_v35  ;;  %7218 = vrot.lane.b32.xlu0 %v13811_v2, %s12413_s2  ;;  %v14665_v13 = vld [vmem:[#allocation58_spill] sm:$0xff] }
 0xadd   :  { %v13816_v3 = vadd.f32 %v6551_v27, %v6550_v61  ;;  %v14666_v27 = vld [vmem:[#allocation93_spill] sm:$0xff]  ;;  %v14667_v61 = vld [vmem:[#allocation59_spill] sm:$0xff] }
 0xadf   :  { %7870 = vrot.lane.b32.xlu0 %v13816_v3, %s12413_s2 }
 0xb4d   :  { %v7219_v5 = vpop.permute.xlu0 %7218 }
 0xb4e   :  { %v7220_v31 = vsel %vm590_vm3, %v7219_v5, 0  ;;  %v14668_v5 = vld [vmem:[#allocation94_spill] sm:$0xff] }
 0xb4f   :  { %v13821_v52 = vand.u32 4294901760, %v7220_v31 }
 0xb51   :  { %v13824_v23 = vsub.f32 %v7220_v31, %v13821_v52  ;;  %v7871_v42 = vpop.permute.xlu0 %7870  ;;  %v14669_v31 = vld [vmem:[#allocation60_spill] sm:$0xff] }
 0xb52   :  { %v7872_v15 = vsel %vm590_vm3, %v7871_v42, 0  ;;  %v14670_v42 = vld [vmem:[#allocation61_spill] sm:$0xff] }
 0xb53   :  { %v13828_v57 = vand.u32 4294901760, %v13824_v23  ;;  %v13830_v1 = vand.u32 4294901760, %v7872_v15 }
 0xb55   :  { %v13833_v30 = vsub.f32 %v7872_v15, %v13830_v1  ;;  %v7306_v11 = vsub.f32 %v13824_v23, %v13828_v57  ;;  %v14671_v15 = vld [vmem:[#allocation62_spill] sm:$0xff] }
 0xb57   :  { %v14352_v10 = vand.u32 4294901760, %v13833_v30  ;;  %v13838_v33 = vand.u32 4294901760, %v7306_v11  ;;  %v14672_v11 = vld [vmem:[#allocation81_spill] sm:$0xff] }
 0xb59   :  { %v7958_v37 = vsub.f32 %v13833_v30, %v14352_v10  ;;  %7308 = vmatmul.mubr.f32.vlgmr.msra.gmra.mrb[10].mxu1 %v13838_v33  ;;  %v14675_v10 = vld [vmem:[#allocation95_spill] sm:$0xff] }
 0xb5a   :  { %11616 = vmatpush1.bf16.msra.mxu1 %v13200_v29  ;;  %7458 = vmatprep.mubr.f32.mxu1 %v14411_v8 }
 0xb5b   :  { %v7959_v35 = vand.u32 4294901760, %v7958_v37  ;;  %11618 = vmatprep.subr.bf16.mxu1 %v13204_v41  ;;  %v14673_v37 = vld [vmem:[#allocation82_spill] sm:$0xff] }
 0xb5d   :  { %7960 = vmatmul.mubr.f32.vlgmr.msra.gmra.mrb[14].mxu0 %v7959_v35  ;;  %v14674_v35 = vld [vmem:[#allocation83_spill] sm:$0xff] }
 0xb5e   :  { %11620 = vmatpush1.bf16.msra.mxu1 %v13208_v25  ;;  %11712 = vmatpush1.bf16.msra.mxu0 %v14549_v6 }
 0xb5f   :  { %11622 = vmatprep.subr.bf16.mxu1 %v13113_v20  ;;  %11714 = vmatprep.subr.bf16.mxu0 %v14550_v53 }
 0xb60   :  { %8110 = vmatprep.mubr.f32.mxu0 %v14411_v8 }
 0xb62   :  { %11624 = vmatpush1.bf16.msra.mxu1 %v13115_v44  ;;  %11716 = vmatpush1.bf16.msra.mxu0 %v14551_v17  ;;  %v14703_v44 = vld [vmem:[#allocation34_spill] sm:$0xff] }
 0xb63   :  { %11626 = vmatprep.subr.bf16.mxu1 %v13117_v28  ;;  %11718 = vmatprep.subr.bf16.mxu0 %v14552_v22  ;;  %v14696_v28 = vld [vmem:[#allocation21_spill] sm:$0xff] }
 0xb66   :  { %11628 = vmatpush1.bf16.msra.mxu1 %v13119_v0  ;;  %11720 = vmatpush1.bf16.msra.mxu0 %v14553_v24  ;;  %v14695_v0 = vld [vmem:[#allocation20_spill] sm:$0xff] }
 0xb67   :  { %11630 = vmatprep.subr.bf16.mxu1 %v13123_v45  ;;  %11722 = vmatprep.subr.bf16.mxu0 %v14554_v18  ;;  %v14687_v45 = vld [vmem:[#allocation67_spill] sm:$0xff] }
 0xb69   :  { %7460 = vmatmul.mubr.f32.vlgmr.msra.gmra.mrb[10].mxu1 %v13821_v52 }
 0xb6a   :  { %11632 = vmatpush1.bf16.msra.mxu1 %v13219_v26  ;;  %11724 = vmatpush1.bf16.msra.mxu0 %v14607_v38  ;;  %v14686_v26 = vld [vmem:[#allocation98_spill] sm:$0xff] }
 0xb6b   :  { %11634 = vmatprep.subr.bf16.mxu1 %v14608_v14  ;;  %11726 = vmatprep.subr.bf16.mxu0 %v14609_v40  ;;  %v14683_v14 = vld [vmem:[#allocation65_spill] sm:$0xff] }
 0xb6c   :  { %7562 = vmatprep.mubr.f32.mxu1 %v14411_v8 }
 0xb6d   :  { %8112 = vmatmul.mubr.f32.vlgmr.msra.gmra.mrb[14].mxu0 %v13830_v1 }
 0xb6e   :  { %11636 = vmatpush1.bf16.msra.mxu1 %v13230_v16  ;;  %11728 = vmatpush1.bf16.msra.mxu0 %v14610_v49  ;;  %v14682_v16 = vld [vmem:[#allocation96_spill] sm:$0xff] }
 0xb6f   :  { %11638 = vmatprep.subr.bf16.mxu1 %v13125_v36  ;;  %11730 = vmatprep.subr.bf16.mxu0 %v14611_v19  ;;  %v14680_v36 = vld [vmem:[#allocation105_spill] sm:$0xff] }
 0xb70   :  { %8214 = vmatprep.mubr.f32.mxu0 %v14411_v8 }
 0xb72   :  { %11640 = vmatpush1.bf16.msra.mxu1 %v13127_v32  ;;  %11732 = vmatpush1.bf16.msra.mxu0 %v14665_v13  ;;  %v14679_v32 = vand.u32 4294901760, %v13833_v30 }
 0xb73   :  { %11642 = vmatprep.subr.bf16.mxu1 %v14666_v27  ;;  %11734 = vmatprep.subr.bf16.mxu0 %v14667_v61  ;;  %v14678_v27 = vld [vmem:[#allocation63_spill] sm:$0xff] }
 0xb76   :  { %11644 = vmatpush1.bf16.msra.mxu1 %v14668_v5  ;;  %11736 = vmatpush1.bf16.msra.mxu0 %v14669_v31  ;;  %v14677_v5 = vld [vmem:[#allocation104_spill] sm:$0xff] }
 0xb77   :  { %11646 = vmatprep.subr.bf16.mxu1 %v13035_v4  ;;  %11738 = vmatprep.subr.bf16.mxu0 %v14670_v42 }
 0xb79   :  { %7565 = vmatmul.mubr.f32.vlgmr.msra.gmra.mrb[10].mxu1 %v13824_v23 }
 0xb7a   :  { %11648 = vmatpush1.bf16.msra.mxu1 %v13043_v46  ;;  %11740 = vmatpush1.bf16.msra.mxu0 %v14671_v15 }
 0xb7b   :  { %11650 = vmatprep.subr.bf16.mxu1 %v13049_v47  ;;  %11742 = vmatprep.subr.bf16.mxu0 %v14528_v39 }
 0xb7c   :  { %7651 = vmatprep.mubr.f32.mxu1 %v14411_v8 }
 0xb7d   :  { %8217 = vmatmul.mubr.f32.vlgmr.msra.gmra.mrb[14].mxu0 %v13833_v30  ;;  %v14688_v30 = vld [vmem:[#allocation99_spill] sm:$0xff] }
 0xb7e   :  { %11652 = vmatpush1.bf16.msra.mxu1 %v13058_v34  ;;  %11744 = vmatpush1.bf16.msra.mxu0 %v14529_v48 }
 0xb7f   :  { %11654 = vmatprep.subr.bf16.mxu1 %v14672_v11  ;;  %11746 = vmatprep.subr.bf16.mxu0 %v14530_v9 }
 0xb80   :  { %8303 = vmatprep.mubr.f32.mxu0 %v14411_v8 }
 0xb82   :  { %11656 = vmatpush1.bf16.msra.mxu1 %v14673_v37  ;;  %11748 = vmatpush1.bf16.msra.mxu0 %v14531_v62 }
 0xb83   :  { %11658 = vmatprep.subr.bf16.mxu1 %v14674_v35  ;;  %11750 = vmatprep.subr.bf16.mxu0 %v14532_v56 }
 0xb86   :  { %11660 = vmatpush1.bf16.msra.mxu1 %v13094_v12  ;;  %11752 = vmatpush1.bf16.msra.mxu0 %v14533_v58 }
 0xb87   :  { %11662 = vmatprep.subr.bf16.mxu1 %v14675_v10  ;;  %11754 = vmatprep.subr.bf16.mxu0 %v14534_v60  ;;  %v14681_v10 = vld [vmem:[#allocation64_spill] sm:$0xff] }
 0xb89   :  { %7655 = vmatmul.mubr.f32.vlgmr.msra.gmra.mrb[10].mxu1 %v13828_v57 }
 0xb8a   :  { %11664 = vmatpush1.bf16.msra.mxu1 %v14676_v21  ;;  %11756 = vmatpush1.bf16.msra.mxu0 %v14535_v63  ;;  %v14684_v21 = vld [vmem:[#allocation97_spill] sm:$0xff] }
 0xb8b   :  { %11666 = vmatprep.subr.bf16.mxu1 %v14677_v5  ;;  %11758 = vmatprep.subr.bf16.mxu0 %v14678_v27  ;;  %v14685_v5 = vld [vmem:[#allocation66_spill] sm:$0xff] }
 0xb8c   :  { %7773 = vmatprep.mubr.f32.mxu1 %v14411_v8 }
 0xb8d   :  { %8307 = vmatmul.mubr.f32.vlgmr.msra.gmra.mrb[14].mxu0 %v14679_v32  ;;  %v14689_v32 = vld [vmem:[#allocation68_spill] sm:$0xff] }
 0xb8e   :  { %11668 = vmatpush1.bf16.msra.mxu1 %v14680_v36  ;;  %11760 = vmatpush1.bf16.msra.mxu0 %v14681_v10  ;;  %v14690_v36 = vld [vmem:[#allocation69_spill] sm:$0xff] }
 0xb8f   :  { %11670 = vmatprep.subr.bf16.mxu1 %v14682_v16  ;;  %11762 = vmatprep.subr.bf16.mxu0 %v14683_v14  ;;  %v14691_v16 = vld [vmem:[#allocation70_spill] sm:$0xff] }
 0xb90   :  { %8425 = vmatprep.mubr.f32.mxu0 %v14411_v8 }
 0xb92   :  { %11672 = vmatpush1.bf16.msra.mxu1 %v14684_v21  ;;  %11764 = vmatpush1.bf16.msra.mxu0 %v14685_v5  ;;  %v14694_v21 = vld [vmem:[#allocation16_spill] sm:$0xff] }
 0xb93   :  { %11674 = vmatprep.subr.bf16.mxu1 %v14686_v26  ;;  %11766 = vmatprep.subr.bf16.mxu0 %v14687_v45  ;;  %v14693_v26 = vld [vmem:[#allocation15_spill] sm:$0xff] }
 0xb96   :  { %11676 = vmatpush1.bf16.msra.mxu1 %v14688_v30  ;;  %11768 = vmatpush1.bf16.msra.mxu0 %v14689_v32  ;;  %v14692_v30 = vld [vmem:[#allocation14_spill] sm:$0xff] }
 0xb97   :  { %11678 = vmatprep.subr.bf16.mxu1 %v13035_v4  ;;  %11770 = vmatprep.subr.bf16.mxu0 %v14690_v36 }
 0xb99   :  { %7775 = vmatmul.mubr.f32.vlgmr.msra.gmra.mrb[10].mxu1 %v13821_v52 }
 0xb9a   :  { %11680 = vmatpush1.bf16.msra.mxu1 %v13043_v46  ;;  %11772 = vmatpush1.bf16.msra.mxu0 %v14691_v16 }
 0xb9b   :  { %11682 = vmatprep.subr.bf16.mxu1 %v13049_v47  ;;  %11774 = vmatprep.subr.bf16.mxu0 %v14528_v39 }
 0xb9c   :  { %7861 = vmatprep.mubr.f32.mxu1 %v14411_v8 }
 0xb9d   :  { %8427 = vmatmul.mubr.f32.vlgmr.msra.gmra.mrb[14].mxu0 %v13830_v1 }
 0xb9e   :  { %11684 = vmatpush1.bf16.msra.mxu1 %v13058_v34  ;;  %11776 = vmatpush1.bf16.msra.mxu0 %v14529_v48 }
 0xb9f   :  { %11686 = vmatprep.subr.bf16.mxu1 %v14672_v11  ;;  %11778 = vmatprep.subr.bf16.mxu0 %v14530_v9 }
 0xba0   :  { %8513 = vmatprep.mubr.f32.mxu0 %v14411_v8 }
 0xba2   :  { %11688 = vmatpush1.bf16.msra.mxu1 %v14673_v37  ;;  %11780 = vmatpush1.bf16.msra.mxu0 %v14531_v62 }
 0xba3   :  { %11690 = vmatprep.subr.bf16.mxu1 %v14674_v35  ;;  %11782 = vmatprep.subr.bf16.mxu0 %v14532_v56 }
 0xba6   :  { %11692 = vmatpush1.bf16.msra.mxu1 %v13094_v12  ;;  %11784 = vmatpush1.bf16.msra.mxu0 %v14533_v58 }
 0xba7   :  { %11786 = vmatprep.subr.bf16.mxu0 %v14534_v60  ;;  %11790 = vmatprep.subr.bf16.mxu1 %v12578_v50 }
 0xba9   :  { %7863 = vmatmul.mubr.f32.vlgmr.msra.gmra.mrb[10].mxu1 %v13821_v52 }
 0xbaa   :  { %11788 = vmatpush1.bf16.msra.mxu0 %v14535_v63  ;;  %11792 = vmatpush1.bf16.msra.mxu1 %v12587_v51 }
 0xbab   :  { %11794 = vmatprep.subr.bf16.mxu1 %v14692_v30  ;;  %8620 = vmatprep.mubr.f32.mxu1 %v14411_v8 }
 0xbac   :  { %11886 = vmatprep.subr.bf16.mxu0 %v13035_v4  ;;  %v14697_v4 = vld [vmem:[#allocation22_spill] sm:$0xff] }
 0xbad   :  { %8515 = vmatmul.mubr.f32.vlgmr.msra.gmra.mrb[14].mxu0 %v13830_v1  ;;  %v14698_v1 = vld [vmem:[#allocation23_spill] sm:$0xff] }
 0xbae   :  { %11796 = vmatpush1.bf16.msra.mxu1 %v14693_v26  ;;  %11888 = vmatpush1.bf16.msra.mxu0 %v13043_v46  ;;  %v14700_v46 = vld [vmem:[#allocation32_spill] sm:$0xff] }
 0xbaf   :  { %11798 = vmatprep.subr.bf16.mxu1 %v14694_v21  ;;  %11890 = vmatprep.subr.bf16.mxu0 %v13049_v47  ;;  %v14699_v47 = vld [vmem:[#allocation31_spill] sm:$0xff] }
 0xbb0   :  { %9289 = vmatprep.mubr.f32.mxu0 %v14411_v8 }
 0xbb2   :  { %11800 = vmatpush1.bf16.msra.mxu1 %v14695_v0  ;;  %11892 = vmatpush1.bf16.msra.mxu0 %v13058_v34  ;;  %v14701_v34 = vld [vmem:[#allocation85_spill] sm:$0xff] }
 0xbb3   :  { %11802 = vmatprep.subr.bf16.mxu1 %v14696_v28  ;;  %11894 = vmatprep.subr.bf16.mxu0 %v14672_v11  ;;  %v14702_v11 = vld [vmem:[#allocation33_spill] sm:$0xff] }
 0xbb6   :  { %11804 = vmatpush1.bf16.msra.mxu1 %v14697_v4  ;;  %11896 = vmatpush1.bf16.msra.mxu0 %v14673_v37  ;;  %v14704_v37 = vld [vmem:[#allocation24_spill] sm:$0xff] }
 0xbb7   :  { %11806 = vmatprep.subr.bf16.mxu1 %v14698_v1  ;;  %11898 = vmatprep.subr.bf16.mxu0 %v14674_v35  ;;  %v14705_v1 = vld [vmem:[#allocation26_spill] sm:$0xff]  ;;  %v14706_v35 = vld [vmem:[#allocation27_spill] sm:$0xff] }
 0xbb9   :  { %8626 = vmatmul.mubr.f32.vlgmr.msra.gmra.mrb[12].mxu1 %v13838_v33  ;;  %v14707_v33 = vld [vmem:[#allocation9_spill] sm:$0xff] }
 0xbba   :  { %11808 = vmatpush1.bf16.msra.mxu1 %v14699_v47  ;;  %8776 = vmatprep.mubr.f32.mxu1 %v14411_v8  ;;  %v14708_v47 = vld [vmem:[#allocation10_spill] sm:$0xff] }
 0xbbb   :  { %11810 = vmatprep.subr.bf16.mxu1 %v14700_v46  ;;  %11900 = vmatpush1.bf16.msra.mxu0 %v13094_v12  ;;  %v14709_v46 = vld [vmem:[#allocation11_spill] sm:$0xff] }
 0xbbc   :  { %11902 = vmatprep.subr.bf16.mxu0 %v14701_v34  ;;  %v14710_v34 = vld [vmem:[#allocation12_spill] sm:$0xff] }
 0xbbe   :  { %11812 = vmatpush1.bf16.msra.mxu1 %v14702_v11  ;;  %v14711_v11 = vld [vmem:[#allocation13_spill] sm:$0xff] }
 0xbbf   :  { %11814 = vmatprep.subr.bf16.mxu1 %v14703_v44  ;;  %v14712_v44 = vld [vmem:[#allocation17_spill] sm:$0xff] }
 0xbc2   :  { %11816 = vmatpush1.bf16.msra.mxu1 %v14704_v37  ;;  %v14713_v37 = vld [vmem:[#allocation18_spill] sm:$0xff] }
 0xbc3   :  { %11818 = vmatprep.subr.bf16.mxu1 %v14705_v1  ;;  %v14714_v1 = vld [vmem:[#allocation19_spill] sm:$0xff] }
 0xbc6   :  { %11820 = vmatpush1.bf16.msra.mxu1 %v14706_v35  ;;  %v14715_v35 = vld [vmem:[#allocation25_spill] sm:$0xff] }
 0xbc7   :  { %11822 = vmatprep.subr.bf16.mxu1 %v14707_v33  ;;  %v14717_v33 = vld [vmem:[#allocation36_spill] sm:$0xff] }
 0xbc9   :  { %8778 = vmatmul.mubr.f32.vlgmr.msra.gmra.mrb[12].mxu1 %v13821_v52 }
 0xbca   :  { %11824 = vmatpush1.bf16.msra.mxu1 %v14708_v47  ;;  %8880 = vmatprep.mubr.f32.mxu1 %v14411_v8  ;;  %v14718_v47 = vld [vmem:[#allocation37_spill] sm:$0xff] }
 0xbcb   :  { %11826 = vmatprep.subr.bf16.mxu1 %v14709_v46  ;;  %v14719_v46 = vld [vmem:[#allocation38_spill] sm:$0xff] }
 0xbce   :  { %11828 = vmatpush1.bf16.msra.mxu1 %v14710_v34  ;;  %v14720_v34 = vld [vmem:[#allocation28_spill] sm:$0xff] }
 0xbcf   :  { %11830 = vmatprep.subr.bf16.mxu1 %v14711_v11  ;;  %v14721_v11 = vld [vmem:[#allocation29_spill] sm:$0xff] }
 0xbd2   :  { %11832 = vmatpush1.bf16.msra.mxu1 %v14712_v44  ;;  %v14722_v44 = vld [vmem:[#allocation30_spill] sm:$0xff] }
 0xbd3   :  { %11834 = vmatprep.subr.bf16.mxu1 %v14713_v37  ;;  %v14024_v37 = vld [vmem:[#allocation6 + $0x10] ss:$0 sm:$0xff] }
 0xbd6   :  { %11836 = vmatpush1.bf16.msra.mxu1 %v14714_v1 }
 0xbd7   :  { %11838 = vmatprep.subr.bf16.mxu1 %v12578_v50 }
 0xbd9   :  { %8883 = vmatmul.mubr.f32.vlgmr.msra.gmra.mrb[12].mxu1 %v13824_v23  ;;  %v14716_v23 = vld [vmem:[#allocation35_spill] sm:$0xff] }
 0xbda   :  { %11840 = vmatpush1.bf16.msra.mxu1 %v12587_v51  ;;  %8969 = vmatprep.mubr.f32.mxu1 %v14411_v8 }
 0xbdb   :  { %11842 = vmatprep.subr.bf16.mxu1 %v14692_v30 }
 0xbde   :  { %11844 = vmatpush1.bf16.msra.mxu1 %v14693_v26 }
 0xbdf   :  { %11846 = vmatprep.subr.bf16.mxu1 %v14694_v21 }
 0xbe2   :  { %11848 = vmatpush1.bf16.msra.mxu1 %v14695_v0 }
 0xbe3   :  { %11850 = vmatprep.subr.bf16.mxu1 %v14696_v28 }
 0xbe6   :  { %11852 = vmatpush1.bf16.msra.mxu1 %v14697_v4 }
 0xbe7   :  { %11854 = vmatprep.subr.bf16.mxu1 %v14715_v35 }
 0xbe9   :  { %8973 = vmatmul.mubr.f32.vlgmr.msra.gmra.mrb[12].mxu1 %v13828_v57 }
 0xbea   :  { %11856 = vmatpush1.bf16.msra.mxu1 %v14716_v23  ;;  %9091 = vmatprep.mubr.f32.mxu1 %v14411_v8 }
 0xbeb   :  { %11858 = vmatprep.subr.bf16.mxu1 %v14717_v33 }
 0xbee   :  { %11860 = vmatpush1.bf16.msra.mxu1 %v14718_v47 }
 0xbef   :  { %11862 = vmatprep.subr.bf16.mxu1 %v14719_v46 }
 0xbf2   :  { %11864 = vmatpush1.bf16.msra.mxu1 %v14720_v34 }
 0xbf3   :  { %11866 = vmatprep.subr.bf16.mxu1 %v14721_v11 }
 0xbf6   :  { %11868 = vmatpush1.bf16.msra.mxu1 %v14722_v44 }
 0xbf7   :  { %11870 = vmatprep.subr.bf16.mxu1 %v12578_v50  ;;  %v14723_v50 = vld [vmem:[#allocation47_spill] sm:$0xff] }
 0xbf9   :  { %9093 = vmatmul.mubr.f32.vlgmr.msra.gmra.mrb[12].mxu1 %v13821_v52 }
 0xbfa   :  { %11872 = vmatpush1.bf16.msra.mxu1 %v12587_v51  ;;  %9179 = vmatprep.mubr.f32.mxu1 %v14411_v8 }
 0xbfb   :  { %11874 = vmatprep.subr.bf16.mxu1 %v14692_v30 }
 0xbfe   :  { %11876 = vmatpush1.bf16.msra.mxu1 %v14693_v26 }
 0xbff   :  { %11878 = vmatprep.subr.bf16.mxu1 %v14694_v21 }
 0xc02   :  { %11880 = vmatpush1.bf16.msra.mxu1 %v14695_v0 }
 0xc03   :  { %11882 = vmatprep.subr.bf16.mxu1 %v14696_v28 }
 0xc06   :  { %11884 = vmatpush1.bf16.msra.mxu1 %v14697_v4 }
 0xc07   :  { %11982 = vmatprep.subr.bf16.mxu1 %v14528_v39 }
 0xc09   :  { %9181 = vmatmul.mubr.f32.vlgmr.msra.gmra.mrb[12].mxu1 %v13821_v52 }
 0xc0a   :  { %11984 = vmatpush1.bf16.msra.mxu1 %v14529_v48  ;;  %9941 = vmatprep.mubr.f32.mxu1 %v14411_v8 }
 0xc0b   :  { %11986 = vmatprep.subr.bf16.mxu1 %v14530_v9 }
 0xc0e   :  { %11988 = vmatpush1.bf16.msra.mxu1 %v14531_v62 }
 0xc0f   :  { %11990 = vmatprep.subr.bf16.mxu1 %v14532_v56 }
 0xc12   :  { %11992 = vmatpush1.bf16.msra.mxu1 %v14533_v58 }
 0xc13   :  { %11994 = vmatprep.subr.bf16.mxu1 %v14534_v60 }
 0xc16   :  { %11996 = vmatpush1.bf16.msra.mxu1 %v14535_v63 }
 0xc17   :  { %11998 = vmatprep.subr.bf16.mxu1 %v14723_v50 }
 0xc7c   :  { %v7864_v51 = vpop.f32.mrb[10].mxu1 }
 0xc7d   :  { %v7866_v4 = vpop.f32.mrb[11].mxu1  ;;  %v12094_v28 = vadd.f32 %v7864_v51, %v14664_v54 }
 0xc7e   :  { %v12095_v23 = vadd.f32 %v7866_v4, %v13356_v43 }
 0xc80   :  { %v8516_v0 = vpop.f32.mrb[14].mxu0 }
 0xc81   :  { %v8521_v26 = vadd.f32 %v12094_v28, %v8516_v0  ;;  %v8518_v21 = vpop.f32.mrb[15].mxu0 }
 0xc82   :  { %v8528_v1 = vadd.f32 %v14024_v37, %v8518_v21 }
 0xc83   :  { %v10590_v52 = vmul.f32 -1.442695, %v8521_v26 }
 0xc85   :  { %12308 = vpow2.f32 %v10590_v52 }
 0xc8f   :  { %v12309_v57 = vpop.eup %12308 }
 0xc90   :  { %v8525_v30 = vadd.f32 1.0, %v12309_v57 }
 0xc92   :  { %12310 = vrcp.f32 %v8525_v30 }
 0xc9c   :  { %v12311_v35 = vpop.eup %12310 }
 0xc9d   :  { %v8529_v33 = vmul.f32 %v12311_v35, %v8528_v1  ;;  %v8532_v57 = vsub.f32 1.0, %v12311_v35 }
 0xc9f   :  { %v8530_v47 = vadd.f32 %v12095_v23, %v8529_v33  ;;  %v83_v33 = vld [vmem:[#allocation6 + $0x11] ss:$0 sm:$0xff] }
 0xca1   :  { %12312 = vtanh.f32 %v8530_v47 }
 0xcab   :  { %v12313_v46 = vpop.eup %12312 }
 0xcac   :  { %8534 = vrot.lane.b32.xlu0 %v12313_v46, %s12413_s2 }
 0xcdc   :  { %v9182_v34 = vpop.f32.mrb[12].mxu1 }
 0xcdd   :  { %v12096_v11 = vadd.f32 %v9182_v34, %v14543_v7  ;;  %v9184_v44 = vpop.f32.mrb[13].mxu1  ;;  %v8538_v7 = vmul.f32 %v12311_v35, %v13816_v3 }
 0xcde   :  { %v12097_v0 = vadd.f32 %v9184_v44, %v14605_v55 }
 0xcdf   :  { %v10591_v50 = vmul.f32 -1.442695, %v12096_v11 }
 0xce1   :  { %12314 = vpow2.f32 %v10591_v50 }
 0xceb   :  { %v12315_v51 = vpop.eup %12314 }
 0xcec   :  { %v9190_v28 = vadd.f32 1.0, %v12315_v51 }
 0xcee   :  { %12316 = vrcp.f32 %v9190_v28 }
 0xcf8   :  { %v12317_v26 = vpop.eup %12316 }
 0xcf9   :  { %v9193_v21 = vmul.f32 %v12317_v26, %v12097_v0  ;;  %v9196_v55 = vsub.f32 1.0, %v12317_v26 }
 0xcfb   :  { %v9194_v4 = vadd.f32 %v13584_v59, %v9193_v21  ;;  %v9202_v59 = vmul.f32 %v12317_v26, %v13811_v2  ;;  %v14743_v2 = vld [vmem:[#allocation103_spill] sm:$0xff] }
 0xcfd   :  { %12318 = vtanh.f32 %v9194_v4 }
 0xd07   :  { %v12319_v52 = vpop.eup %12318 }
 0xd08   :  { %9198 = vrot.lane.b32.xlu1 %v12319_v52, %s12413_s2 }
 0xd1e   :  { %v8535_v30 = vpop.permute.xlu0 %8534 }
 0xd1f   :  { %v8537_v1 = vmul.f32 %v8535_v30, %v8532_v57 }
 0xd21   :  { %v14034_v23 = vadd.f32 %v8538_v7, %v8537_v1 }
 0xd23   :  { %9857 = vrot.lane.b32.xlu0 %v14034_v23, %s12413_s2 }
 0xd27   :  { %10539 = vrot.lane.b32.xlu0 %v83_v33, %s12413_s2 }
 0xd7a   :  { %v9199_v47 = vpop.permute.xlu1 %9198 }
 0xd7b   :  { %v9201_v46 = vmul.f32 %v9199_v47, %v9196_v55  ;;  %v14750_v55 = vld [vmem:[#allocation41_spill] sm:$0xff] }
 0xd7c   :  { %v10527_v47 = vrot.slane %v14750_v55, 6 }
 0xd7d   :  { %v9203_v34 = vadd.f32 %v9202_v59, %v9201_v46  ;;  %v10529_v59 = vrot.slane %v13816_v3, 4 }
 0xd7f   :  { %9205 = vrot.lane.b32.xlu1 %v9203_v34, %s12413_s2  ;;  %v14751_v34 = vld [vmem:[#allocation40_spill] sm:$0xff] }
 0xd95   :  { %v9858_v11 = vpop.permute.xlu0 %9857 }
 0xd96   :  { %v9859_v35 = vsel %vm590_vm3, %v9858_v11, 0  ;;  %v10534_v11 = vsel %vm10533_vm4, %v14751_v34, %v10527_v47 }
 0xd97   :  { %v9942_v44 = vand.u32 4294901760, %v9859_v35 }
 0xd99   :  { %v9943_v50 = vsub.f32 %v9859_v35, %v9942_v44  ;;  %v10540_v35 = vpop.permute.xlu0 %10539 }
 0xd9b   :  { %v9944_v51 = vand.u32 4294901760, %v9943_v50 }
 0xd9d   :  { %v9945_v28 = vsub.f32 %v9943_v50, %v9944_v51 }
 0xd9f   :  { %v9946_v0 = vand.u32 4294901760, %v9945_v28 }
 0xda1   :  { %9947 = vmatmul.mubr.f32.vlgmr.msra.gmra.mrb[14].mxu1 %v9946_v0 }
 0xda2   :  { %12000 = vmatpush1.bf16.msra.mxu1 %v14549_v6  ;;  %10097 = vmatprep.mubr.f32.mxu1 %v14411_v8 }
 0xda3   :  { %12002 = vmatprep.subr.bf16.mxu1 %v14550_v53 }
 0xda6   :  { %12004 = vmatpush1.bf16.msra.mxu1 %v14551_v17  ;;  %v14734_v17 = vld [vmem:[#allocation94_spill] sm:$0xff] }
 0xda7   :  { %12006 = vmatprep.subr.bf16.mxu1 %v14552_v22  ;;  %v14735_v22 = vld [vmem:[#allocation75_spill] sm:$0xff] }
 0xdaa   :  { %12008 = vmatpush1.bf16.msra.mxu1 %v14553_v24  ;;  %v14736_v24 = vld [vmem:[#allocation76_spill] sm:$0xff] }
 0xdab   :  { %12010 = vmatprep.subr.bf16.mxu1 %v14554_v18  ;;  %v14737_v18 = vld [vmem:[#allocation77_spill] sm:$0xff] }
 0xdae   :  { %12012 = vmatpush1.bf16.msra.mxu1 %v14607_v38  ;;  %v14738_v38 = vld [vmem:[#allocation78_spill] sm:$0xff] }
 0xdaf   :  { %12014 = vmatprep.subr.bf16.mxu1 %v14609_v40  ;;  %v14740_v40 = vld [vmem:[#allocation82_spill] sm:$0xff] }
 0xdb1   :  { %10099 = vmatmul.mubr.f32.vlgmr.msra.gmra.mrb[14].mxu1 %v9942_v44 }
 0xdb2   :  { %12016 = vmatpush1.bf16.msra.mxu1 %v14610_v49  ;;  %10201 = vmatprep.mubr.f32.mxu1 %v14411_v8  ;;  %v14741_v49 = vld [vmem:[#allocation83_spill] sm:$0xff] }
 0xdb3   :  { %12018 = vmatprep.subr.bf16.mxu1 %v14611_v19  ;;  %v14742_v19 = vld [vmem:[#allocation95_spill] sm:$0xff] }
 0xdb6   :  { %12020 = vmatpush1.bf16.msra.mxu1 %v14665_v13  ;;  %v14745_v13 = vld [vmem:[#allocation105_spill] sm:$0xff] }
 0xdb7   :  { %12022 = vmatprep.subr.bf16.mxu1 %v14667_v61  ;;  %v14747_v61 = vld [vmem:[#allocation97_spill] sm:$0xff] }
 0xdba   :  { %12024 = vmatpush1.bf16.msra.mxu1 %v14669_v31  ;;  %v14749_v31 = vld [vmem:[#allocation99_spill] sm:$0xff] }
 0xdbb   :  { %12026 = vmatprep.subr.bf16.mxu1 %v14670_v42 }
 0xdbe   :  { %12028 = vmatpush1.bf16.msra.mxu1 %v14671_v15 }
 0xdbf   :  { %12030 = vmatprep.subr.bf16.mxu1 %v14528_v39 }
 0xdc1   :  { %10204 = vmatmul.mubr.f32.vlgmr.msra.gmra.mrb[14].mxu1 %v9943_v50 }
 0xdc2   :  { %12032 = vmatpush1.bf16.msra.mxu1 %v14529_v48  ;;  %10290 = vmatprep.mubr.f32.mxu1 %v14411_v8 }
 0xdc3   :  { %12034 = vmatprep.subr.bf16.mxu1 %v14530_v9 }
 0xdc6   :  { %12036 = vmatpush1.bf16.msra.mxu1 %v14531_v62 }
 0xdc7   :  { %12038 = vmatprep.subr.bf16.mxu1 %v14532_v56 }
 0xdca   :  { %12040 = vmatpush1.bf16.msra.mxu1 %v14533_v58 }
 0xdcb   :  { %12042 = vmatprep.subr.bf16.mxu1 %v14534_v60 }
 0xdce   :  { %12044 = vmatpush1.bf16.msra.mxu1 %v14535_v63 }
 0xdcf   :  { %12046 = vmatprep.subr.bf16.mxu1 %v14678_v27  ;;  %v14746_v27 = vld [vmem:[#allocation96_spill] sm:$0xff] }
 0xdd1   :  { %10294 = vmatmul.mubr.f32.vlgmr.msra.gmra.mrb[14].mxu1 %v9944_v51 }
 0xdd2   :  { %12048 = vmatpush1.bf16.msra.mxu1 %v14681_v10  ;;  %10412 = vmatprep.mubr.f32.mxu1 %v14411_v8  ;;  %v14744_v10 = vld [vmem:[#allocation104_spill] sm:$0xff] }
 0xdd3   :  { %12050 = vmatprep.subr.bf16.mxu1 %v14683_v14  ;;  %v14739_v14 = vld [vmem:[#allocation81_spill] sm:$0xff] }
 0xdd6   :  { %12052 = vmatpush1.bf16.msra.mxu1 %v14685_v5  ;;  %v14748_v5 = vld [vmem:[#allocation98_spill] sm:$0xff] }
 0xdd7   :  { %12054 = vmatprep.subr.bf16.mxu1 %v14687_v45 }
 0xdda   :  { %12056 = vmatpush1.bf16.msra.mxu1 %v14689_v32 }
 0xddb   :  { %12058 = vmatprep.subr.bf16.mxu1 %v14690_v36 }
 0xdde   :  { %12060 = vmatpush1.bf16.msra.mxu1 %v14691_v16 }
 0xddf   :  { %12062 = vmatprep.subr.bf16.mxu1 %v14528_v39 }
 0xde1   :  { %10414 = vmatmul.mubr.f32.vlgmr.msra.gmra.mrb[14].mxu1 %v9942_v44 }
 0xde2   :  { %12064 = vmatpush1.bf16.msra.mxu1 %v14529_v48  ;;  %10500 = vmatprep.mubr.f32.mxu1 %v14411_v8 }
 0xde3   :  { %12066 = vmatprep.subr.bf16.mxu1 %v14530_v9  ;;  %v14724_v9 = vld [vmem:[#allocation87_spill] sm:$0xff] }
 0xde6   :  { %12068 = vmatpush1.bf16.msra.mxu1 %v14531_v62  ;;  %v14733_v62 = vld [vmem:[#allocation93_spill] sm:$0xff] }
 0xde7   :  { %12070 = vmatprep.subr.bf16.mxu1 %v14532_v56  ;;  %v14728_v56 = vld [vmem:[#allocation100_spill] sm:$0xff] }
 0xdea   :  { %12072 = vmatpush1.bf16.msra.mxu1 %v14533_v58  ;;  %v14727_v58 = vld [vmem:[#allocation90_spill] sm:$0xff] }
 0xdeb   :  { %12074 = vmatprep.subr.bf16.mxu1 %v14534_v60  ;;  %v14726_v60 = vld [vmem:[#allocation89_spill] sm:$0xff] }
 0xdee   :  { %12076 = vmatpush1.bf16.msra.mxu1 %v14535_v63  ;;  %v14725_v63 = vld [vmem:[#allocation88_spill] sm:$0xff] }
 0xdf1   :  { %10502 = vmatmul.mubr.f32.vlgmr.msra.gmra.mrb[14].mxu1 %v9942_v44  ;;  %v9206_v45 = vpop.permute.xlu1 %9205 }
 0xdf2   :  { %v9207_v36 = vsel %vm590_vm3, %v9206_v45, 0 }
 0xdf3   :  { %v9290_v16 = vand.u32 4294901760, %v9207_v36 }
 0xdf5   :  { %v9291_v48 = vsub.f32 %v9207_v36, %v9290_v16 }
 0xdf7   :  { %v9292_v39 = vand.u32 4294901760, %v9291_v48 }
 0xdf9   :  { %v9293_v6 = vsub.f32 %v9291_v48, %v9292_v39 }
 0xdfb   :  { %v9294_v53 = vand.u32 4294901760, %v9293_v6  ;;  %v84_v6 = vld [vmem:[#allocation6 + $0x12] ss:$0 sm:$0xff] }
 0xdfd   :  { %9295 = vmatmul.mubr.f32.vlgmr.msra.gmra.mrb[16].mxu0 %v9294_v53 }
 0xdfe   :  { %11904 = vmatpush1.bf16.msra.mxu0 %v13200_v29  ;;  %9445 = vmatprep.mubr.f32.mxu0 %v14411_v8  ;;  %v14729_v29 = vld [vmem:[#allocation101_spill] sm:$0xff] }
 0xdff   :  { %11906 = vmatprep.subr.bf16.mxu0 %v13204_v41  ;;  %v14730_v41 = vld [vmem:[#allocation102_spill] sm:$0xff] }
 0xe02   :  { %11908 = vmatpush1.bf16.msra.mxu0 %v13208_v25  ;;  %v14731_v25 = vld [vmem:[#allocation91_spill] sm:$0xff] }
 0xe03   :  { %11910 = vmatprep.subr.bf16.mxu0 %v13113_v20  ;;  %v14732_v20 = vld [vmem:[#allocation92_spill] sm:$0xff] }
 0xe06   :  { %11912 = vmatpush1.bf16.msra.mxu0 %v14724_v9 }
 0xe07   :  { %11914 = vmatprep.subr.bf16.mxu0 %v14725_v63 }
 0xe0a   :  { %11916 = vmatpush1.bf16.msra.mxu0 %v14726_v60 }
 0xe0b   :  { %11918 = vmatprep.subr.bf16.mxu0 %v14727_v58 }
 0xe0d   :  { %9447 = vmatmul.mubr.f32.vlgmr.msra.gmra.mrb[16].mxu0 %v9290_v16 }
 0xe0e   :  { %11920 = vmatpush1.bf16.msra.mxu0 %v14728_v56  ;;  %9549 = vmatprep.mubr.f32.mxu0 %v14411_v8 }
 0xe0f   :  { %11922 = vmatprep.subr.bf16.mxu0 %v14729_v29 }
 0xe12   :  { %11924 = vmatpush1.bf16.msra.mxu0 %v14730_v41 }
 0xe13   :  { %11926 = vmatprep.subr.bf16.mxu0 %v14731_v25 }
 0xe16   :  { %11928 = vmatpush1.bf16.msra.mxu0 %v14732_v20 }
 0xe17   :  { %11930 = vmatprep.subr.bf16.mxu0 %v14733_v62 }
 0xe1a   :  { %11932 = vmatpush1.bf16.msra.mxu0 %v14734_v17 }
 0xe1b   :  { %11934 = vmatprep.subr.bf16.mxu0 %v14735_v22 }
 0xe1d   :  { %9552 = vmatmul.mubr.f32.vlgmr.msra.gmra.mrb[16].mxu0 %v9291_v48 }
 0xe1e   :  { %11936 = vmatpush1.bf16.msra.mxu0 %v14736_v24  ;;  %9638 = vmatprep.mubr.f32.mxu0 %v14411_v8 }
 0xe1f   :  { %11938 = vmatprep.subr.bf16.mxu0 %v14737_v18 }
 0xe22   :  { %11940 = vmatpush1.bf16.msra.mxu0 %v14738_v38 }
 0xe23   :  { %11942 = vmatprep.subr.bf16.mxu0 %v14739_v14 }
 0xe26   :  { %11944 = vmatpush1.bf16.msra.mxu0 %v14740_v40 }
 0xe27   :  { %11946 = vmatprep.subr.bf16.mxu0 %v14741_v49 }
 0xe2a   :  { %11948 = vmatpush1.bf16.msra.mxu0 %v13094_v12 }
 0xe2b   :  { %11950 = vmatprep.subr.bf16.mxu0 %v14742_v19 }
 0xe2d   :  { %9642 = vmatmul.mubr.f32.vlgmr.msra.gmra.mrb[16].mxu0 %v9292_v39 }
 0xe2e   :  { %11952 = vmatpush1.bf16.msra.mxu0 %v14743_v2  ;;  %9760 = vmatprep.mubr.f32.mxu0 %v14411_v8 }
 0xe2f   :  { %11954 = vmatprep.subr.bf16.mxu0 %v14744_v10 }
 0xe32   :  { %11956 = vmatpush1.bf16.msra.mxu0 %v14745_v13 }
 0xe33   :  { %11958 = vmatprep.subr.bf16.mxu0 %v14746_v27 }
 0xe36   :  { %11960 = vmatpush1.bf16.msra.mxu0 %v14747_v61 }
 0xe37   :  { %11962 = vmatprep.subr.bf16.mxu0 %v14748_v5 }
 0xe3a   :  { %11964 = vmatpush1.bf16.msra.mxu0 %v14749_v31 }
 0xe3b   :  { %11966 = vmatprep.subr.bf16.mxu0 %v14735_v22 }
 0xe3d   :  { %9762 = vmatmul.mubr.f32.vlgmr.msra.gmra.mrb[16].mxu0 %v9290_v16 }
 0xe3e   :  { %11968 = vmatpush1.bf16.msra.mxu0 %v14736_v24  ;;  %9848 = vmatprep.mubr.f32.mxu0 %v14411_v8 }
 0xe3f   :  { %11970 = vmatprep.subr.bf16.mxu0 %v14737_v18 }
 0xe42   :  { %11972 = vmatpush1.bf16.msra.mxu0 %v14738_v38 }
 0xe43   :  { %11974 = vmatprep.subr.bf16.mxu0 %v14739_v14 }
 0xe46   :  { %11976 = vmatpush1.bf16.msra.mxu0 %v14740_v40 }
 0xe47   :  { %11978 = vmatprep.subr.bf16.mxu0 %v14741_v49 }
 0xe4a   :  { %11980 = vmatpush1.bf16.msra.mxu0 %v13094_v12 }
 0xe4d   :  { %9850 = vmatmul.mubr.f32.vlgmr.msra.gmra.mrb[16].mxu0 %v9290_v16 }
 0xec4   :  { %v10503_v42 = vpop.f32.mrb[14].mxu1 }
 0xec5   :  { %v10505_v15 = vpop.f32.mrb[15].mxu1 }
 0xec6   :  { %v10515_v30 = vadd.f32 %v14024_v37, %v10505_v15  ;;  %v10535_v37 = vsel %vm140_vm1, %v10534_v11, %v10529_v59 }
 0xf20   :  { %v9851_v32 = vpop.f32.mrb[16].mxu0 }
 0xf21   :  { %v12098_v26 = vadd.f32 %v9851_v32, %v14664_v54  ;;  %v9853_v21 = vpop.f32.mrb[17].mxu0  ;;  %v10531_v54 = vrot.slane %v14034_v23, 2 }
 0xf22   :  { %v12099_v1 = vadd.f32 %v9853_v21, %v13356_v43 }
 0xf23   :  { %v10508_v8 = vadd.f32 %v12098_v26, %v10503_v42  ;;  %v10537_v43 = vsel %vm10536_vm5, %v10535_v37, %v10531_v54 }
 0xf24   :  { %v10542_v44 = vmul.f32 %v10540_v35, %v10537_v43 }
 0xf25   :  { %v10592_v4 = vmul.f32 -1.442695, %v10508_v8 }
 0xf27   :  { %12320 = vpow2.f32 %v10592_v4 }
 0xf31   :  { %v12321_v52 = vpop.eup %12320 }
 0xf32   :  { %v10512_v57 = vadd.f32 1.0, %v12321_v52 }
 0xf34   :  { %12322 = vrcp.f32 %v10512_v57 }
 0xf3e   :  { %v12323_v7 = vpop.eup %12322 }
 0xf3f   :  { %v10516_v33 = vmul.f32 %v12323_v7, %v10515_v30  ;;  %v10519_v50 = vsub.f32 1.0, %v12323_v7  ;;  %v10525_v3 = vmul.f32 %v12323_v7, %v14034_v23 }
 0xf41   :  { %v10517_v12 = vadd.f32 %v12099_v1, %v10516_v33 }
 0xf43   :  { %12324 = vtanh.f32 %v10517_v12 }
 0xf4d   :  { %v12325_v46 = vpop.eup %12324 }
 0xf4e   :  { %10521 = vrot.lane.b32.xlu1 %v12325_v46, %s12413_s2 }
 0xf52   :  { %10546 = vrot.lane.b32.xlu1 %v10542_v44, %s12413_s2 }
 0xfc0   :  { %v10522_v51 = vpop.permute.xlu1 %10521 }
 0xfc1   :  { %v10524_v28 = vmul.f32 %v10522_v51, %v10519_v50 }
 0xfc3   :  { %v10526_v0 = vadd.f32 %v10525_v3, %v10524_v28 }
 0xfc4   :  { %v10547_v45 = vpop.permute.xlu1 %10546 }
 0xfc5   :  { %v10552_v36 = vsel %vm590_vm3, %v10547_v45, 0.0  ;;  %v10543_v16 = vmul.f32 %v10540_v35, %v10526_v0 }
 0xfc6   :  { %10553 = vadd.xlane.f32.xlu1 %v10552_v36 }
 0xfc7   :  { %10548 = vrot.lane.b32.xlu0 %v10543_v16, %s12413_s2 }
0x1039   :  { %v10549_v48 = vpop.permute.xlu0 %10548 }
0x103a   :  { %v10556_v39 = vsel %vm10555_vm6, %v10549_v48, 0.0 }
0x103b   :  { %10557 = vadd.xlane.f32.xlu0 %v10556_v39 }
0x1053   :  { %v10554_v53 = vpop.xlane.xlu1 %10553 }
0x1054   :  { %v10559_v9 = vadd.f32 %v10554_v53, %v84_v6 }
0x1056   :  { %v10593_v63 = vmul.f32 -1.442695, %v10559_v9 }
0x1058   :  { %12326 = vpow2.f32 %v10593_v63 }
0x1062   :  { %v12327_v60 = vpop.eup %12326 }
0x1063   :  { %v10567_v23 = vadd.f32 1.0, %v12327_v60 }
0x1065   :  { %12328 = vrcp.f32 %v10567_v23 }
0x106f   :  { %v12329_v58 = vpop.eup %12328 }
0x1070   :  { %10574 = vst.msk [vmem:[%s14153_s3] sm:$0xff] %vm10573_vm7, %v12329_v58 }
0x10c8   :  { %v10558_v56 = vpop.xlane.xlu0 %10557 }
0x10c9   :  { %v10560_v29 = vadd.f32 %v10558_v56, %v84_v6 }
0x10cb   :  { %v10594_v41 = vmul.f32 -1.442695, %v10560_v29 }
0x10cd   :  { %12330 = vpow2.f32 %v10594_v41 }
0x10d7   :  { %v12331_v25 = vpop.eup %12330 }
0x10d8   :  { %v10568_v20 = vadd.f32 1.0, %v12331_v25 }
0x10da   :  { %12332 = vrcp.f32 %v10568_v20 }
0x10e4   :  { %v12333_v62 = vpop.eup %12332 }
0x10e5   :  { %10576 = vst.msk [vmem:[%s14153_s3 + $0x8] sm:$0x3] %vm10575_vm8, %v12333_v62 }
0x10e6   :  { %10581 = vsyncpa [#allocation3], 1 }
0x10e7   :  { %10582 = vsyncpa [#allocation5], 1 }

</bundles_post_ra>
